<compile_context>
chip_gen: v7x
topology: tpu7x:2x2x1
jax: 0.10.0
libtpu: 0.0.40
codegen_flags: <defaults>
</compile_context>

<pallas_src>
import functools
import math

import jax
import jax.numpy as jnp
import numpy as np
from jax.experimental import pallas as pl
from jax.experimental.pallas import tpu as pltpu

D_CONV = 64
BBOX_DIM = 4
PTS_DIM = 10
STRIDE = 4


def _round_up(v, m):
    return (v + m - 1) // m * m


def _head_kernel(x_ref, wf_ref, wh_ref, loc_ref, mask_ref, out_ref, fp_ref,
                 *, B, H, W, num_classes, out_pad):
    D = D_CONV
    Wp = W + 2
    Mrow = H * Wp                        # padded-width rows per batch element
    nc = num_classes
    lead = _round_up(Wp + 1, 16)         # bf16-tile aligned interior offset
    L_fp = fp_ref.shape[0] // B

    # Re-zero the padded-feature scratch EVERY step: keeps the zero border of
    # conv2's "same" padding correct with no cross-step dependence, so the
    # batch grid axis can be "parallel".
    fp_ref[...] = jnp.zeros_like(fp_ref)

    mask = mask_ref[...]                 # (Mrow, 1) f32, 0 on junk rows
    loc = loc_ref[...]                   # (Mrow, out_pad) f32 anchors (box lanes)
    lane = jax.lax.broadcasted_iota(jnp.int32, (1, out_pad), 1)
    is_box = (lane >= nc) & (lane < nc + BBOX_DIM)
    sign = jnp.where(lane < nc + 2, jnp.float32(-1.0), jnp.float32(1.0))

    taps = [(dy, dx) for dy in range(3) for dx in range(3)]

    for b in range(B):
        base = b * L_fp

        # ---- conv1: relu(conv3x3(x)); nine accumulated slab matmuls -------
        acc1 = None
        for k, (dy, dx) in enumerate(taps):
            off = dy * Wp + dx
            p = jnp.dot(x_ref[b, off:off + Mrow, :],
                        wf_ref[k * D:(k + 1) * D, :],
                        preferred_element_type=jnp.float32)
            acc1 = p if acc1 is None else acc1 + p
        featm = jnp.maximum(acc1, 0.0) * mask          # relu + zero junk rows
        featm_bf = featm.astype(jnp.bfloat16)

        # one aligned contiguous interior store; zeroed scratch = zero border
        fp_ref[base + lead:base + lead + Mrow, :] = featm_bf

        # ---- conv2: fused cls|ltrb|pts heads, nine slab matmuls -----------
        acc2 = None
        for k, (dy, dx) in enumerate(taps):
            if dy == 1 and dx == 1:
                src = featm_bf                          # centre tap: reuse regs
            else:
                off = base + lead + (dy - 1) * Wp + (dx - 1)
                src = fp_ref[off:off + Mrow, :]
            p = jnp.dot(src, wh_ref[k * D:(k + 1) * D, :],
                        preferred_element_type=jnp.float32)
            acc2 = p if acc2 is None else acc2 + p

        # apply_ltrb in the fused lane-dense slab (anchors precomputed).
        box = loc + sign * jnp.maximum(acc2, 0.0)
        out_ref[b] = jnp.where(is_box, box, acc2)


def head_forward(x_nchw, w_feats, w_cls, w_ltrb, w_pts):
    N, C, H, W = x_nchw.shape
    assert C == D_CONV
    nc = w_cls.shape[0]
    head_c = nc + BBOX_DIM + PTS_DIM
    out_pad = _round_up(head_c, 128)
    Hp, Wp = H + 2, W + 2
    Mrow = H * Wp
    L_in = _round_up(Hp * Wp + 2, 8)     # slack so the (2,2) tap slab is in-bounds
    lead = _round_up(Wp + 1, 16)
    L_fp = _round_up(lead + Mrow + Wp + 1, 16)

    # ---- batch fold / grid sizing (grid >= 2 when N >= 2: megacore) -------
    per_b_bytes = (2 * L_in * D_CONV * 2          # input block, double-buffered
                   + L_fp * D_CONV * 2            # padded-feature scratch (bf16)
                   + 2 * Mrow * out_pad * 4)      # output block, double-buffered
    vmem_budget = 10 * 1024 * 1024
    want = N // 2 if N >= 2 else 1
    max_fold = max(1, min(want, vmem_budget // per_b_bytes,
                          max(1, 2048 // Mrow)))
    b_tile = 1
    for cand in range(min(N, max_fold), 0, -1):
        if N % cand == 0:
            b_tile = cand
            break

    # ---- glue: NCHW -> flattened, zero-padded, padded-width rows (bf16) ---
    xp = jnp.pad(jnp.transpose(x_nchw, (0, 2, 3, 1)),
                 ((0, 0), (1, 1), (1, 1), (0, 0)))
    xflat = jnp.pad(xp.reshape(N, Hp * Wp, D_CONV),
                    ((0, 0), (0, L_in - Hp * Wp), (0, 0))).astype(jnp.bfloat16)

    # weights: (Cout, Cin, 3, 3) -> (9*Cin, Cout) tap-major rows, bf16
    def to_rows(w):
        return jnp.transpose(w, (2, 3, 1, 0)).reshape(9 * w.shape[1], w.shape[0])

    wf = to_rows(w_feats).astype(jnp.bfloat16)
    wh = jnp.pad(to_rows(jnp.concatenate([w_cls, w_ltrb, w_pts], axis=0)),
                 ((0, 0), (0, out_pad - head_c))).astype(jnp.bfloat16)

    # grid-invariant epilogue constants (hoisted out of the kernel)
    r = jnp.arange(Mrow, dtype=jnp.int32)
    lx = (r % Wp).astype(jnp.float32) * STRIDE + STRIDE // 2
    ly = (r // Wp).astype(jnp.float32) * STRIDE + STRIDE // 2
    loc_slab = jnp.zeros((Mrow, out_pad), jnp.float32)
    loc_slab = loc_slab.at[:, nc:nc + BBOX_DIM].set(
        jnp.stack([lx, ly, lx, ly], axis=1))
    row_mask = ((r % Wp) < W).astype(jnp.float32)[:, None]        # (Mrow, 1)

    kernel = functools.partial(_head_kernel, B=b_tile, H=H, W=W,
                               num_classes=nc, out_pad=out_pad)

    est = (b_tile * per_b_bytes + Mrow * out_pad * 4 + Mrow * 4
           + (wf.size + wh.size) * 2)
    vmem_limit = int(min(48 * 1024 * 1024, max(32 * 1024 * 1024, 2 * est)))

    fused = pl.pallas_call(
        kernel,
        grid_spec=pltpu.PrefetchScalarGridSpec(
            num_scalar_prefetch=0,
            grid=(N // b_tile,),
            in_specs=[
                pl.BlockSpec((b_tile, L_in, D_CONV), lambda n: (n, 0, 0)),
                pl.BlockSpec((9 * D_CONV, D_CONV), lambda n: (0, 0)),
                pl.BlockSpec((9 * D_CONV, out_pad), lambda n: (0, 0)),
                pl.BlockSpec((Mrow, out_pad), lambda n: (0, 0)),
                pl.BlockSpec((Mrow, 1), lambda n: (0, 0)),
            ],
            out_specs=pl.BlockSpec((b_tile, Mrow, out_pad),
                                   lambda n: (n, 0, 0)),
            scratch_shapes=[
                pltpu.VMEM((b_tile * L_fp, D_CONV), jnp.bfloat16),
            ],
        ),
        out_shape=jax.ShapeDtypeStruct((N, Mrow, out_pad), jnp.float32),
        compiler_params=pltpu.CompilerParams(
            dimension_semantics=("parallel",),
            vmem_limit_bytes=vmem_limit),
    )(xflat, wf, wh, loc_slab, row_mask)

    # drop padded-width junk columns, one transpose, slice fused channels
    out = jnp.transpose(fused.reshape(N, H, Wp, out_pad)[:, :, :W, :],
                        (0, 3, 1, 2))
    cls = out[:, :nc]
    box = out[:, nc:nc + BBOX_DIM]
    pts = out[:, nc + BBOX_DIM:head_c]
    return cls, box, pts


def head_forward_ref(x, w_feats, w_cls, w_ltrb, w_pts):
    """Pure-JAX reference mirroring the PyTorch forward (NCHW)."""
    conv = lambda inp, w: jax.lax.conv_general_dilated(
        inp, w, (1, 1), "SAME",
        dimension_numbers=("NCHW", "OIHW", "NCHW"),
        precision=jax.lax.Precision.HIGHEST)
    feat = jax.nn.relu(conv(x, w_feats))
    cls = conv(feat, w_cls)
    ltrb = jax.nn.relu(conv(feat, w_ltrb))
    pts = conv(feat, w_pts)
    _, _, H, W = x.shape
    sx = jnp.arange(W, dtype=jnp.float32) * STRIDE + STRIDE // 2
    sy = jnp.arange(H, dtype=jnp.float32) * STRIDE + STRIDE // 2
    loc_x = jnp.broadcast_to(sx[None, :], (H, W))
    loc_y = jnp.broadcast_to(sy[:, None], (H, W))
    box = jnp.stack([loc_x - ltrb[:, 0], loc_y - ltrb[:, 1],
                     loc_x + ltrb[:, 2], loc_y + ltrb[:, 3]], axis=1)
    return cls, box, pts


if __name__ == "__main__":
    key = jax.random.PRNGKey(0)
    kx, k0, k1, k2, k3 = jax.random.split(key, 5)
    N, H, W = 2, 16, 16
    num_classes = 1

    x = jax.random.normal(kx, (N, D_CONV, H, W), jnp.float32)

    def xavier(k, cout, cin):
        fan_in, fan_out = cin * 9, cout * 9
        bound = math.sqrt(6.0 / (fan_in + fan_out))
        return jax.random.uniform(k, (cout, cin, 3, 3), jnp.float32, -bound, bound)

    w_feats = xavier(k0, D_CONV, D_CONV)
    w_cls = xavier(k1, num_classes, D_CONV)
    w_ltrb = xavier(k2, BBOX_DIM, D_CONV)
    w_pts = xavier(k3, PTS_DIM, D_CONV)
    # NOTE: the PyTorch `_reset_parameters` constant-bias branch
    # (p.shape[-1] == num_classes) never fires for 3x3 conv weights when
    # num_classes == 1, so xavier init here matches the module's init.

    cls, box, pts = jax.block_until_ready(
        head_forward(x, w_feats, w_cls, w_ltrb, w_pts))

    # Tolerance accounts for bf16 MXU operands (f32 accumulation).
    cls_r, box_r, pts_r = head_forward_ref(x, w_feats, w_cls, w_ltrb, w_pts)
    np.testing.assert_allclose(np.asarray(cls), np.asarray(cls_r), rtol=2e-2, atol=2e-2)
    np.testing.assert_allclose(np.asarray(box), np.asarray(box_r), rtol=2e-2, atol=2e-2)
    np.testing.assert_allclose(np.asarray(pts), np.asarray(pts_r), rtol=2e-2, atol=2e-2)
    print("KERNEL_OK")
</pallas_src>

<mosaic_0001>
module attributes {stable_mosaic.version = 11 : i64} {
  func.func @_head_kernel(%arg0: i32, %arg1: memref<1x328x64xbf16, #tpu.memory_space<vmem>>, %arg2: memref<576x64xbf16, #tpu.memory_space<vmem>>, %arg3: memref<576x128xbf16, #tpu.memory_space<vmem>>, %arg4: memref<288x128xf32, #tpu.memory_space<vmem>>, %arg5: memref<288x1xf32, #tpu.memory_space<vmem>>, %arg6: memref<1x288x128xf32, #tpu.memory_space<vmem>>, %arg7: memref<352x64xbf16, #tpu.memory_space<vmem>>) attributes {dimension_semantics = [#tpu.dimension_semantics<parallel>], iteration_bounds = array<i64: 2>, scalar_prefetch = 0 : i64, scratch_operands = 1 : i64, tpu.core_type = #tpu.core_type<tc>, window_params = [{transform_indices = @transform_0, window_bounds = array<i64: 1, 328, 64>}, {pipeline_mode = #tpu.pipeline_mode<synchronous>, transform_indices = @transform_1, window_bounds = array<i64: 576, 64>}, {pipeline_mode = #tpu.pipeline_mode<synchronous>, transform_indices = @transform_2, window_bounds = array<i64: 576, 128>}, {pipeline_mode = #tpu.pipeline_mode<synchronous>, transform_indices = @transform_3, window_bounds = array<i64: 288, 128>}, {pipeline_mode = #tpu.pipeline_mode<synchronous>, transform_indices = @transform_4, window_bounds = array<i64: 288, 1>}, {transform_indices = @transform_5, window_bounds = array<i64: 1, 288, 128>}]} {
    %cst = arith.constant 0.000000e+00 : bf16
    %0 = vector.broadcast %cst : bf16 to vector<352x64xbf16>
    %c0 = arith.constant 0 : index
    %c0_0 = arith.constant 0 : index
    %1 = vector.load %arg7[%c0, %c0_0] : memref<352x64xbf16, #tpu.memory_space<vmem>>, vector<352x64xbf16>
    tpu.vector_store %arg7[%c0, %c0_0], %0 {strides = array<i32>} : memref<352x64xbf16, #tpu.memory_space<vmem>>, vector<352x64xbf16>,
    %c0_1 = arith.constant 0 : index
    %c0_2 = arith.constant 0 : index
    %2 = vector.load %arg5[%c0_1, %c0_2] : memref<288x1xf32, #tpu.memory_space<vmem>>, vector<288x1xf32>
    %c0_3 = arith.constant 0 : index
    %c0_4 = arith.constant 0 : index
    %3 = vector.load %arg4[%c0_3, %c0_4] : memref<288x128xf32, #tpu.memory_space<vmem>>, vector<288x128xf32>
    %4 = tpu.iota {dimensions = array<i32: 1>} : vector<1x128xi32>
    %c1_i32 = arith.constant 1 : i32
    %5 = vector.broadcast %c1_i32 : i32 to vector<1x128xi32>
    %6 = arith.cmpi sge, %4, %5 : vector<1x128xi32>
    %c5_i32 = arith.constant 5 : i32
    %7 = vector.broadcast %c5_i32 : i32 to vector<1x128xi32>
    %8 = arith.cmpi slt, %4, %7 : vector<1x128xi32>
    %9 = arith.andi %6, %8 : vector<1x128xi1>
    %c3_i32 = arith.constant 3 : i32
    %10 = vector.broadcast %c3_i32 : i32 to vector<1x128xi32>
    %11 = arith.cmpi slt, %4, %10 : vector<1x128xi32>
    %cst_5 = arith.constant -1.000000e+00 : f32
    %cst_6 = arith.constant 1.000000e+00 : f32
    %12 = vector.broadcast %cst_5 : f32 to vector<1x128xf32>
    %13 = vector.broadcast %cst_6 : f32 to vector<1x128xf32>
    %14 = arith.select %11, %12, %13 : vector<1x128xi1>, vector<1x128xf32>
    %c0_7 = arith.constant 0 : index
    %c0_8 = arith.constant 0 : index
    %c0_9 = arith.constant 0 : index
    %15 = vector.load %arg1[%c0_7, %c0_8, %c0_9] : memref<1x328x64xbf16, #tpu.memory_space<vmem>>, vector<1x288x64xbf16>
    %16 = vector.shape_cast %15 : vector<1x288x64xbf16> to vector<288x64xbf16>
    %c0_10 = arith.constant 0 : index
    %c0_11 = arith.constant 0 : index
    %17 = vector.load %arg2[%c0_10, %c0_11] : memref<576x64xbf16, #tpu.memory_space<vmem>>, vector<64x64xbf16>
    %cst_12 = arith.constant dense<0.000000e+00> : vector<288x64xf32>
    %18 = tpu.matmul %16, %17, %cst_12 {dimension_numbers = #tpu.dot_dimension_numbers<[1], [0], [0], [1], [0, 0, 1, 1], [], []>} : vector<288x64xbf16>, vector<64x64xbf16>, vector<288x64xf32> -> vector<288x64xf32>
    %c0_13 = arith.constant 0 : index
    %c1 = arith.constant 1 : index
    %c0_14 = arith.constant 0 : index
    %19 = vector.load %arg1[%c0_13, %c1, %c0_14] : memref<1x328x64xbf16, #tpu.memory_space<vmem>>, vector<1x288x64xbf16>
    %20 = vector.shape_cast %19 : vector<1x288x64xbf16> to vector<288x64xbf16>
    %c64 = arith.constant 64 : index
    %c0_15 = arith.constant 0 : index
    %21 = vector.load %arg2[%c64, %c0_15] : memref<576x64xbf16, #tpu.memory_space<vmem>>, vector<64x64xbf16>
    %cst_16 = arith.constant dense<0.000000e+00> : vector<288x64xf32>
    %22 = tpu.matmul %20, %21, %cst_16 {dimension_numbers = #tpu.dot_dimension_numbers<[1], [0], [0], [1], [0, 0, 1, 1], [], []>} : vector<288x64xbf16>, vector<64x64xbf16>, vector<288x64xf32> -> vector<288x64xf32>
    %23 = arith.addf %18, %22 : vector<288x64xf32>
    %c0_17 = arith.constant 0 : index
    %c2 = arith.constant 2 : index
    %c0_18 = arith.constant 0 : index
    %24 = vector.load %arg1[%c0_17, %c2, %c0_18] : memref<1x328x64xbf16, #tpu.memory_space<vmem>>, vector<1x288x64xbf16>
    %25 = vector.shape_cast %24 : vector<1x288x64xbf16> to vector<288x64xbf16>
    %c128 = arith.constant 128 : index
    %c0_19 = arith.constant 0 : index
    %26 = vector.load %arg2[%c128, %c0_19] : memref<576x64xbf16, #tpu.memory_space<vmem>>, vector<64x64xbf16>
    %cst_20 = arith.constant dense<0.000000e+00> : vector<288x64xf32>
    %27 = tpu.matmul %25, %26, %cst_20 {dimension_numbers = #tpu.dot_dimension_numbers<[1], [0], [0], [1], [0, 0, 1, 1], [], []>} : vector<288x64xbf16>, vector<64x64xbf16>, vector<288x64xf32> -> vector<288x64xf32>
    %28 = arith.addf %23, %27 : vector<288x64xf32>
    %c0_21 = arith.constant 0 : index
    %c18 = arith.constant 18 : index
    %c0_22 = arith.constant 0 : index
    %29 = vector.load %arg1[%c0_21, %c18, %c0_22] : memref<1x328x64xbf16, #tpu.memory_space<vmem>>, vector<1x288x64xbf16>
    %30 = vector.shape_cast %29 : vector<1x288x64xbf16> to vector<288x64xbf16>
    %c192 = arith.constant 192 : index
    %c0_23 = arith.constant 0 : index
    %31 = vector.load %arg2[%c192, %c0_23] : memref<576x64xbf16, #tpu.memory_space<vmem>>, vector<64x64xbf16>
    %cst_24 = arith.constant dense<0.000000e+00> : vector<288x64xf32>
    %32 = tpu.matmul %30, %31, %cst_24 {dimension_numbers = #tpu.dot_dimension_numbers<[1], [0], [0], [1], [0, 0, 1, 1], [], []>} : vector<288x64xbf16>, vector<64x64xbf16>, vector<288x64xf32> -> vector<288x64xf32>
    %33 = arith.addf %28, %32 : vector<288x64xf32>
    %c0_25 = arith.constant 0 : index
    %c19 = arith.constant 19 : index
    %c0_26 = arith.constant 0 : index
    %34 = vector.load %arg1[%c0_25, %c19, %c0_26] : memref<1x328x64xbf16, #tpu.memory_space<vmem>>, vector<1x288x64xbf16>
    %35 = vector.shape_cast %34 : vector<1x288x64xbf16> to vector<288x64xbf16>
    %c256 = arith.constant 256 : index
    %c0_27 = arith.constant 0 : index
    %36 = vector.load %arg2[%c256, %c0_27] : memref<576x64xbf16, #tpu.memory_space<vmem>>, vector<64x64xbf16>
    %cst_28 = arith.constant dense<0.000000e+00> : vector<288x64xf32>
    %37 = tpu.matmul %35, %36, %cst_28 {dimension_numbers = #tpu.dot_dimension_numbers<[1], [0], [0], [1], [0, 0, 1, 1], [], []>} : vector<288x64xbf16>, vector<64x64xbf16>, vector<288x64xf32> -> vector<288x64xf32>
    %38 = arith.addf %33, %37 : vector<288x64xf32>
    %c0_29 = arith.constant 0 : index
    %c20 = arith.constant 20 : index
    %c0_30 = arith.constant 0 : index
    %39 = vector.load %arg1[%c0_29, %c20, %c0_30] : memref<1x328x64xbf16, #tpu.memory_space<vmem>>, vector<1x288x64xbf16>
    %40 = vector.shape_cast %39 : vector<1x288x64xbf16> to vector<288x64xbf16>
    %c320 = arith.constant 320 : index
    %c0_31 = arith.constant 0 : index
    %41 = vector.load %arg2[%c320, %c0_31] : memref<576x64xbf16, #tpu.memory_space<vmem>>, vector<64x64xbf16>
    %cst_32 = arith.constant dense<0.000000e+00> : vector<288x64xf32>
    %42 = tpu.matmul %40, %41, %cst_32 {dimension_numbers = #tpu.dot_dimension_numbers<[1], [0], [0], [1], [0, 0, 1, 1], [], []>} : vector<288x64xbf16>, vector<64x64xbf16>, vector<288x64xf32> -> vector<288x64xf32>
    %43 = arith.addf %38, %42 : vector<288x64xf32>
    %c0_33 = arith.constant 0 : index
    %c36 = arith.constant 36 : index
    %c0_34 = arith.constant 0 : index
    %44 = vector.load %arg1[%c0_33, %c36, %c0_34] : memref<1x328x64xbf16, #tpu.memory_space<vmem>>, vector<1x288x64xbf16>
    %45 = vector.shape_cast %44 : vector<1x288x64xbf16> to vector<288x64xbf16>
    %c384 = arith.constant 384 : index
    %c0_35 = arith.constant 0 : index
    %46 = vector.load %arg2[%c384, %c0_35] : memref<576x64xbf16, #tpu.memory_space<vmem>>, vector<64x64xbf16>
    %cst_36 = arith.constant dense<0.000000e+00> : vector<288x64xf32>
    %47 = tpu.matmul %45, %46, %cst_36 {dimension_numbers = #tpu.dot_dimension_numbers<[1], [0], [0], [1], [0, 0, 1, 1], [], []>} : vector<288x64xbf16>, vector<64x64xbf16>, vector<288x64xf32> -> vector<288x64xf32>
    %48 = arith.addf %43, %47 : vector<288x64xf32>
    %c0_37 = arith.constant 0 : index
    %c37 = arith.constant 37 : index
    %c0_38 = arith.constant 0 : index
    %49 = vector.load %arg1[%c0_37, %c37, %c0_38] : memref<1x328x64xbf16, #tpu.memory_space<vmem>>, vector<1x288x64xbf16>
    %50 = vector.shape_cast %49 : vector<1x288x64xbf16> to vector<288x64xbf16>
    %c448 = arith.constant 448 : index
    %c0_39 = arith.constant 0 : index
    %51 = vector.load %arg2[%c448, %c0_39] : memref<576x64xbf16, #tpu.memory_space<vmem>>, vector<64x64xbf16>
    %cst_40 = arith.constant dense<0.000000e+00> : vector<288x64xf32>
    %52 = tpu.matmul %50, %51, %cst_40 {dimension_numbers = #tpu.dot_dimension_numbers<[1], [0], [0], [1], [0, 0, 1, 1], [], []>} : vector<288x64xbf16>, vector<64x64xbf16>, vector<288x64xf32> -> vector<288x64xf32>
    %53 = arith.addf %48, %52 : vector<288x64xf32>
    %c0_41 = arith.constant 0 : index
    %c38 = arith.constant 38 : index
    %c0_42 = arith.constant 0 : index
    %54 = vector.load %arg1[%c0_41, %c38, %c0_42] : memref<1x328x64xbf16, #tpu.memory_space<vmem>>, vector<1x288x64xbf16>
    %55 = vector.shape_cast %54 : vector<1x288x64xbf16> to vector<288x64xbf16>
    %c512 = arith.constant 512 : index
    %c0_43 = arith.constant 0 : index
    %56 = vector.load %arg2[%c512, %c0_43] : memref<576x64xbf16, #tpu.memory_space<vmem>>, vector<64x64xbf16>
    %cst_44 = arith.constant dense<0.000000e+00> : vector<288x64xf32>
    %57 = tpu.matmul %55, %56, %cst_44 {dimension_numbers = #tpu.dot_dimension_numbers<[1], [0], [0], [1], [0, 0, 1, 1], [], []>} : vector<288x64xbf16>, vector<64x64xbf16>, vector<288x64xf32> -> vector<288x64xf32>
    %58 = arith.addf %53, %57 : vector<288x64xf32>
    %cst_45 = arith.constant 0.000000e+00 : f32
    %59 = vector.broadcast %cst_45 : f32 to vector<288x64xf32>
    %60 = arith.maximumf %58, %59 : vector<288x64xf32>
    %61 = vector.broadcast %2 : vector<288x1xf32> to vector<288x64xf32>
    %62 = arith.mulf %60, %61 : vector<288x64xf32>
    %63 = arith.truncf %62 : vector<288x64xf32> to vector<288x64xbf16>
    %c32 = arith.constant 32 : index
    %c0_46 = arith.constant 0 : index
    %64 = vector.load %arg7[%c32, %c0_46] : memref<352x64xbf16, #tpu.memory_space<vmem>>, vector<288x64xbf16>
    tpu.vector_store %arg7[%c32, %c0_46], %63 {strides = array<i32>} : memref<352x64xbf16, #tpu.memory_space<vmem>>, vector<288x64xbf16>,
    %c13 = arith.constant 13 : index
    %c0_47 = arith.constant 0 : index
    %65 = vector.load %arg7[%c13, %c0_47] : memref<352x64xbf16, #tpu.memory_space<vmem>>, vector<288x64xbf16>
    %c0_48 = arith.constant 0 : index
    %c0_49 = arith.constant 0 : index
    %66 = vector.load %arg3[%c0_48, %c0_49] : memref<576x128xbf16, #tpu.memory_space<vmem>>, vector<64x128xbf16>
    %cst_50 = arith.constant dense<0.000000e+00> : vector<288x128xf32>
    %67 = tpu.matmul %65, %66, %cst_50 {dimension_numbers = #tpu.dot_dimension_numbers<[1], [0], [0], [1], [0, 0, 1, 1], [], []>} : vector<288x64xbf16>, vector<64x128xbf16>, vector<288x128xf32> -> vector<288x128xf32>
    %c14 = arith.constant 14 : index
    %c0_51 = arith.constant 0 : index
    %68 = vector.load %arg7[%c14, %c0_51] : memref<352x64xbf16, #tpu.memory_space<vmem>>, vector<288x64xbf16>
    %c64_52 = arith.constant 64 : index
    %c0_53 = arith.constant 0 : index
    %69 = vector.load %arg3[%c64_52, %c0_53] : memref<576x128xbf16, #tpu.memory_space<vmem>>, vector<64x128xbf16>
    %cst_54 = arith.constant dense<0.000000e+00> : vector<288x128xf32>
    %70 = tpu.matmul %68, %69, %cst_54 {dimension_numbers = #tpu.dot_dimension_numbers<[1], [0], [0], [1], [0, 0, 1, 1], [], []>} : vector<288x64xbf16>, vector<64x128xbf16>, vector<288x128xf32> -> vector<288x128xf32>
    %71 = arith.addf %67, %70 : vector<288x128xf32>
    %c15 = arith.constant 15 : index
    %c0_55 = arith.constant 0 : index
    %72 = vector.load %arg7[%c15, %c0_55] : memref<352x64xbf16, #tpu.memory_space<vmem>>, vector<288x64xbf16>
    %c128_56 = arith.constant 128 : index
    %c0_57 = arith.constant 0 : index
    %73 = vector.load %arg3[%c128_56, %c0_57] : memref<576x128xbf16, #tpu.memory_space<vmem>>, vector<64x128xbf16>
    %cst_58 = arith.constant dense<0.000000e+00> : vector<288x128xf32>
    %74 = tpu.matmul %72, %73, %cst_58 {dimension_numbers = #tpu.dot_dimension_numbers<[1], [0], [0], [1], [0, 0, 1, 1], [], []>} : vector<288x64xbf16>, vector<64x128xbf16>, vector<288x128xf32> -> vector<288x128xf32>
    %75 = arith.addf %71, %74 : vector<288x128xf32>
    %c31 = arith.constant 31 : index
    %c0_59 = arith.constant 0 : index
    %76 = vector.load %arg7[%c31, %c0_59] : memref<352x64xbf16, #tpu.memory_space<vmem>>, vector<288x64xbf16>
    %c192_60 = arith.constant 192 : index
    %c0_61 = arith.constant 0 : index
    %77 = vector.load %arg3[%c192_60, %c0_61] : memref<576x128xbf16, #tpu.memory_space<vmem>>, vector<64x128xbf16>
    %cst_62 = arith.constant dense<0.000000e+00> : vector<288x128xf32>
    %78 = tpu.matmul %76, %77, %cst_62 {dimension_numbers = #tpu.dot_dimension_numbers<[1], [0], [0], [1], [0, 0, 1, 1], [], []>} : vector<288x64xbf16>, vector<64x128xbf16>, vector<288x128xf32> -> vector<288x128xf32>
    %79 = arith.addf %75, %78 : vector<288x128xf32>
    %c256_63 = arith.constant 256 : index
    %c0_64 = arith.constant 0 : index
    %80 = vector.load %arg3[%c256_63, %c0_64] : memref<576x128xbf16, #tpu.memory_space<vmem>>, vector<64x128xbf16>
    %cst_65 = arith.constant dense<0.000000e+00> : vector<288x128xf32>
    %81 = tpu.matmul %63, %80, %cst_65 {dimension_numbers = #tpu.dot_dimension_numbers<[1], [0], [0], [1], [0, 0, 1, 1], [], []>} : vector<288x64xbf16>, vector<64x128xbf16>, vector<288x128xf32> -> vector<288x128xf32>
    %82 = arith.addf %79, %81 : vector<288x128xf32>
    %c33 = arith.constant 33 : index
    %c0_66 = arith.constant 0 : index
    %83 = vector.load %arg7[%c33, %c0_66] : memref<352x64xbf16, #tpu.memory_space<vmem>>, vector<288x64xbf16>
    %c320_67 = arith.constant 320 : index
    %c0_68 = arith.constant 0 : index
    %84 = vector.load %arg3[%c320_67, %c0_68] : memref<576x128xbf16, #tpu.memory_space<vmem>>, vector<64x128xbf16>
    %cst_69 = arith.constant dense<0.000000e+00> : vector<288x128xf32>
    %85 = tpu.matmul %83, %84, %cst_69 {dimension_numbers = #tpu.dot_dimension_numbers<[1], [0], [0], [1], [0, 0, 1, 1], [], []>} : vector<288x64xbf16>, vector<64x128xbf16>, vector<288x128xf32> -> vector<288x128xf32>
    %86 = arith.addf %82, %85 : vector<288x128xf32>
    %c49 = arith.constant 49 : index
    %c0_70 = arith.constant 0 : index
    %87 = vector.load %arg7[%c49, %c0_70] : memref<352x64xbf16, #tpu.memory_space<vmem>>, vector<288x64xbf16>
    %c384_71 = arith.constant 384 : index
    %c0_72 = arith.constant 0 : index
    %88 = vector.load %arg3[%c384_71, %c0_72] : memref<576x128xbf16, #tpu.memory_space<vmem>>, vector<64x128xbf16>
    %cst_73 = arith.constant dense<0.000000e+00> : vector<288x128xf32>
    %89 = tpu.matmul %87, %88, %cst_73 {dimension_numbers = #tpu.dot_dimension_numbers<[1], [0], [0], [1], [0, 0, 1, 1], [], []>} : vector<288x64xbf16>, vector<64x128xbf16>, vector<288x128xf32> -> vector<288x128xf32>
    %90 = arith.addf %86, %89 : vector<288x128xf32>
    %c50 = arith.constant 50 : index
    %c0_74 = arith.constant 0 : index
    %91 = vector.load %arg7[%c50, %c0_74] : memref<352x64xbf16, #tpu.memory_space<vmem>>, vector<288x64xbf16>
    %c448_75 = arith.constant 448 : index
    %c0_76 = arith.constant 0 : index
    %92 = vector.load %arg3[%c448_75, %c0_76] : memref<576x128xbf16, #tpu.memory_space<vmem>>, vector<64x128xbf16>
    %cst_77 = arith.constant dense<0.000000e+00> : vector<288x128xf32>
    %93 = tpu.matmul %91, %92, %cst_77 {dimension_numbers = #tpu.dot_dimension_numbers<[1], [0], [0], [1], [0, 0, 1, 1], [], []>} : vector<288x64xbf16>, vector<64x128xbf16>, vector<288x128xf32> -> vector<288x128xf32>
    %94 = arith.addf %90, %93 : vector<288x128xf32>
    %c51 = arith.constant 51 : index
    %c0_78 = arith.constant 0 : index
    %95 = vector.load %arg7[%c51, %c0_78] : memref<352x64xbf16, #tpu.memory_space<vmem>>, vector<288x64xbf16>
    %c512_79 = arith.constant 512 : index
    %c0_80 = arith.constant 0 : index
    %96 = vector.load %arg3[%c512_79, %c0_80] : memref<576x128xbf16, #tpu.memory_space<vmem>>, vector<64x128xbf16>
    %cst_81 = arith.constant dense<0.000000e+00> : vector<288x128xf32>
    %97 = tpu.matmul %95, %96, %cst_81 {dimension_numbers = #tpu.dot_dimension_numbers<[1], [0], [0], [1], [0, 0, 1, 1], [], []>} : vector<288x64xbf16>, vector<64x128xbf16>, vector<288x128xf32> -> vector<288x128xf32>
    %98 = arith.addf %94, %97 : vector<288x128xf32>
    %cst_82 = arith.constant 0.000000e+00 : f32
    %99 = vector.broadcast %cst_82 : f32 to vector<288x128xf32>
    %100 = arith.maximumf %98, %99 : vector<288x128xf32>
    %101 = vector.broadcast %14 : vector<1x128xf32> to vector<288x128xf32>
    %102 = arith.mulf %101, %100 : vector<288x128xf32>
    %103 = arith.addf %3, %102 : vector<288x128xf32>
    %104 = vector.shape_cast %9 : vector<1x128xi1> to vector<1x128xi1>
    %105 = vector.broadcast %104 : vector<1x128xi1> to vector<288x128xi1>
    %106 = arith.select %105, %103, %98 : vector<288x128xi1>, vector<288x128xf32>
    %c0_83 = arith.constant 0 : index
    %c0_84 = arith.constant 0 : index
    %c0_85 = arith.constant 0 : index
    %107 = vector.load %arg6[%c0_83, %c0_84, %c0_85] : memref<1x288x128xf32, #tpu.memory_space<vmem>>, vector<1x288x128xf32>
    %108 = vector.shape_cast %107 : vector<1x288x128xf32> to vector<288x128xf32>
    %109 = vector.shape_cast %106 : vector<288x128xf32> to vector<1x288x128xf32>
    tpu.vector_store %arg6[%c0_83, %c0_84, %c0_85], %109 {strides = array<i32>} : memref<1x288x128xf32, #tpu.memory_space<vmem>>, vector<1x288x128xf32>,
    return
  }
  func.func @transform_0(%arg0: i32) -> (i32, i32, i32) {
    %c0_i32 = arith.constant 0 : i32
    %c0_i32_0 = arith.constant 0 : i32
    %c0_i32_1 = arith.constant 0 : i32
    return %arg0, %c0_i32, %c0_i32_0 : i32, i32, i32
  }
  func.func @transform_1(%arg0: i32) -> (i32, i32) {
    %c0_i32 = arith.constant 0 : i32
    %c0_i32_0 = arith.constant 0 : i32
    %c0_i32_1 = arith.constant 0 : i32
    return %c0_i32, %c0_i32_0 : i32, i32
  }
  func.func @transform_2(%arg0: i32) -> (i32, i32) {
    %c0_i32 = arith.constant 0 : i32
    %c0_i32_0 = arith.constant 0 : i32
    %c0_i32_1 = arith.constant 0 : i32
    return %c0_i32, %c0_i32_0 : i32, i32
  }
  func.func @transform_3(%arg0: i32) -> (i32, i32) {
    %c0_i32 = arith.constant 0 : i32
    %c0_i32_0 = arith.constant 0 : i32
    %c0_i32_1 = arith.constant 0 : i32
    return %c0_i32, %c0_i32_0 : i32, i32
  }
  func.func @transform_4(%arg0: i32) -> (i32, i32) {
    %c0_i32 = arith.constant 0 : i32
    %c0_i32_0 = arith.constant 0 : i32
    %c0_i32_1 = arith.constant 0 : i32
    return %c0_i32, %c0_i32_0 : i32, i32
  }
  func.func @transform_5(%arg0: i32) -> (i32, i32, i32) {
    %c0_i32 = arith.constant 0 : i32
    %c0_i32_0 = arith.constant 0 : i32
    %c0_i32_1 = arith.constant 0 : i32
    return %arg0, %c0_i32, %c0_i32_0 : i32, i32, i32
  }
}

</mosaic_0001>

<bundles_post_ra>
// kernel: tpu_custom_call.1
= control target key start
LH: loop header
LB: loop body
LE: loop exit
PB: predicated region body
PF: predicated region fallthrough
CT: control target
= control target key end

     0   :  { %10 = vsyncpa [#allocation4], 0  ;;  %s13193_s0 = inlined_call_operand.vmem [shape: bf16[2,328,64], index: 0, kind: input, shape index: {}]   ;;  %s13194_s1 = inlined_call_operand.vmem [shape: bf16[576,64], index: 1, kind: input, shape index: {}]   ;;  %s13195_s2 = inlined_call_operand.vmem [shape: bf16[576,128], index: 2, kind: input, shape index: {}]   ;;  %s13196_s3 = inlined_call_operand.vmem [shape: f32[288,128], index: 3, kind: input, shape index: {}]   ;;  %s13197_s4 = inlined_call_operand.vmem [shape: f32[288,1], index: 4, kind: input, shape index: {}]   ;;  %s13198_s5 = inlined_call_operand.hbm [shape: f32[2,288,128], index: 5, kind: output, shape index: {}]  }
   0x1   :  { %12 = vsyncpa [#allocation4 + $0x1], 0  ;;  %s10649_s18 = smov 0   ;;  %s10651_s19 = smov 0  }
   0x2   :  { %s10653_s20 = smov 0   ;;  %s10655_s21 = smov 0  }
   0x3 LB: > { %s10670_s22 = sadd.s32 4294967295, %s10612_s21   ;;  %s8138_s23 = sadd.s32 4294967294, %s10612_s21   ;;  %s10612_s21 = sphi %s10655_s21, %s13407_s21   ;;  %s10608_s20 = sphi %s10653_s20, %s13406_s20   ;;  %s10604_s19 = sphi %s10651_s19, %s13405_s19   ;;  %s10600_s18 = sphi %s10649_s18, %s13404_s18  }
   0x4   : > { %s10674_s24 = sadd.s32 1, %s10612_s21   ;;  %s135_s25 = sadd.s32 1, %s10608_s20 }
   0x5   : > { %s132_s26 = ssub.s32 %s10612_s21, %s10674_s24  ;;  %p145_p0 = scmp.ne.s32.totalorder %s10608_s20, %s10604_s19 }
   0x6   : > { %p133_p1 = scmp.eq.s32.totalorder %s132_s26, 0  ;;  %p146_p2 = scmp.eq.s32.totalorder %s10670_s22, 1 }
   0x7   : > { %p151_p3 = scmp.ne.s32.totalorder %s10604_s19, %s10600_s18  ;;  %p152_p4 = scmp.eq.s32.totalorder %s8138_s23, 1 }
   0x8   : > { %s10685_s27 = scalar_select %p133_p1, %s10608_s20, %s135_s25  }
   0x9   : > { %p10687_p5 = por %p146_p2, %p145_p0  ;;  %p10691_p6 = por %p152_p4, %p151_p3 }
   0xa   : > { %p8141_p7 = scmp.ge.s32.totalorder %s10612_s21, 1  ;;  %p190_p8 = scmp.lt.s32.totalorder %s10612_s21, 3 }
   0xc   : > { %p191_p9 = pnand %p8141_p7, %p190_p8 }
   0xe   : > { %194 = sbr.rel (%p191_p9) target bundleno = 1727 (0x6bf), region = 40 }
  0x15   : > { %v10416_v0 = vld [vmem:[%s13194_s1 + $0x20] sm:$0xff]   ;;  %p218_p10 = scmp.lt.s32.totalorder %s10670_s22, 1  ;;  %v10417_v1 = vld [vmem:[%s13194_s1 + $0x28] sm:$0xff]   ;;  %v10418_v2 = vld [vmem:[%s13194_s1 + $0x30] sm:$0xff]   ;;  %vm224_vm0 = vcmask 523264   ;;  %vm1125_vm2 = vcmask 1046528  }
  0x16   : > { %9000 = vmatprep.subr.bf16.mxu0 %v10416_v0  ;;  %v10419_v3 = vld [vmem:[%s13194_s1 + $0x38] sm:$0xff]   ;;  %v10423_v13 = vld [vmem:[%s13194_s1] sm:$0xff]   ;;  %vm472_vm1 = vsmask.f32 7424  ;;  %v10428_v29 = vld [vmem:[%s13194_s1 + $0x8] sm:$0xff]   ;;  %vm2406_vm4 = vcmask 1045504  }
  0x17   : > { %s219_s9 = scalar_select %p218_p10, %s10670_s22, 1  ;;  %9001 = vmatpush3.bf16.msra.mxu0 %v10416_v0  ;;  %v10433_v41 = vld [vmem:[%s13194_s1 + $0x10] sm:$0xff]   ;;  %v10438_v51 = vld [vmem:[%s13194_s1 + $0x18] sm:$0xff]   ;;  %v10802_v63 = vld [vmem:[%s13194_s1 + $0x40] sm:$0xff]   ;;  %vm1932_vm3 = vsmask.f32 6400 }
  0x18   : > { %9002 = vmatprep.subr.bf16.mxu0 %v10417_v1  ;;  %vm3213_vm5 = vsmask.f32 5376  ;;  %vm3687_vm6 = vcmask 1044480   ;;  %vm4359_vm7 = vcmask 1040384   ;;  %vm4652_vm8 = vsmask.f32 1280 }
  0x19   : > { %s10369_s12 = smul.u32 164, %s219_s9  ;;  %vm5087_vm9 = vsmask.f32 256  ;;  %s215_s10 = sand.u32 1, %s10604_s19  }
  0x1a   : > { %s10368_s11 = smul.u32 288, %s215_s10  ;;  %s10616_s30 = smov [#allocation3]  }
  0x1b   : > { %s10714_s17 = scalar_lea.vmem %s13193_s0, %s10369_s12  ;;  %9003 = vmatpush3.bf16.msra.mxu0 %v10417_v1  ;;  %s10370_s12 = smul.u32 4608, %s10670_s22 }
  0x1c   : > { %v326_v4 = vld [vmem:[%s10714_s17] sm:$0xf]  ;;  %v10718_v5 = vld [vmem:[%s10714_s17 + $0x4] sm:$0xf]  ;;  %9004 = vmatprep.subr.bf16.mxu0 %v10418_v2  ;;  %v10724_v7 = vld [vmem:[%s10714_s17 + $0x8] sm:$0xff]   ;;  %s12905_s26 = scalar_lea.vmem [#allocation3], %s10368_s11 }
  0x1d   : > { %v10721_v6 = vcombine.low %v326_v4, %v10718_v5  ;;  %v10727_v8 = vld [vmem:[%s10714_s17 + $0x10] sm:$0xff]   ;;  %v481_v11 = vshll.u32 %v10724_v7, 16  ;;  %v485_v12 = vshrl.u32 %v10724_v7, 16  ;;  %v10738_v15 = vld [vmem:[%s10714_s17 + $0x18] sm:$0xff]   ;;  %v10742_v17 = vld [vmem:[%s10714_s17 + $0x20] sm:$0xff]   ;;  %s8076_s15 = sshll.u32 %s12905_s26, 4  ;;  %s13139_s23 = scalar_lea.hbm %s13198_s5, %s10370_s12  ;;  %s13144_s15 = int_to_ptr.vmem [resolvable:$true] %s8076_s15 }
  0x1e   : > { %v489_v14 = vshll.u32 %v10727_v8, 16  ;;  %v493_v16 = vshrl.u32 %v10727_v8, 16  ;;  %v497_v21 = vshll.u32 %v10738_v15, 16  ;;  %v505_v24 = vshll.u32 %v10742_v17, 16  ;;  %v10747_v25 = vld [vmem:[%s10714_s17 + $0x28] sm:$0xff]   ;;  %v10761_v36 = vld [vmem:[%s10714_s17 + $0x30] sm:$0xff]  }
  0x1f   : > { %v474_v9 = vshrl.u32 %v10721_v6, 16  ;;  %v476_v10 = vshll.u32 %v10721_v6, 16  ;;  %9005 = vmatpush3.bf16.msra.mxu0 %v10418_v2  ;;  %v483_v19 = vrot.slane %v481_v11, 1  ;;  %v501_v28 = vshrl.u32 %v10738_v15, 16  ;;  %v10765_v40 = vld [vmem:[%s10714_s17 + $0x38] sm:$0xff]   ;;  %v10778_v49 = vld [vmem:[%s10714_s17 + $0x40] sm:$0xff]  }
  0x20   : > { %9006 = vmatprep.subr.bf16.mxu0 %v10419_v3  ;;  %v491_v20 = vrot.slane %v489_v14, 1  ;;  %v499_v27 = vrot.slane %v497_v21, 1  ;;  %v509_v32 = vshrl.u32 %v10742_v17, 16  ;;  %v513_v33 = vshll.u32 %v10747_v25, 16  ;;  %v10785_v54 = vld [vmem:[%s10714_s17 + $0x48] sm:$0xff]   ;;  %v10788_v55 = vld [vmem:[%s10714_s17 + $0x50] sm:$0xff]  }
  0x21   : > { %v478_v18 = vrot.slane %v476_v10, 1  ;;  %v487_v23 = vor.u32 %v485_v12, %v483_v19  ;;  %v507_v35 = vrot.slane %v505_v24, 1  ;;  %v521_v42 = vshll.u32 %v10761_v36, 16  ;;  %v10797_v62 = vld [vmem:[%s10714_s17 + $0x58] sm:$0xff]   ;;  %v10806_v1 = vld [vmem:[%s10714_s17 + $0x60] sm:$0xff]   ;;  %s10550_s25 = scalar_lea.vmem %s13144_s15, 4608 }
  0x22   : > { %v495_v26 = vor.u32 %v493_v16, %v491_v20  ;;  %v503_v37 = vor.u32 %v501_v28, %v499_v27  ;;  %v515_v39 = vrot.slane %v513_v33, 1  ;;  %v517_v44 = vshrl.u32 %v10747_v25, 16  ;;  %p10551_p11 = scmp.ne.s32.totalorder %s13144_s15, %s10550_s25  ;;  %s10554_s6 = sshll.u32 %s10616_s30, 4  ;;  %s10555_s6 = int_to_ptr.vmem [resolvable:$false] %s10554_s6 }
  0x23   : > { %v479_v22 = vor.u32 %v478_v18, %v474_v9  ;;  %9007 = vmatpush3.bf16.msra.mxu0 %v10419_v3  ;;  %v492_v31 = vsel %vm472_vm1, %v487_v23, %v491_v20  ;;  %v511_v38 = vor.u32 %v509_v32, %v507_v35  ;;  %v525_v46 = vshrl.u32 %v10761_v36, 16  ;;  %v10810_v3 = vld [vmem:[%s10714_s17 + $0x68] sm:$0xff]   ;;  %v10821_v20 = vld [vmem:[%s10714_s17 + $0x70] sm:$0xff]   ;;  %v10831_v32 = vld [vmem:[%s10714_s17 + $0x78] sm:$0xff]   ;;  %s10556_s7 = scalar_lea.vmem %s10555_s6, 9216  ;;  %p10557_p0 = scmp.lt.s32.totalorder %s13144_s15, %s10555_s6 }
  0x24   : > { %9044 = vmatprep.subr.bf16.mxu0 %v10423_v13  ;;  %v500_v34 = vsel %vm472_vm1, %v495_v26, %v499_v27  ;;  %v508_v43 = vsel %vm472_vm1, %v503_v37, %v507_v35  ;;  %v529_v47 = vshll.u32 %v10765_v40, 16  ;;  %v523_v48 = vrot.slane %v521_v42, 1  ;;  %p10552_p12 = pnand %p10551_p11, %p10687_p5  ;;  %p10558_p1 = scmp.lt.s32.totalorder %s10556_s7, %s10550_s25 }
  0x25   : > { %v484_v30 = vsel %vm472_vm1, %v479_v22, %v483_v19  ;;  %v516_v45 = vsel %vm472_vm1, %v511_v38, %v515_v39  ;;  %v519_v50 = vor.u32 %v517_v44, %v515_v39  ;;  %v537_v56 = vshll.u32 %v10778_v49, 16  ;;  %v10844_v44 = vld [vmem:[%s10714_s17 + $0x88] sm:$0xff]  }
  0x26   : > { %9008 = vmatprep.mubr.msk.bf16.mxu0 %vm224_vm0, %v484_v30  ;;  %v527_v52 = vor.u32 %v525_v46, %v523_v48  ;;  %v531_v53 = vrot.slane %v529_v47, 1  ;;  %v533_v58 = vshrl.u32 %v10765_v40, 16  ;;  %v541_v60 = vshrl.u32 %v10778_v49, 16  ;;  %p10553_p13 = pneg %p10552_p12  ;;  %p10559_p2 = por %p10558_p1, %p10557_p0 }
  0x27   : > { %9009 = vmatmul.mubr.msk.bf16.vlgmr.msra.gmra.mrb[0].mxu0 %vm224_vm0, %v492_v31  ;;  %v524_v57 = vsel %vm472_vm1, %v519_v50, %v523_v48  ;;  %v545_v61 = vshll.u32 %v10785_v54, 16  ;;  %v553_v0 = vshll.u32 %v10788_v55, 16  ;;  %v539_v2 = vrot.slane %v537_v56, 1  ;;  %v10854_v56 = vld [vmem:[%s10714_s17 + $0x90] ss:$0 sps:$4 sm:$0x11]  }
  0x28   : > { %9045 = vmatpush3.bf16.msra.mxu0 %v10423_v13  ;;  %9012 = vmatprep.mubr.msk.bf16.mxu0 %vm224_vm0, %v500_v34  ;;  %v532_v59 = vsel %vm472_vm1, %v527_v52, %v531_v53  ;;  %v535_v4 = vor.u32 %v533_v58, %v531_v53  ;;  %v561_v11 = vshll.u32 %v10797_v62, 16  ;;  %v549_v12 = vshrl.u32 %v10785_v54, 16  ;;  %p10560_p3 = pnand %p10559_p2, %p10553_p13 }
  0x29   : > { %9046 = vmatprep.subr.bf16.mxu0 %v10428_v29  ;;  %v543_v9 = vor.u32 %v541_v60, %v539_v2  ;;  %v547_v10 = vrot.slane %v545_v61, 1  ;;  %v555_v13 = vrot.slane %v553_v0, 1  ;;  %v557_v14 = vshrl.u32 %v10788_v55, 16 }
  0x2a   : > { %v565_v16 = vshrl.u32 %v10797_v62, 16  ;;  %v569_v18 = vshll.u32 %v10806_v1, 16  ;;  %v577_v19 = vshll.u32 %v10810_v3, 16  ;;  %v540_v21 = vsel %vm472_vm1, %v535_v4, %v539_v2 }
  0x2b   : > { %v548_v22 = vsel %vm472_vm1, %v543_v9, %v547_v10  ;;  %v563_v23 = vrot.slane %v561_v11, 1  ;;  %v573_v24 = vshrl.u32 %v10806_v1, 16  ;;  %v581_v27 = vshrl.u32 %v10810_v3, 16 }
  0x2c   : > { %9047 = vmatpush3.bf16.msra.mxu0 %v10428_v29  ;;  %v571_v26 = vrot.slane %v569_v18, 1  ;;  %v551_v28 = vor.u32 %v549_v12, %v547_v10  ;;  %v579_v29 = vrot.slane %v577_v19, 1  ;;  %v585_v30 = vshll.u32 %v10821_v20, 16  ;;  %v1113_v18 = vld [vmem:[%s10714_s17] sm:$0xe] }
  0x2d   : > { %9048 = vmatprep.subr.bf16.mxu0 %v10433_v41  ;;  %v559_v31 = vor.u32 %v557_v14, %v555_v13  ;;  %v589_v37 = vshrl.u32 %v10821_v20, 16  ;;  %v567_v38 = vor.u32 %v565_v16, %v563_v23  ;;  %v593_v39 = vshll.u32 %v10831_v32, 16  ;;  %v10444_v14 = vld [vmem:[%s13194_s1 + $0x48] sm:$0xff]   ;;  %v10445_v16 = vld [vmem:[%s13194_s1 + $0x50] sm:$0xff]  }
  0x2e   : > { %v556_v33 = vsel %vm472_vm1, %v551_v28, %v555_v13  ;;  %v587_v35 = vrot.slane %v585_v30, 1  ;;  %v575_v42 = vor.u32 %v573_v24, %v571_v26  ;;  %v583_v50 = vor.u32 %v581_v27, %v579_v29 }
  0x2f   : > { %9013 = vmatmul.mubr.msk.bf16.gmra.mrb[4].mxu0 %vm224_vm0, %v508_v43  ;;  %v564_v34 = vsel %vm472_vm1, %v559_v31, %v563_v23  ;;  %v10841_v43 = vld [vmem:[%s10714_s17 + $0x80] sm:$0xff]   ;;  %v609_v52 = vshll.u32 %v10844_v44, 16  ;;  %v613_v60 = vshrl.u32 %v10844_v44, 16  ;;  %v617_v2 = vshll.u32 %v10854_v56, 16  ;;  %v10451_v31 = vld [vmem:[%s13194_s1 + $0x78] sm:$0xff]  }
  0x30   : > { %9016 = vmatprep.mubr.msk.bf16.mxu0 %vm224_vm0, %v516_v45  ;;  %9049 = vmatpush3.bf16.msra.mxu0 %v10433_v41  ;;  %v597_v41 = vshrl.u32 %v10831_v32, 16  ;;  %v572_v45 = vsel %vm472_vm1, %v567_v38, %v571_v26  ;;  %v580_v46 = vsel %vm472_vm1, %v575_v42, %v579_v29  ;;  %v601_v47 = vshll.u32 %v10841_v43, 16 }
  0x31   : > { %9050 = vmatprep.subr.bf16.mxu0 %v10438_v51  ;;  %v605_v48 = vshrl.u32 %v10841_v43, 16  ;;  %v591_v53 = vor.u32 %v589_v37, %v587_v35  ;;  %v611_v0 = vrot.slane %v609_v52, 1  ;;  %v619_v12 = vrot.slane %v617_v2, 1  ;;  %v10980_v52 = vld [vmem:[%s10714_s17 + $0xc] sm:$0xf] }
  0x32   : > { %v8206_v19 = vcombine.low %v1113_v18, %v10718_v5  ;;  %v1129_v24 = vrot.slane %v10727_v8, 1  ;;  %v1131_v5 = vrot.slane %v10738_v15, 1  ;;  %v1133_v28 = vrot.slane %v10742_v17, 1 }
  0x33   : > { %v615_v11 = vor.u32 %v613_v60, %v611_v0  ;;  %v1135_v29 = vrot.slane %v10747_v25, 1  ;;  %v1143_v37 = vrot.slane %v10785_v54, 1  ;;  %v10997_v60 = vld [vmem:[%s10714_s17 + $0x18] sm:$0xff]  }
  0x34   : > { %9051 = vmatpush3.bf16.msra.mxu0 %v10438_v51  ;;  %v595_v51 = vrot.slane %v593_v39, 1  ;;  %v1132_v27 = vsel %vm1125_vm2, %v1129_v24, %v1131_v5  ;;  %v1145_v39 = vrot.slane %v10788_v55, 1  ;;  %v1595_v2 = vrot.slane %v10997_v60, 1 }
  0x35   : > { %9088 = vmatprep.subr.bf16.mxu0 %v10802_v63  ;;  %v620_v13 = vsel %vm472_vm1, %v615_v11, %v619_v12  ;;  %v1136_v30 = vsel %vm1125_vm2, %v1133_v28, %v1135_v29  ;;  %v11013_v11 = vld [vmem:[%s10714_s17 + $0x30] sm:$0xff]   ;;  %v10460_v12 = vld [vmem:[%s13194_s1 + $0x88] sm:$0xff]  }
  0x36   : > { %v596_v58 = vsel %vm472_vm1, %v591_v53, %v595_v51  ;;  %v599_v61 = vor.u32 %v597_v41, %v595_v51  ;;  %v1147_v41 = vrot.slane %v10797_v62, 1  ;;  %v1146_v42 = vsel %vm1125_vm2, %v1143_v37, %v1145_v39  ;;  %v1454_v51 = vld [vmem:[%s10714_s17 + $0x8] sm:$0xe] }
  0x37   : > { %9017 = vmatmul.mubr.msk.bf16.gmra.mrb[8].mxu0 %vm224_vm0, %v524_v57  ;;  %v588_v57 = vsel %vm472_vm1, %v583_v50, %v587_v35  ;;  %v10985_v53 = vcombine.low %v1454_v51, %v10980_v52 }
  0x38   : > { %9020 = vmatprep.mubr.msk.bf16.mxu0 %vm224_vm0, %v532_v59  ;;  %v603_v59 = vrot.slane %v601_v47, 1  ;;  %v1155_v47 = vrot.slane %v10831_v32, 1 }
  0x3a   : > { %v607_v4 = vor.u32 %v605_v48, %v603_v59  ;;  %v604_v9 = vsel %vm472_vm1, %v599_v61, %v603_v59 }
  0x3c   : > { %v612_v10 = vsel %vm472_vm1, %v607_v4, %v611_v0  ;;  %v11001_v0 = vld [vmem:[%s10714_s17 + $0x20] sm:$0xff]  }
  0x3f   : > { %9021 = vmatmul.mubr.msk.bf16.gmra.mrb[12].mxu0 %vm224_vm0, %v540_v21  ;;  %v1126_v21 = vrot.slane %v8206_v19, 1  ;;  %v11031_v19 = vld [vmem:[%s10714_s17 + $0x40] sm:$0xff]  }
  0x40   : > { %9024 = vmatprep.mubr.msk.bf16.mxu0 %vm224_vm0, %v548_v22  ;;  %v1127_v22 = vrot.slane %v10724_v7, 1 }
  0x42   : > { %v1128_v23 = vsel %vm1125_vm2, %v1126_v21, %v1127_v22  ;;  %v1130_v26 = vsel %vm1125_vm2, %v1127_v22, %v1129_v24  ;;  %v10470_v21 = vld [vmem:[%s13194_s1 + $0x98] sm:$0xff]   ;;  %v11043_v24 = vld [vmem:[%s13194_s1 + $0xa0] sm:$0xff]  }
  0x47   : > { %9025 = vmatmul.mubr.msk.bf16.gmra.mrb[16].mxu0 %vm224_vm0, %v556_v33  ;;  %v10455_v33 = vld [vmem:[%s13194_s1 + $0x80] sm:$0xff]  }
  0x48   : > { %9028 = vmatprep.mubr.msk.bf16.mxu0 %vm224_vm0, %v564_v34 }
  0x4f   : > { %9029 = vmatmul.mubr.msk.bf16.gmra.mrb[20].mxu0 %vm224_vm0, %v572_v45  ;;  %v1148_v45 = vsel %vm1125_vm2, %v1145_v39, %v1147_v41  ;;  %v11084_v39 = vld [vmem:[%s10714_s17 + $0x78] sm:$0xff]  }
  0x50   : > { %9032 = vmatprep.mubr.msk.bf16.mxu0 %vm224_vm0, %v580_v46 }
  0x57   : > { %9033 = vmatmul.mubr.msk.bf16.gmra.mrb[24].mxu0 %vm224_vm0, %v588_v57  ;;  %v10988_v57 = vld [vmem:[%s10714_s17 + $0x10] sm:$0xff]  }
  0x58   : > { %9036 = vmatprep.mubr.msk.bf16.mxu0 %vm224_vm0, %v596_v58  ;;  %v1593_v58 = vrot.slane %v10988_v57, 1  ;;  %v1945_v51 = vshll.u32 %v10988_v57, 16 }
  0x5a   : > { %v1596_v4 = vsel %vm1125_vm2, %v1593_v58, %v1595_v2 }
  0x5f   : > { %9037 = vmatmul.mubr.msk.bf16.gmra.mrb[28].mxu0 %vm224_vm0, %v604_v9  ;;  %v11009_v9 = vld [vmem:[%s10714_s17 + $0x28] sm:$0xff]  }
  0x60   : > { %9040 = vmatprep.mubr.msk.bf16.mxu0 %vm224_vm0, %v612_v10 }
  0x67   : > { %9041 = vmatmul.mubr.msk.bf16.gmra.mrb[32].mxu0 %vm224_vm0, %v620_v13  ;;  %v1599_v13 = vrot.slane %v11009_v9, 1 }
  0x68   : > { %9052 = vmatprep.mubr.msk.bf16.mxu0 %vm224_vm0, %v10721_v6  ;;  %v10446_v6 = vld [vmem:[%s13194_s1 + $0x58] sm:$0xff]  }
  0x6f   : > { %9053 = vmatmul.mubr.msk.bf16.vlgmr.msra.gmra.mrb[0].mxu0 %vm224_vm0, %v10724_v7  ;;  %v10449_v7 = vld [vmem:[%s13194_s1 + $0x68] sm:$0xff]  }
  0x70   : > { %9089 = vmatpush3.bf16.msra.mxu0 %v10802_v63  ;;  %9056 = vmatprep.mubr.msk.bf16.mxu0 %vm224_vm0, %v10727_v8  ;;  %v10448_v63 = vld [vmem:[%s13194_s1 + $0x60] sm:$0xff]   ;;  %v10450_v8 = vld [vmem:[%s13194_s1 + $0x70] sm:$0xff]  }
  0x71   : > { %9090 = vmatprep.subr.bf16.mxu0 %v10444_v14 }
  0x74   : > { %9091 = vmatpush3.bf16.msra.mxu0 %v10444_v14  ;;  %v1601_v14 = vrot.slane %v11013_v11, 1 }
  0x75   : > { %9092 = vmatprep.subr.bf16.mxu0 %v10445_v16 }
  0x76   : > { %v1602_v18 = vsel %vm1125_vm2, %v1599_v13, %v1601_v14 }
  0x77   : > { %9057 = vmatmul.mubr.msk.bf16.gmra.mrb[4].mxu0 %vm224_vm0, %v10738_v15  ;;  %v1134_v15 = vsel %vm1125_vm2, %v1131_v5, %v1133_v28 }
  0x78   : > { %9060 = vmatprep.mubr.msk.bf16.mxu0 %vm224_vm0, %v10742_v17  ;;  %9093 = vmatpush3.bf16.msra.mxu0 %v10445_v16  ;;  %v1137_v17 = vrot.slane %v10761_v36, 1  ;;  %v10465_v16 = vld [vmem:[%s13194_s1 + $0x90] sm:$0xff]  }
  0x79   : > { %9094 = vmatprep.subr.bf16.mxu0 %v10446_v6 }
  0x7a   : > { %v1138_v34 = vsel %vm1125_vm2, %v1135_v29, %v1137_v17 }
  0x7c   : > { %9095 = vmatpush3.bf16.msra.mxu0 %v10446_v6 }
  0x7d   : > { %9132 = vmatprep.subr.bf16.mxu0 %v10448_v63 }
  0x7f   : > { %9061 = vmatmul.mubr.msk.bf16.gmra.mrb[8].mxu0 %vm224_vm0, %v10747_v25  ;;  %v1139_v25 = vrot.slane %v10765_v40, 1 }
  0x80   : > { %9064 = vmatprep.mubr.msk.bf16.mxu0 %vm224_vm0, %v10761_v36  ;;  %v1141_v36 = vrot.slane %v10778_v49, 1 }
  0x81   : > { %v1140_v35 = vsel %vm1125_vm2, %v1137_v17, %v1139_v25 }
  0x82   : > { %v1144_v38 = vsel %vm1125_vm2, %v1141_v36, %v1143_v37 }
  0x87   : > { %9065 = vmatmul.mubr.msk.bf16.gmra.mrb[12].mxu0 %vm224_vm0, %v10765_v40  ;;  %v1142_v40 = vsel %vm1125_vm2, %v1139_v25, %v1141_v36  ;;  %v11076_v36 = vld [vmem:[%s10714_s17 + $0x70] sm:$0xff]  }
  0x88   : > { %9068 = vmatprep.mubr.msk.bf16.mxu0 %vm224_vm0, %v10778_v49  ;;  %v1149_v49 = vrot.slane %v10806_v1, 1 }
  0x8a   : > { %v1150_v46 = vsel %vm1125_vm2, %v1147_v41, %v1149_v49 }
  0x8f   : > { %9069 = vmatmul.mubr.msk.bf16.gmra.mrb[16].mxu0 %vm224_vm0, %v10785_v54  ;;  %v1151_v54 = vrot.slane %v10810_v3, 1 }
  0x90   : > { %9072 = vmatprep.mubr.msk.bf16.mxu0 %vm224_vm0, %v10788_v55 }
  0x91   : > { %v1152_v55 = vsel %vm1125_vm2, %v1149_v49, %v1151_v54 }
  0x97   : > { %9073 = vmatmul.mubr.msk.bf16.gmra.mrb[20].mxu0 %vm224_vm0, %v10797_v62  ;;  %v1153_v62 = vrot.slane %v10821_v20, 1 }
  0x98   : > { %9076 = vmatprep.mubr.msk.bf16.mxu0 %vm224_vm0, %v10806_v1  ;;  %v1157_v1 = vrot.slane %v10841_v43, 1 }
  0x99   : > { %v1154_v48 = vsel %vm1125_vm2, %v1151_v54, %v1153_v62  ;;  %v1156_v50 = vsel %vm1125_vm2, %v1153_v62, %v1155_v47 }
  0x9f   : > { %9077 = vmatmul.mubr.msk.bf16.gmra.mrb[24].mxu0 %vm224_vm0, %v10810_v3  ;;  %v1159_v3 = vrot.slane %v10844_v44, 1 }
  0xa0   : > { %9080 = vmatprep.mubr.msk.bf16.mxu0 %vm224_vm0, %v10821_v20  ;;  %v1158_v20 = vsel %vm1125_vm2, %v1155_v47, %v1157_v1 }
  0xa7   : > { %9081 = vmatmul.mubr.msk.bf16.gmra.mrb[28].mxu0 %vm224_vm0, %v10831_v32  ;;  %v1160_v32 = vsel %vm1125_vm2, %v1157_v1, %v1159_v3  ;;  %v1937_v1 = vshll.u32 %v10985_v53, 16 }
  0xa8   : > { %9084 = vmatprep.mubr.msk.bf16.mxu0 %vm224_vm0, %v10841_v43  ;;  %v1161_v43 = vrot.slane %v10854_v56, 1  ;;  %v1597_v56 = vrot.slane %v11001_v0, 1 }
  0xaa   : > { %v1162_v59 = vsel %vm1125_vm2, %v1159_v3, %v1161_v43  ;;  %v1598_v10 = vsel %vm1125_vm2, %v1595_v2, %v1597_v56  ;;  %v1600_v6 = vsel %vm1125_vm2, %v1597_v56, %v1599_v13  ;;  %v1942_v3 = vshrl.u32 %v10988_v57, 16  ;;  %v10474_v43 = vld [vmem:[%s10714_s17 + $0x98] ss:$0 sps:$4 sm:$0x11]  }
  0xab   : > { %v1627_v2 = vrot.slane %v10474_v43, 1  ;;  %v1954_v56 = vshll.u32 %v10997_v60, 16  ;;  %v1963_v13 = vshll.u32 %v11001_v0, 16 }
  0xaf   : > { %9085 = vmatmul.mubr.msk.bf16.gmra.mrb[32].mxu0 %vm224_vm0, %v10844_v44  ;;  %v1592_v44 = vrot.slane %v10985_v53, 1 }
  0xb0   : > { %9096 = vmatprep.mubr.msk.bf16.mxu0 %vm224_vm0, %v1128_v23  ;;  %v1605_v23 = vrot.slane %v11031_v19, 1 }
  0xb1   : > { %v1594_v61 = vsel %vm1125_vm2, %v1592_v44, %v1593_v58  ;;  %v1939_v58 = vrot.slane %v1937_v1, 2 }
  0xb7   : > { %9097 = vmatmul.mubr.msk.bf16.vlgmr.msra.gmra.mrb[0].mxu0 %vm224_vm0, %v1130_v26  ;;  %v11047_v26 = vld [vmem:[%s10714_s17 + $0x48] sm:$0xff]  }
  0xb8   : > { %9133 = vmatpush3.bf16.msra.mxu0 %v10448_v63  ;;  %9100 = vmatprep.mubr.msk.bf16.mxu0 %vm224_vm0, %v1132_v27  ;;  %v11027_v63 = vld [vmem:[%s10714_s17 + $0x38] sm:$0xff]   ;;  %v1607_v28 = vrot.slane %v11047_v26, 1  ;;  %v2005_v43 = vshrl.u32 %v11047_v26, 16 }
  0xb9   : > { %9134 = vmatprep.subr.bf16.mxu0 %v10449_v7  ;;  %v1603_v22 = vrot.slane %v11027_v63, 1 }
  0xbb   : > { %v1604_v5 = vsel %vm1125_vm2, %v1601_v14, %v1603_v22  ;;  %v1606_v27 = vsel %vm1125_vm2, %v1603_v22, %v1605_v23  ;;  %v1965_v22 = vrot.slane %v1963_v13, 2 }
  0xbc   : > { %9135 = vmatpush3.bf16.msra.mxu0 %v10449_v7  ;;  %v11051_v7 = vld [vmem:[%s10714_s17 + $0x50] sm:$0xff]  }
  0xbd   : > { %9136 = vmatprep.subr.bf16.mxu0 %v10450_v8  ;;  %v1609_v29 = vrot.slane %v11051_v7, 1 }
  0xbf   : > { %9101 = vmatmul.mubr.msk.bf16.gmra.mrb[4].mxu0 %vm224_vm0, %v1134_v15  ;;  %v11060_v15 = vld [vmem:[%s10714_s17 + $0x58] sm:$0xff]  }
  0xc0   : > { %9104 = vmatprep.mubr.msk.bf16.mxu0 %vm224_vm0, %v1136_v30  ;;  %9137 = vmatpush3.bf16.msra.mxu0 %v10450_v8  ;;  %v1608_v8 = vsel %vm1125_vm2, %v1605_v23, %v1607_v28  ;;  %v1610_v30 = vsel %vm1125_vm2, %v1607_v28, %v1609_v29  ;;  %v1611_v17 = vrot.slane %v11060_v15, 1 }
  0xc1   : > { %9138 = vmatprep.subr.bf16.mxu0 %v10451_v31 }
  0xc4   : > { %9139 = vmatpush3.bf16.msra.mxu0 %v10451_v31  ;;  %v11064_v31 = vld [vmem:[%s10714_s17 + $0x60] sm:$0xff]  }
  0xc5   : > { %9176 = vmatprep.subr.bf16.mxu0 %v10455_v33  ;;  %v1613_v25 = vrot.slane %v11064_v31, 1 }
  0xc7   : > { %9105 = vmatmul.mubr.msk.bf16.gmra.mrb[8].mxu0 %vm224_vm0, %v1138_v34  ;;  %v11072_v34 = vld [vmem:[%s10714_s17 + $0x68] sm:$0xff]  }
  0xc8   : > { %9108 = vmatprep.mubr.msk.bf16.mxu0 %vm224_vm0, %v1140_v35  ;;  %v1614_v35 = vsel %vm1125_vm2, %v1611_v17, %v1613_v25  ;;  %v1615_v37 = vrot.slane %v11072_v34, 1 }
  0xcf   : > { %9109 = vmatmul.mubr.msk.bf16.gmra.mrb[12].mxu0 %vm224_vm0, %v1142_v40  ;;  %v1617_v40 = vrot.slane %v11076_v36, 1 }
  0xd0   : > { %9112 = vmatprep.mubr.msk.bf16.mxu0 %vm224_vm0, %v1144_v38  ;;  %v1616_v38 = vsel %vm1125_vm2, %v1613_v25, %v1615_v37 }
  0xd1   : > { %v1618_v41 = vsel %vm1125_vm2, %v1615_v37, %v1617_v40 }
  0xd7   : > { %9113 = vmatmul.mubr.msk.bf16.gmra.mrb[16].mxu0 %vm224_vm0, %v1146_v42  ;;  %v11088_v42 = vld [vmem:[%s10714_s17 + $0x80] sm:$0xff]  }
  0xd8   : > { %9116 = vmatprep.mubr.msk.bf16.mxu0 %vm224_vm0, %v1148_v45  ;;  %v1619_v45 = vrot.slane %v11084_v39, 1  ;;  %v1621_v49 = vrot.slane %v11088_v42, 1 }
  0xda   : > { %v1620_v54 = vsel %vm1125_vm2, %v1617_v40, %v1619_v45  ;;  %v1622_v62 = vsel %vm1125_vm2, %v1619_v45, %v1621_v49  ;;  %v10476_v40 = vld [vmem:[%s13194_s1 + $0xa8] sm:$0xff]   ;;  %v1990_v45 = vshll.u32 %v11027_v63, 16 }
  0xdf   : > { %9117 = vmatmul.mubr.msk.bf16.gmra.mrb[20].mxu0 %vm224_vm0, %v1150_v46  ;;  %v11096_v46 = vld [vmem:[%s10714_s17 + $0x88] sm:$0xff]  }
  0xe0   : > { %9120 = vmatprep.mubr.msk.bf16.mxu0 %vm224_vm0, %v1152_v55  ;;  %v11099_v55 = vld [vmem:[%s10714_s17 + $0x90] sm:$0xff]   ;;  %v1623_v47 = vrot.slane %v11096_v46, 1 }
  0xe7   : > { %9121 = vmatmul.mubr.msk.bf16.gmra.mrb[24].mxu0 %vm224_vm0, %v1154_v48  ;;  %v1625_v48 = vrot.slane %v11099_v55, 1 }
  0xe8   : > { %9124 = vmatprep.mubr.msk.bf16.mxu0 %vm224_vm0, %v1156_v50  ;;  %v1934_v50 = vshrl.u32 %v10985_v53, 16  ;;  %v1951_v53 = vshrl.u32 %v10997_v60, 16 }
  0xe9   : > { %v1628_v14 = vsel %vm1125_vm2, %v1625_v48, %v1627_v2  ;;  %v11156_v2 = vld [vmem:[%s13194_s1 + $0xc0] sm:$0xff]  }
  0xea   : > { %v1936_v44 = vrot.slane %v1934_v50, 1  ;;  %v1992_v50 = vrot.slane %v1990_v45, 2 }
  0xef   : > { %9125 = vmatmul.mubr.msk.bf16.gmra.mrb[28].mxu0 %vm224_vm0, %v1158_v20  ;;  %v1624_v20 = vsel %vm1125_vm2, %v1621_v49, %v1623_v47 }
  0xf0   : > { %9128 = vmatprep.mubr.msk.bf16.mxu0 %vm224_vm0, %v1160_v32  ;;  %v1626_v32 = vsel %vm1125_vm2, %v1623_v47, %v1625_v48  ;;  %v10477_v47 = vld [vmem:[%s13194_s1 + $0xb0] sm:$0xff]  }
  0xf7   : > { %9129 = vmatmul.mubr.msk.bf16.gmra.mrb[32].mxu0 %vm224_vm0, %v1162_v59  ;;  %v1944_v59 = vrot.slane %v1942_v3, 1 }
  0xf8   : > { %9140 = vmatprep.mubr.msk.bf16.mxu0 %vm224_vm0, %v1594_v61  ;;  %v1947_v61 = vrot.slane %v1945_v51, 2 }
  0xff   : > { %9141 = vmatmul.mubr.msk.bf16.vlgmr.msra.gmra.mrb[0].mxu0 %vm224_vm0, %v1596_v4  ;;  %v1940_v4 = vor.u32 %v1939_v58, %v1936_v44  ;;  %v2008_v44 = vshll.u32 %v11047_v26, 16 }
 0x100   : > { %9177 = vmatpush3.bf16.msra.mxu0 %v10455_v33  ;;  %9144 = vmatprep.mubr.msk.bf16.mxu0 %vm224_vm0, %v1598_v10  ;;  %v1612_v33 = vsel %vm1125_vm2, %v1609_v29, %v1611_v17  ;;  %v1948_v10 = vor.u32 %v1947_v61, %v1944_v59  ;;  %v1978_v29 = vshrl.u32 %v11013_v11, 16  ;;  %v2014_v59 = vshrl.u32 %v11051_v7, 16 }
 0x101   : > { %9178 = vmatprep.subr.bf16.mxu0 %v10460_v12  ;;  %v2017_v61 = vshll.u32 %v11051_v7, 16 }
 0x103   : > { %v2019_v13 = vrot.slane %v2017_v61, 2  ;;  %v2080_v61 = vshll.u32 %v11096_v46, 16 }
 0x104   : > { %9179 = vmatpush3.bf16.msra.mxu0 %v10460_v12  ;;  %v1960_v12 = vshrl.u32 %v11001_v0, 16 }
 0x105   : > { %9180 = vmatprep.subr.bf16.mxu0 %v10465_v16 }
 0x107   : > { %9145 = vmatmul.mubr.msk.bf16.gmra.mrb[4].mxu0 %vm224_vm0, %v1600_v6  ;;  %v1956_v6 = vrot.slane %v1954_v56, 2  ;;  %v2007_v56 = vrot.slane %v2005_v43, 1 }
 0x108   : > { %9148 = vmatprep.mubr.msk.bf16.mxu0 %vm224_vm0, %v1602_v18  ;;  %9181 = vmatpush3.bf16.msra.mxu0 %v10465_v16  ;;  %v1953_v16 = vrot.slane %v1951_v53, 1  ;;  %v1949_v18 = vsel %vm1932_vm3, %v1940_v4, %v1948_v10  ;;  %v2010_v4 = vrot.slane %v2008_v44, 2 }
 0x109   : > { %9182 = vmatprep.subr.bf16.mxu0 %v10470_v21 }
 0x10a   : > { %v1957_v23 = vor.u32 %v1956_v6, %v1953_v16  ;;  %v2023_v16 = vshrl.u32 %v11060_v15, 16  ;;  %v2026_v6 = vshll.u32 %v11060_v15, 16 }
 0x10c   : > { %9183 = vmatpush3.bf16.msra.mxu0 %v10470_v21  ;;  %v1962_v21 = vrot.slane %v1960_v12, 1  ;;  %v2016_v12 = vrot.slane %v2014_v59, 1  ;;  %v2077_v59 = vshrl.u32 %v11096_v46, 16 }
 0x10d   : > { %9220 = vmatprep.subr.bf16.mxu0 %v11043_v24 }
 0x10e   : > { %v1966_v28 = vor.u32 %v1965_v22, %v1962_v21  ;;  %v2032_v21 = vshrl.u32 %v11064_v31, 16  ;;  %v2035_v22 = vshll.u32 %v11064_v31, 16 }
 0x10f   : > { %9149 = vmatmul.mubr.msk.bf16.gmra.mrb[8].mxu0 %vm224_vm0, %v1604_v5  ;;  %v1969_v5 = vshrl.u32 %v11009_v9, 16 }
 0x110   : > { %9152 = vmatprep.mubr.msk.bf16.mxu0 %vm224_vm0, %v1606_v27  ;;  %v1972_v27 = vshll.u32 %v11009_v9, 16 }
 0x111   : > { %v1971_v17 = vrot.slane %v1969_v5, 1  ;;  %v2025_v5 = vrot.slane %v2023_v16, 1 }
 0x112   : > { %v1974_v25 = vrot.slane %v1972_v27, 2  ;;  %v2028_v27 = vrot.slane %v2026_v6, 2 }
 0x117   : > { %9153 = vmatmul.mubr.msk.bf16.gmra.mrb[12].mxu0 %vm224_vm0, %v1608_v8  ;;  %v1981_v8 = vshll.u32 %v11013_v11, 16 }
 0x118   : > { %9156 = vmatprep.mubr.msk.bf16.mxu0 %vm224_vm0, %v1610_v30  ;;  %v1958_v30 = vsel %vm1932_vm3, %v1948_v10, %v1957_v23 }
 0x119   : > { %v1983_v37 = vrot.slane %v1981_v8, 2  ;;  %v2037_v8 = vrot.slane %v2035_v22, 2 }
 0x11f   : > { %9157 = vmatmul.mubr.msk.bf16.gmra.mrb[16].mxu0 %vm224_vm0, %v1612_v33  ;;  %v1967_v33 = vsel %vm1932_vm3, %v1957_v23, %v1966_v28 }
 0x120   : > { %9160 = vmatprep.mubr.msk.bf16.mxu0 %vm224_vm0, %v1614_v35  ;;  %v1980_v35 = vrot.slane %v1978_v29, 1  ;;  %v2034_v29 = vrot.slane %v2032_v21, 1 }
 0x122   : > { %v1984_v49 = vor.u32 %v1983_v37, %v1980_v35  ;;  %v2050_v35 = vshrl.u32 %v11076_v36, 16  ;;  %v2053_v37 = vshll.u32 %v11076_v36, 16 }
 0x127   : > { %9161 = vmatmul.mubr.msk.bf16.gmra.mrb[20].mxu0 %vm224_vm0, %v1616_v38  ;;  %v1975_v38 = vor.u32 %v1974_v25, %v1971_v17  ;;  %v2041_v17 = vshrl.u32 %v11072_v34, 16  ;;  %v2044_v25 = vshll.u32 %v11072_v34, 16 }
 0x128   : > { %9164 = vmatprep.mubr.msk.bf16.mxu0 %vm224_vm0, %v1618_v41  ;;  %v1987_v41 = vshrl.u32 %v11027_v63, 16 }
 0x129   : > { %v1976_v48 = vsel %vm1932_vm3, %v1966_v28, %v1975_v38  ;;  %v1985_v1 = vsel %vm1932_vm3, %v1975_v38, %v1984_v49  ;;  %v2043_v38 = vrot.slane %v2041_v17, 1 }
 0x12f   : > { %9165 = vmatmul.mubr.msk.bf16.gmra.mrb[24].mxu0 %vm224_vm0, %v1620_v54  ;;  %v1996_v54 = vshrl.u32 %v11031_v19, 16 }
 0x130   : > { %9168 = vmatprep.mubr.msk.bf16.mxu0 %vm224_vm0, %v1622_v62  ;;  %v1999_v62 = vshll.u32 %v11031_v19, 16 }
 0x131   : > { %v1998_v3 = vrot.slane %v1996_v54, 1  ;;  %v2055_v54 = vrot.slane %v2053_v37, 2 }
 0x132   : > { %v2001_v51 = vrot.slane %v1999_v62, 2 }
 0x134   : > { %v2002_v58 = vor.u32 %v2001_v51, %v1998_v3 }
 0x137   : > { %9169 = vmatmul.mubr.msk.bf16.gmra.mrb[28].mxu0 %vm224_vm0, %v1624_v20  ;;  %v10478_v20 = vld [vmem:[%s13194_s1 + $0xb8] sm:$0xff]  }
 0x138   : > { %9172 = vmatprep.mubr.msk.bf16.mxu0 %vm224_vm0, %v1626_v32 }
 0x13f   : > { %9173 = vmatmul.mubr.msk.bf16.gmra.mrb[32].mxu0 %vm224_vm0, %v1628_v14  ;;  %v2011_v14 = vor.u32 %v2010_v4, %v2007_v56  ;;  %v2086_v56 = vshrl.u32 %v11099_v55, 16  ;;  %v2089_v4 = vshll.u32 %v11099_v55, 16 }
 0x140   : > { %9184 = vmatprep.mubr.msk.bf16.mxu0 %vm224_vm0, %v1949_v18  ;;  %v2020_v18 = vor.u32 %v2019_v13, %v2016_v12  ;;  %v2079_v12 = vrot.slane %v2077_v59, 1  ;;  %v2082_v13 = vrot.slane %v2080_v61, 2  ;;  %v2735_v61 = vld [vmem:[%s10714_s17 + $0x10] sm:$0xc] }
 0x141   : > { %v2012_v23 = vsel %vm1932_vm3, %v2002_v58, %v2011_v14  ;;  %v2088_v6 = vrot.slane %v2086_v56, 1 }
 0x142   : > { %v2021_v28 = vsel %vm1932_vm3, %v2011_v14, %v2020_v18  ;;  %v11193_v14 = vld [vmem:[%s10714_s17 + $0x98] ss:$0 sps:$4 sm:$0x33]   ;;  %v2083_v21 = vor.u32 %v2082_v13, %v2079_v12  ;;  %v11287_v13 = vld [vmem:[%s10714_s17 + $0x20] sm:$0xff]  }
 0x143   : > { %v2095_v22 = vshrl.u32 %v11193_v14, 16 }
 0x147   : > { %9185 = vmatmul.mubr.msk.bf16.vlgmr.msra.gmra.mrb[0].mxu0 %vm224_vm0, %v1958_v30  ;;  %v2029_v30 = vor.u32 %v2028_v27, %v2025_v5  ;;  %v2394_v27 = vld [vmem:[%s10714_s17 + $0x8] sm:$0xc] }
 0x148   : > { %9221 = vmatpush3.bf16.msra.mxu0 %v11043_v24  ;;  %9188 = vmatprep.mubr.msk.bf16.mxu0 %vm224_vm0, %v1967_v33  ;;  %v1989_v24 = vrot.slane %v1987_v41, 1  ;;  %v2038_v33 = vor.u32 %v2037_v8, %v2034_v29  ;;  %v2046_v41 = vrot.slane %v2044_v25, 2  ;;  %v2097_v29 = vrot.slane %v2095_v22, 1  ;;  %v11299_v22 = vld [vmem:[%s10714_s17 + $0x30] sm:$0xff]  }
 0x149   : > { %9222 = vmatprep.subr.bf16.mxu0 %v10476_v40  ;;  %v8293_v17 = vcombine.low %v2394_v27, %v10980_v52  ;;  %v2412_v52 = vrot.slane %v11001_v0, 2  ;;  %v10483_v0 = vld [vmem:[%s13194_s1 + $0xd0] sm:$0xff]   ;;  %v10493_v27 = vld [vmem:[%s13194_s1 + $0xe8] sm:$0xff]  }
 0x14a   : > { %v1993_v32 = vor.u32 %v1992_v50, %v1989_v24  ;;  %v2039_v45 = vsel %vm1932_vm3, %v2029_v30, %v2038_v33  ;;  %v2047_v62 = vor.u32 %v2046_v41, %v2043_v38  ;;  %v2068_v50 = vshrl.u32 %v11088_v42, 16 }
 0x14b   : > { %v2410_v38 = vrot.slane %v10997_v60, 2  ;;  %v2416_v60 = vrot.slane %v11013_v11, 2  ;;  %v2420_v11 = vrot.slane %v11031_v19, 2 }
 0x14c   : > { %9223 = vmatpush3.bf16.msra.mxu0 %v10476_v40  ;;  %v1994_v53 = vsel %vm1932_vm3, %v1984_v49, %v1993_v32  ;;  %v2003_v10 = vsel %vm1932_vm3, %v1993_v32, %v2002_v58  ;;  %v2030_v40 = vsel %vm1932_vm3, %v2020_v18, %v2029_v30  ;;  %v2052_v49 = vrot.slane %v2050_v35, 1 }
 0x14d   : > { %9224 = vmatprep.subr.bf16.mxu0 %v10477_v47  ;;  %v2048_v3 = vsel %vm1932_vm3, %v2038_v33, %v2047_v62  ;;  %v2070_v43 = vrot.slane %v2068_v50, 1  ;;  %v2091_v18 = vrot.slane %v2089_v4, 2  ;;  %v2407_v33 = vrot.slane %v8293_v17, 2  ;;  %v11278_v4 = vld [vmem:[%s10714_s17 + $0x18] sm:$0xff]   ;;  %v11317_v17 = vld [vmem:[%s10714_s17 + $0x40] sm:$0xff]  }
 0x14e   : > { %v2056_v24 = vor.u32 %v2055_v54, %v2052_v49  ;;  %v2408_v35 = vrot.slane %v10988_v57, 2  ;;  %v10482_v57 = vld [vmem:[%s13194_s1 + $0xc8] sm:$0xff]   ;;  %v2414_v49 = vrot.slane %v11009_v9, 2  ;;  %v2418_v9 = vrot.slane %v11027_v63, 2 }
 0x14f   : > { %9189 = vmatmul.mubr.msk.bf16.gmra.mrb[4].mxu0 %vm224_vm0, %v1976_v48  ;;  %v2062_v48 = vshll.u32 %v11084_v39, 16  ;;  %v2092_v5 = vor.u32 %v2091_v18, %v2088_v6  ;;  %v2422_v63 = vrot.slane %v11047_v26, 2  ;;  %v2424_v50 = vrot.slane %v11051_v7, 2  ;;  %v11291_v6 = vld [vmem:[%s10714_s17 + $0x28] sm:$0xff]  }
 0x150   : > { %9192 = vmatprep.mubr.msk.bf16.mxu0 %vm224_vm0, %v1985_v1  ;;  %9225 = vmatpush3.bf16.msra.mxu0 %v10477_v47  ;;  %v2059_v47 = vshrl.u32 %v11084_v39, 16  ;;  %v2071_v1 = vshll.u32 %v11088_v42, 16  ;;  %v2057_v32 = vsel %vm1932_vm3, %v2047_v62, %v2056_v24  ;;  %v2411_v41 = vsel %vm2406_vm4, %v2408_v35, %v2410_v38 }
 0x151   : > { %9226 = vmatprep.subr.bf16.mxu0 %v10478_v20  ;;  %v2093_v30 = vsel %vm1932_vm3, %v2083_v21, %v2092_v5  ;;  %v2415_v54 = vsel %vm2406_vm4, %v2412_v52, %v2414_v49  ;;  %v2417_v62 = vsel %vm2406_vm4, %v2414_v49, %v2416_v60  ;;  %v2423_v19 = vsel %vm2406_vm4, %v2420_v11, %v2422_v63 }
 0x152   : > { %v2061_v51 = vrot.slane %v2059_v47, 1  ;;  %v2073_v44 = vrot.slane %v2071_v1, 2  ;;  %v10488_v47 = vld [vmem:[%s13194_s1 + $0xe0] sm:$0xff]   ;;  %v2425_v1 = vsel %vm2406_vm4, %v2422_v63, %v2424_v50  ;;  %v2430_v26 = vrot.slane %v11072_v34, 2  ;;  %v11366_v63 = vld [vmem:[%s10714_s17 + $0x78] sm:$0xff]  }
 0x153   : > { %v2432_v7 = vrot.slane %v11076_v36, 2  ;;  %v2438_v34 = vrot.slane %v11096_v46, 2  ;;  %v2440_v36 = vrot.slane %v11099_v55, 2  ;;  %v2442_v46 = vrot.slane %v11193_v14, 2 }
 0x154   : > { %9227 = vmatpush3.bf16.msra.mxu0 %v10478_v20  ;;  %v2064_v20 = vrot.slane %v2062_v48, 2  ;;  %v2419_v48 = vsel %vm2406_vm4, %v2416_v60, %v2418_v9  ;;  %v2876_v18 = vrot.slane %v11287_v13, 2 }
 0x155   : > { %9264 = vmatprep.subr.bf16.mxu0 %v11156_v2  ;;  %v2443_v12 = vsel %vm2406_vm4, %v2440_v36, %v2442_v46  ;;  %v254_v46 = vld [vmem:[%s13197_s4 + $0x38] sm:$0xff] }
 0x156   : > { %v2065_v58 = vor.u32 %v2064_v20, %v2061_v51  ;;  %v2428_v51 = vrot.slane %v11064_v31, 2  ;;  %v2434_v31 = vrot.slane %v11084_v39, 2 }
 0x157   : > { %9193 = vmatmul.mubr.msk.bf16.gmra.mrb[8].mxu0 %vm224_vm0, %v1994_v53  ;;  %v2074_v53 = vor.u32 %v2073_v44, %v2070_v43  ;;  %v2436_v44 = vrot.slane %v11088_v42, 2  ;;  %v2441_v42 = vsel %vm2406_vm4, %v2438_v34, %v2440_v36 }
 0x158   : > { %9196 = vmatprep.mubr.msk.bf16.mxu0 %vm224_vm0, %v2003_v10  ;;  %v2066_v10 = vsel %vm1932_vm3, %v2056_v24, %v2065_v58  ;;  %v2421_v24 = vsel %vm2406_vm4, %v2418_v9, %v2420_v11  ;;  %v2431_v43 = vsel %vm2406_vm4, %v2428_v51, %v2430_v26 }
 0x159   : > { %v2075_v16 = vsel %vm1932_vm3, %v2065_v58, %v2074_v53  ;;  %v2435_v58 = vsel %vm2406_vm4, %v2432_v7, %v2434_v31  ;;  %v2437_v59 = vsel %vm2406_vm4, %v2434_v31, %v2436_v44  ;;  %v2439_v39 = vsel %vm2406_vm4, %v2436_v44, %v2438_v34  ;;  %v251_v31 = vld [vmem:[%s13197_s4 + $0x20] sm:$0xff]  ;;  %v253_v34 = vld [vmem:[%s13197_s4 + $0x30] sm:$0xff] }
 0x15f   : > { %9197 = vmatmul.mubr.msk.bf16.gmra.mrb[12].mxu0 %vm224_vm0, %v2012_v23  ;;  %v2098_v23 = vshll.u32 %v11193_v14, 16  ;;  %v2878_v14 = vrot.slane %v11291_v6, 2 }
 0x160   : > { %9200 = vmatprep.mubr.msk.bf16.mxu0 %vm224_vm0, %v2021_v28  ;;  %v2084_v28 = vsel %vm1932_vm3, %v2074_v53, %v2083_v21  ;;  %v11270_v53 = vld [vmem:[%s10714_s17 + $0x14] sm:$0xf] }
 0x161   : > { %v2100_v8 = vrot.slane %v2098_v23, 2  ;;  %v11275_v56 = vcombine.low %v2735_v61, %v11270_v53  ;;  %v2879_v23 = vsel %vm2406_vm4, %v2876_v18, %v2878_v14  ;;  %v11429_v61 = vld [vmem:[%s10714_s17 + $0x90] sm:$0xff]  }
 0x163   : > { %v2101_v25 = vor.u32 %v2100_v8, %v2097_v29  ;;  %v2873_v55 = vrot.slane %v11275_v56, 2  ;;  %v10498_v8 = vld [vmem:[%s13194_s1 + $0xf0] sm:$0xff]  }
 0x165   : > { %v2102_v37 = vsel %vm1932_vm3, %v2092_v5, %v2101_v25  ;;  %v11303_v5 = vld [vmem:[%s10714_s17 + $0x38] sm:$0xff]  }
 0x166   : > { %v2882_v29 = vrot.slane %v11303_v5, 2 }
 0x167   : > { %9201 = vmatmul.mubr.msk.bf16.gmra.mrb[16].mxu0 %vm224_vm0, %v2030_v40  ;;  %v2409_v40 = vsel %vm2406_vm4, %v2407_v33, %v2408_v35  ;;  %v11321_v33 = vld [vmem:[%s10714_s17 + $0x48] sm:$0xff]   ;;  %v10503_v35 = vld [vmem:[%s13194_s1 + $0xf8] sm:$0xff]  }
 0x168   : > { %9204 = vmatprep.mubr.msk.bf16.mxu0 %vm224_vm0, %v2039_v45  ;;  %v2413_v45 = vsel %vm2406_vm4, %v2410_v38, %v2412_v52  ;;  %v11333_v38 = vld [vmem:[%s13194_s1 + $0x100] sm:$0xff]  }
 0x16f   : > { %9205 = vmatmul.mubr.msk.bf16.gmra.mrb[20].mxu0 %vm224_vm0, %v2048_v3  ;;  %v2426_v3 = vrot.slane %v11060_v15, 2  ;;  %v2433_v15 = vsel %vm2406_vm4, %v2430_v26, %v2432_v7  ;;  %v11405_v26 = vld [vmem:[%s10714_s17 + $0x80] sm:$0xff]  }
 0x170   : > { %9208 = vmatprep.mubr.msk.bf16.mxu0 %vm224_vm0, %v2057_v32  ;;  %v2900_v44 = vrot.slane %v11405_v26, 2 }
 0x171   : > { %v2427_v20 = vsel %vm2406_vm4, %v2424_v50, %v2426_v3  ;;  %v2429_v32 = vsel %vm2406_vm4, %v2426_v3, %v2428_v51  ;;  %v10614_v50 = vmov 0   ;;  %v2898_v51 = vrot.slane %v11366_v63, 2 }
 0x172   : > { %10414 = vset.pattern.permute.xlu0 %v10614_v50  ;;  %225 = vst.msk [vmem:[#allocation2] sm:$0xff] %vm224_vm0, %v10614_v50  ;;  %226 = vst.msk [vmem:[#allocation2 + $0x8] sm:$0xff] %vm224_vm0, %v10614_v50  ;;  %10415 = vset.pattern.permute.xlu1 %v10614_v50 }
 0x173   : > { %227 = vst.msk [vmem:[#allocation2 + $0x10] sm:$0xff] %vm224_vm0, %v10614_v50  ;;  %228 = vst.msk [vmem:[#allocation2 + $0x18] sm:$0xff] %vm224_vm0, %v10614_v50  ;;  %v2901_v36 = vsel %vm2406_vm4, %v2898_v51, %v2900_v44 }
 0x174   : > { %229 = vst.msk [vmem:[#allocation2 + $0x20] sm:$0xff] %vm224_vm0, %v10614_v50  ;;  %230 = vst.msk [vmem:[#allocation2 + $0x28] sm:$0xff] %vm224_vm0, %v10614_v50 }
 0x175   : > { %231 = vst.msk [vmem:[#allocation2 + $0x30] sm:$0xff] %vm224_vm0, %v10614_v50  ;;  %232 = vst.msk [vmem:[#allocation2 + $0x38] sm:$0xff] %vm224_vm0, %v10614_v50 }
 0x176   : > { %233 = vst.msk [vmem:[#allocation2 + $0x40] sm:$0xff] %vm224_vm0, %v10614_v50  ;;  %234 = vst.msk [vmem:[#allocation2 + $0x48] sm:$0xff] %vm224_vm0, %v10614_v50 }
 0x177   : > { %9209 = vmatmul.mubr.msk.bf16.gmra.mrb[24].mxu0 %vm224_vm0, %v2066_v10  ;;  %v2874_v10 = vrot.slane %v11278_v4, 2  ;;  %235 = vst.msk [vmem:[#allocation2 + $0x50] sm:$0xff] %vm224_vm0, %v10614_v50  ;;  %236 = vst.msk [vmem:[#allocation2 + $0x58] sm:$0xff] %vm224_vm0, %v10614_v50 }
 0x178   : > { %9212 = vmatprep.mubr.msk.bf16.mxu0 %vm224_vm0, %v2075_v16  ;;  %237 = vst.msk [vmem:[#allocation2 + $0x60] sm:$0xff] %vm224_vm0, %v10614_v50  ;;  %238 = vst.msk [vmem:[#allocation2 + $0x68] sm:$0xff] %vm224_vm0, %v10614_v50 }
 0x179   : > { %v2875_v16 = vsel %vm2406_vm4, %v2873_v55, %v2874_v10  ;;  %v2877_v21 = vsel %vm2406_vm4, %v2874_v10, %v2876_v18  ;;  %239 = vst.msk [vmem:[#allocation2 + $0x70] sm:$0xff] %vm224_vm0, %v10614_v50  ;;  %240 = vst.msk [vmem:[#allocation2 + $0x78] sm:$0xff] %vm224_vm0, %v10614_v50  ;;  %v255_v55 = vld [vmem:[%s13197_s4 + $0x40] sm:$0xff]  ;;  %v2904_v10 = vrot.slane %v11429_v61, 2  ;;  %v3218_v18 = vshll.u32 %v11275_v56, 16 }
 0x17a   : > { %241 = vst.msk [vmem:[#allocation2 + $0x80] sm:$0xff] %vm224_vm0, %v10614_v50  ;;  %242 = vst.msk [vmem:[#allocation2 + $0x88] sm:$0xff] %vm224_vm0, %v10614_v50 }
 0x17b   : > { %243 = vst.msk [vmem:[#allocation2 + $0x90] sm:$0xff] %vm224_vm0, %v10614_v50  ;;  %244 = vst.msk [vmem:[#allocation2 + $0x98] sm:$0xff] %vm224_vm0, %v10614_v50 }
 0x17c   : > { %245 = vst.msk [vmem:[#allocation2 + $0xa0] sm:$0xff] %vm224_vm0, %v10614_v50  ;;  %246 = vst.msk [vmem:[#allocation2 + $0xa8] sm:$0xff] %vm224_vm0, %v10614_v50 }
 0x17f   : > { %9213 = vmatmul.mubr.msk.bf16.gmra.mrb[28].mxu0 %vm224_vm0, %v2084_v28  ;;  %v2880_v28 = vrot.slane %v11299_v22, 2 }
 0x180   : > { %9216 = vmatprep.mubr.msk.bf16.mxu0 %vm224_vm0, %v2093_v30 }
 0x181   : > { %v2881_v30 = vsel %vm2406_vm4, %v2878_v14, %v2880_v28  ;;  %v2883_v25 = vsel %vm2406_vm4, %v2880_v28, %v2882_v29  ;;  %v3223_v14 = vshrl.u32 %v11278_v4, 16 }
 0x187   : > { %9217 = vmatmul.mubr.msk.bf16.gmra.mrb[32].mxu0 %vm224_vm0, %v2102_v37  ;;  %v2884_v37 = vrot.slane %v11317_v17, 2 }
 0x188   : > { %9228 = vmatprep.mubr.msk.bf16.mxu0 %vm224_vm0, %v2409_v40  ;;  %v2886_v40 = vrot.slane %v11321_v33, 2 }
 0x189   : > { %v2885_v52 = vsel %vm2406_vm4, %v2882_v29, %v2884_v37 }
 0x18f   : > { %9229 = vmatmul.mubr.msk.bf16.vlgmr.msra.gmra.mrb[0].mxu0 %vm224_vm0, %v2411_v41  ;;  %v11337_v41 = vld [vmem:[%s10714_s17 + $0x50] sm:$0xff]  }
 0x190   : > { %9265 = vmatpush3.bf16.msra.mxu0 %v11156_v2  ;;  %9232 = vmatprep.mubr.msk.bf16.mxu0 %vm224_vm0, %v2413_v45  ;;  %v10484_v2 = vld [vmem:[%s13194_s1 + $0xd8] sm:$0xff]   ;;  %v2887_v45 = vsel %vm2406_vm4, %v2884_v37, %v2886_v40  ;;  %v2888_v49 = vrot.slane %v11337_v41, 2 }
 0x191   : > { %9266 = vmatprep.subr.bf16.mxu0 %v10482_v57  ;;  %v258_v37 = vld [vmem:[%s13197_s4 + $0x58] sm:$0xff] }
 0x194   : > { %9267 = vmatpush3.bf16.msra.mxu0 %v10482_v57  ;;  %v11341_v57 = vld [vmem:[%s10714_s17 + $0x58] sm:$0xff]  }
 0x195   : > { %9268 = vmatprep.subr.bf16.mxu0 %v10483_v0  ;;  %v2890_v60 = vrot.slane %v11341_v57, 2 }
 0x197   : > { %9233 = vmatmul.mubr.msk.bf16.gmra.mrb[4].mxu0 %vm224_vm0, %v2415_v54  ;;  %v11350_v54 = vld [vmem:[%s10714_s17 + $0x60] sm:$0xff]  }
 0x198   : > { %9236 = vmatprep.mubr.msk.bf16.mxu0 %vm224_vm0, %v2417_v62  ;;  %9269 = vmatpush3.bf16.msra.mxu0 %v10483_v0  ;;  %v2889_v0 = vsel %vm2406_vm4, %v2886_v40, %v2888_v49  ;;  %v2891_v62 = vsel %vm2406_vm4, %v2888_v49, %v2890_v60  ;;  %v2892_v9 = vrot.slane %v11350_v54, 2  ;;  %v259_v40 = vld [vmem:[%s13197_s4 + $0x60] sm:$0xff]  ;;  %v3235_v49 = vshll.u32 %v11287_v13, 16 }
 0x199   : > { %9270 = vmatprep.subr.bf16.mxu0 %v10484_v2 }
 0x19c   : > { %9271 = vmatpush3.bf16.msra.mxu0 %v10484_v2  ;;  %v11354_v2 = vld [vmem:[%s10714_s17 + $0x68] sm:$0xff]  }
 0x19d   : > { %9308 = vmatprep.subr.bf16.mxu0 %v10488_v47  ;;  %v2894_v11 = vrot.slane %v11354_v2, 2 }
 0x19f   : > { %9237 = vmatmul.mubr.msk.bf16.gmra.mrb[8].mxu0 %vm224_vm0, %v2419_v48  ;;  %v11362_v48 = vld [vmem:[%s10714_s17 + $0x70] sm:$0xff]  }
 0x1a0   : > { %9240 = vmatprep.mubr.msk.bf16.mxu0 %vm224_vm0, %v2421_v24  ;;  %v2895_v24 = vsel %vm2406_vm4, %v2892_v9, %v2894_v11  ;;  %v2896_v3 = vrot.slane %v11362_v48, 2 }
 0x1a2   : > { %v2899_v7 = vsel %vm2406_vm4, %v2896_v3, %v2898_v51 }
 0x1a7   : > { %9241 = vmatmul.mubr.msk.bf16.gmra.mrb[12].mxu0 %vm224_vm0, %v2423_v19  ;;  %v247_v19 = vld [vmem:[%s13197_s4] sm:$0xff] }
 0x1a8   : > { %9244 = vmatprep.mubr.msk.bf16.mxu0 %vm224_vm0, %v2425_v1  ;;  %v249_v1 = vld [vmem:[%s13197_s4 + $0x10] sm:$0xff]  ;;  %4054 = vperm.xlu0 %10414, %v247_v19   ;;  %v3237_v19 = vrot.slane %v3235_v49, 3 }
 0x1a9   : > { %4064 = vperm.xlu1 %10415, %v249_v1  }
 0x1af   : > { %9245 = vmatmul.mubr.msk.bf16.gmra.mrb[16].mxu0 %vm224_vm0, %v2427_v20  ;;  %v248_v20 = vld [vmem:[%s13197_s4 + $0x8] sm:$0xff] }
 0x1b0   : > { %9248 = vmatprep.mubr.msk.bf16.mxu0 %vm224_vm0, %v2429_v32  ;;  %v2897_v32 = vsel %vm2406_vm4, %v2894_v11, %v2896_v3  ;;  %4059 = vperm.xlu0 %10414, %v248_v20   ;;  %v260_v11 = vld [vmem:[%s13197_s4 + $0x68] sm:$0xff]  ;;  %v262_v20 = vld [vmem:[%s13197_s4 + $0x78] sm:$0xff] }
 0x1b4   : > { %4074 = vperm.xlu0 %10414, %v251_v31   ;;  %v3253_v31 = vshll.u32 %v11299_v22, 16 }
 0x1b7   : > { %9249 = vmatmul.mubr.msk.bf16.gmra.mrb[20].mxu0 %vm224_vm0, %v2431_v43  ;;  %v11409_v43 = vld [vmem:[%s10714_s17 + $0x88] sm:$0xff]  }
 0x1b8   : > { %9252 = vmatprep.mubr.msk.bf16.mxu0 %vm224_vm0, %v2433_v15  ;;  %v250_v15 = vld [vmem:[%s13197_s4 + $0x18] sm:$0xff]  ;;  %4084 = vperm.xlu0 %10414, %v253_v34   ;;  %v264_v34 = vld [vmem:[%s13197_s4 + $0x88] sm:$0xff] }
 0x1b9   : > { %4069 = vperm.xlu1 %10415, %v250_v15   ;;  %v3250_v15 = vshrl.u32 %v11299_v22, 16 }
 0x1bc   : > { %4094 = vperm.xlu0 %10414, %v255_v55   ;;  %v3255_v55 = vrot.slane %v3253_v31, 3 }
 0x1bf   : > { %9253 = vmatmul.mubr.msk.bf16.gmra.mrb[24].mxu0 %vm224_vm0, %v2435_v58  ;;  %v2902_v58 = vrot.slane %v11409_v43, 2 }
 0x1c0   : > { %9256 = vmatprep.mubr.msk.bf16.mxu0 %vm224_vm0, %v2437_v59  ;;  %v252_v59 = vld [vmem:[%s13197_s4 + $0x28] sm:$0xff] }
 0x1c1   : > { %4079 = vperm.xlu1 %10415, %v252_v59   ;;  %v2905_v28 = vsel %vm2406_vm4, %v2902_v58, %v2904_v10  ;;  %v3262_v59 = vshll.u32 %v11303_v5, 16 }
 0x1c5   : > { %4089 = vperm.xlu1 %10415, %v254_v46   ;;  %v3252_v46 = vrot.slane %v3250_v15, 2 }
 0x1c7   : > { %9257 = vmatmul.mubr.msk.bf16.gmra.mrb[28].mxu0 %vm224_vm0, %v2439_v39  ;;  %v11432_v39 = vld [vmem:[%s10714_s17 + $0x98] sm:$0xff]  }
 0x1c8   : > { %9260 = vmatprep.mubr.msk.bf16.mxu0 %vm224_vm0, %v2441_v42  ;;  %v2903_v42 = vsel %vm2406_vm4, %v2900_v44, %v2902_v58  ;;  %v3259_v58 = vshrl.u32 %v11303_v5, 16 }
 0x1cf   : > { %9261 = vmatmul.mubr.msk.bf16.gmra.mrb[32].mxu0 %vm224_vm0, %v2443_v12  ;;  %v2906_v12 = vrot.slane %v11432_v39, 2 }
 0x1d0   : > { %9272 = vmatprep.mubr.msk.bf16.mxu0 %vm224_vm0, %v2875_v16  ;;  %v3215_v16 = vshrl.u32 %v11275_v56, 16 }
 0x1d1   : > { %v2907_v29 = vsel %vm2406_vm4, %v2904_v10, %v2906_v12 }
 0x1d2   : > { %v3217_v56 = vrot.slane %v3215_v16, 2  ;;  %v3264_v16 = vrot.slane %v3262_v59, 3 }
 0x1d7   : > { %9273 = vmatmul.mubr.msk.bf16.vlgmr.msra.gmra.mrb[0].mxu0 %vm224_vm0, %v2877_v21  ;;  %v3226_v21 = vshll.u32 %v11278_v4, 16 }
 0x1d8   : > { %9309 = vmatpush3.bf16.msra.mxu0 %v10488_v47  ;;  %9276 = vmatprep.mubr.msk.bf16.mxu0 %vm224_vm0, %v2879_v23  ;;  %v2893_v47 = vsel %vm2406_vm4, %v2890_v60, %v2892_v9  ;;  %v256_v23 = vld [vmem:[%s13197_s4 + $0x48] sm:$0xff]  ;;  %v3244_v9 = vshll.u32 %v11291_v6, 16 }
 0x1d9   : > { %9310 = vmatprep.subr.bf16.mxu0 %v10493_v27  ;;  %4099 = vperm.xlu1 %10415, %v256_v23   ;;  %v3256_v23 = vor.u32 %v3255_v55, %v3252_v46  ;;  %v3313_v46 = vshrl.u32 %v11354_v2, 16  ;;  %v3316_v55 = vshll.u32 %v11354_v2, 16 }
 0x1da   : > { %v3246_v51 = vrot.slane %v3244_v9, 3 }
 0x1dc   : > { %9311 = vmatpush3.bf16.msra.mxu0 %v10493_v27  ;;  %v257_v27 = vld [vmem:[%s13197_s4 + $0x50] sm:$0xff] }
 0x1dd   : > { %9312 = vmatprep.subr.bf16.mxu0 %v10498_v8  ;;  %4104 = vperm.xlu0 %10414, %v257_v27   ;;  %v3268_v27 = vshrl.u32 %v11317_v17, 16 }
 0x1de   : > { %4109 = vperm.xlu1 %10415, %v258_v37  }
 0x1df   : > { %9277 = vmatmul.mubr.msk.bf16.gmra.mrb[4].mxu0 %vm224_vm0, %v2881_v30  ;;  %v3220_v30 = vrot.slane %v3218_v18, 3  ;;  %v10509_v18 = vld [vmem:[%s13194_s1 + $0x108] sm:$0xff]   ;;  %v3270_v37 = vrot.slane %v3268_v27, 2  ;;  %v3318_v27 = vrot.slane %v3316_v55, 3 }
 0x1e0   : > { %9280 = vmatprep.mubr.msk.bf16.mxu0 %vm224_vm0, %v2883_v25  ;;  %9313 = vmatpush3.bf16.msra.mxu0 %v10498_v8  ;;  %v10507_v8 = vld [vmem:[%s10714_s17 + $0xa0] ss:$0 sps:$4 sm:$0x33]   ;;  %v3225_v25 = vrot.slane %v3223_v14, 2  ;;  %v266_v14 = vld [vmem:[%s13197_s4 + $0x98] sm:$0xff] }
 0x1e1   : > { %9314 = vmatprep.subr.bf16.mxu0 %v10503_v35  ;;  %v3221_v60 = vor.u32 %v3220_v30, %v3217_v56  ;;  %4114 = vperm.xlu0 %10414, %v259_v40   ;;  %v3280_v56 = vshll.u32 %v11321_v33, 16  ;;  %v10510_v30 = vld [vmem:[%s13194_s1 + $0x110] sm:$0xff]  }
 0x1e2   : > { %4119 = vperm.xlu1 %10415, %v260_v11   ;;  %v3286_v11 = vshrl.u32 %v11337_v41, 16 }
 0x1e3   : > { %v3282_v49 = vrot.slane %v3280_v56, 3  ;;  %v3322_v56 = vshrl.u32 %v11362_v48, 16 }
 0x1e4   : > { %9315 = vmatpush3.bf16.msra.mxu0 %v10503_v35  ;;  %v3228_v35 = vrot.slane %v3226_v21, 3  ;;  %v267_v21 = vld [vmem:[%s13197_s4 + $0xa0] sm:$0xff] }
 0x1e5   : > { %9352 = vmatprep.subr.bf16.mxu0 %v11333_v38 }
 0x1e6   : > { %4129 = vperm.xlu1 %10415, %v262_v20   ;;  %v3288_v20 = vrot.slane %v3286_v11, 2 }
 0x1e7   : > { %9281 = vmatmul.mubr.msk.bf16.gmra.mrb[8].mxu0 %vm224_vm0, %v2885_v52  ;;  %v2908_v52 = vrot.slane %v10507_v8, 2  ;;  %v3277_v8 = vshrl.u32 %v11321_v33, 16 }
 0x1e8   : > { %9284 = vmatprep.mubr.msk.bf16.mxu0 %vm224_vm0, %v2887_v45  ;;  %v3232_v45 = vshrl.u32 %v11287_v13, 16 }
 0x1ea   : > { %v3234_v50 = vrot.slane %v3232_v45, 2  ;;  %4139 = vperm.xlu1 %10415, %v264_v34   ;;  %v3279_v45 = vrot.slane %v3277_v8, 2  ;;  %v3304_v34 = vshrl.u32 %v11350_v54, 16 }
 0x1ee   : > { %4149 = vperm.xlu1 %10415, %v266_v14  }
 0x1ef   : > { %9285 = vmatmul.mubr.msk.bf16.gmra.mrb[12].mxu0 %vm224_vm0, %v2889_v0  ;;  %v3229_v0 = vor.u32 %v3228_v35, %v3225_v25  ;;  %v269_v25 = vld [vmem:[%s13197_s4 + $0xb0] sm:$0xff] }
 0x1f0   : > { %9288 = vmatprep.mubr.msk.bf16.mxu0 %vm224_vm0, %v2891_v62  ;;  %v3241_v62 = vshrl.u32 %v11291_v6, 16 }
 0x1f1   : > { %v3230_v1 = vsel %vm3213_vm5, %v3221_v60, %v3229_v0  ;;  %v10511_v60 = vld [vmem:[%s13194_s1 + $0x118] sm:$0xff]  }
 0x1f2   : > { %v3243_v3 = vrot.slane %v3241_v62, 2  ;;  %v271_v62 = vld [vmem:[%s13197_s4 + $0xc0] sm:$0xff] }
 0x1f4   : > { %v3247_v44 = vor.u32 %v3246_v51, %v3243_v3  ;;  %v273_v3 = vld [vmem:[%s13197_s4 + $0xd0] sm:$0xff] }
 0x1f6   : > { %v3257_v35 = vsel %vm3213_vm5, %v3247_v44, %v3256_v23 }
 0x1f7   : > { %9289 = vmatmul.mubr.msk.bf16.gmra.mrb[16].mxu0 %vm224_vm0, %v2893_v47  ;;  %v261_v47 = vld [vmem:[%s13197_s4 + $0x70] sm:$0xff] }
 0x1f8   : > { %9292 = vmatprep.mubr.msk.bf16.mxu0 %vm224_vm0, %v2895_v24  ;;  %v2909_v24 = vsel %vm2406_vm4, %v2906_v12, %v2908_v52  ;;  %4124 = vperm.xlu0 %10414, %v261_v47   ;;  %v3261_v12 = vrot.slane %v3259_v58, 2  ;;  %v3289_v47 = vshll.u32 %v11337_v41, 16  ;;  %v275_v58 = vld [vmem:[%s13197_s4 + $0xe0] sm:$0xff] }
 0x1ff   : > { %9293 = vmatmul.mubr.msk.bf16.gmra.mrb[20].mxu0 %vm224_vm0, %v2897_v32  ;;  %v263_v32 = vld [vmem:[%s13197_s4 + $0x80] sm:$0xff] }
 0x200   : > { %9296 = vmatprep.mubr.msk.bf16.mxu0 %vm224_vm0, %v2899_v7  ;;  %v3238_v7 = vor.u32 %v3237_v19, %v3234_v50  ;;  %4134 = vperm.xlu0 %10414, %v263_v32   ;;  %v3295_v50 = vshrl.u32 %v11341_v57, 16  ;;  %v3298_v19 = vshll.u32 %v11341_v57, 16  ;;  %v3291_v32 = vrot.slane %v3289_v47, 3 }
 0x201   : > { %v3340_v47 = vshrl.u32 %v11405_v26, 16 }
 0x202   : > { %v3248_v10 = vsel %vm3213_vm5, %v3238_v7, %v3247_v44  ;;  %v3297_v15 = vrot.slane %v3295_v50, 2  ;;  %v3300_v31 = vrot.slane %v3298_v19, 3  ;;  %v274_v44 = vld [vmem:[%s13197_s4 + $0xd8] sm:$0xff]  ;;  %v3292_v59 = vor.u32 %v3291_v32, %v3288_v20 }
 0x203   : > { %v3349_v19 = vshrl.u32 %v11409_v43, 16 }
 0x207   : > { %9297 = vmatmul.mubr.msk.bf16.gmra.mrb[24].mxu0 %vm224_vm0, %v2901_v36  ;;  %v265_v36 = vld [vmem:[%s13197_s4 + $0x90] sm:$0xff] }
 0x208   : > { %9300 = vmatprep.mubr.msk.bf16.mxu0 %vm224_vm0, %v2903_v42  ;;  %v3239_v42 = vsel %vm3213_vm5, %v3229_v0, %v3238_v7  ;;  %4144 = vperm.xlu0 %10414, %v265_v36   ;;  %v270_v0 = vld [vmem:[%s13197_s4 + $0xb8] sm:$0xff]  ;;  %v3307_v36 = vshll.u32 %v11350_v54, 16 }
 0x20a   : > { %v3309_v14 = vrot.slane %v3307_v36, 3  ;;  %v3370_v36 = vshll.u32 %v11432_v39, 16 }
 0x20c   : > { %4154 = vperm.xlu0 %10414, %v267_v21  }
 0x20f   : > { %9301 = vmatmul.mubr.msk.bf16.gmra.mrb[28].mxu0 %vm224_vm0, %v2905_v28  ;;  %v3271_v28 = vshll.u32 %v11317_v17, 16 }
 0x210   : > { %9304 = vmatprep.mubr.msk.bf16.mxu0 %vm224_vm0, %v2907_v29  ;;  %v3265_v29 = vor.u32 %v3264_v16, %v3261_v12  ;;  %4164 = vperm.xlu0 %10414, %v269_v25   ;;  %v277_v12 = vld [vmem:[%s13197_s4 + $0xf0] sm:$0xff]  ;;  %v3331_v25 = vshrl.u32 %v11366_v63, 16 }
 0x211   : > { %v3273_v40 = vrot.slane %v3271_v28, 3  ;;  %v278_v28 = vld [vmem:[%s13197_s4 + $0xf8] sm:$0xff] }
 0x212   : > { %v3266_v52 = vsel %vm3213_vm5, %v3256_v23, %v3265_v29  ;;  %v3315_v23 = vrot.slane %v3313_v46, 2 }
 0x213   : > { %v3274_v9 = vor.u32 %v3273_v40, %v3270_v37  ;;  %v280_v37 = vld [vmem:[%s13197_s4 + $0x108] sm:$0xff]  ;;  %v281_v40 = vld [vmem:[%s13197_s4 + $0x110] sm:$0xff] }
 0x214   : > { %4174 = vperm.xlu0 %10414, %v271_v62  }
 0x215   : > { %v3275_v51 = vsel %vm3213_vm5, %v3265_v29, %v3274_v9  ;;  %v279_v29 = vld [vmem:[%s13197_s4 + $0x100] sm:$0xff] }
 0x217   : > { %9305 = vmatmul.mubr.msk.bf16.gmra.mrb[32].mxu0 %vm224_vm0, %v2909_v24  ;;  %v3283_v24 = vor.u32 %v3282_v49, %v3279_v45  ;;  %v3324_v45 = vrot.slane %v3322_v56, 2 }
 0x218   : > { %9316 = vmatprep.mubr.msk.bf16.mxu0 %vm224_vm0, %v3230_v1  ;;  %v272_v1 = vld [vmem:[%s13197_s4 + $0xc8] sm:$0xff]  ;;  %4184 = vperm.xlu0 %10414, %v273_v3  }
 0x219   : > { %v3284_v7 = vsel %vm3213_vm5, %v3274_v9, %v3283_v24  ;;  %v3293_v16 = vsel %vm3213_vm5, %v3283_v24, %v3292_v59  ;;  %v282_v9 = vld [vmem:[%s13197_s4 + $0x118] sm:$0xff]  ;;  %v3343_v24 = vshll.u32 %v11405_v26, 16 }
 0x21b   : > { %v3345_v20 = vrot.slane %v3343_v24, 3 }
 0x21c   : > { %4194 = vperm.xlu0 %10414, %v275_v58   ;;  %v3361_v58 = vshll.u32 %v11429_v61, 16 }
 0x21e   : > { %v3363_v55 = vrot.slane %v3361_v58, 3  ;;  %v11688_v58 = vld [vmem:[#allocation2 + $0x8] sm:$0xff] }
 0x21f   : > { %9317 = vmatmul.mubr.msk.bf16.vlgmr.msra.gmra.mrb[0].mxu0 %vm224_vm0, %v3239_v42  ;;  %v3301_v42 = vor.u32 %v3300_v31, %v3297_v15 }
 0x220   : > { %9353 = vmatpush3.bf16.msra.mxu0 %v11333_v38  ;;  %9320 = vmatprep.mubr.msk.bf16.mxu0 %vm224_vm0, %v3248_v10  ;;  %v268_v38 = vld [vmem:[%s13197_s4 + $0xa8] sm:$0xff] }
 0x221   : > { %9354 = vmatprep.subr.bf16.mxu0 %v10509_v18  ;;  %4159 = vperm.xlu1 %10415, %v268_v38   ;;  %v276_v10 = vld [vmem:[%s13197_s4 + $0xe8] sm:$0xff]  ;;  %v3302_v21 = vsel %vm3213_vm5, %v3292_v59, %v3301_v42  ;;  %v3319_v38 = vor.u32 %v3318_v27, %v3315_v23 }
 0x222   : > { %4204 = vperm.xlu0 %10414, %v277_v12  }
 0x224   : > { %9355 = vmatpush3.bf16.msra.mxu0 %v10509_v18  ;;  %v3306_v18 = vrot.slane %v3304_v34, 2  ;;  %v3367_v34 = vshrl.u32 %v11432_v39, 16 }
 0x225   : > { %9356 = vmatprep.subr.bf16.mxu0 %v10510_v30  ;;  %4169 = vperm.xlu1 %10415, %v270_v0   ;;  %v3333_v0 = vrot.slane %v3331_v25, 2 }
 0x226   : > { %v3310_v8 = vor.u32 %v3309_v14, %v3306_v18  ;;  %4214 = vperm.xlu0 %10414, %v279_v29   ;;  %v3372_v18 = vrot.slane %v3370_v36, 3  ;;  %v4361_v36 = vrot.slane %v11688_v58, 7 }
 0x227   : > { %9321 = vmatmul.mubr.msk.bf16.gmra.mrb[4].mxu0 %vm224_vm0, %v3257_v35  ;;  %v3334_v35 = vshll.u32 %v11366_v63, 16 }
 0x228   : > { %9324 = vmatprep.mubr.msk.bf16.mxu0 %vm224_vm0, %v3266_v52  ;;  %9357 = vmatpush3.bf16.msra.mxu0 %v10510_v30  ;;  %v3325_v30 = vshll.u32 %v11362_v48, 16  ;;  %v3311_v52 = vsel %vm3213_vm5, %v3301_v42, %v3310_v8 }
 0x229   : > { %9358 = vmatprep.subr.bf16.mxu0 %v10511_v60  ;;  %4179 = vperm.xlu1 %10415, %v272_v1   ;;  %v3336_v62 = vrot.slane %v3334_v35, 3  ;;  %v3352_v1 = vshll.u32 %v11409_v43, 16 }
 0x22a   : > { %v3327_v49 = vrot.slane %v3325_v30, 3  ;;  %4224 = vperm.xlu0 %10414, %v281_v40  }
 0x22b   : > { %v3337_v50 = vor.u32 %v3336_v62, %v3333_v0  ;;  %v3354_v15 = vrot.slane %v3352_v1, 3  ;;  %v3697_v0 = vrot.slane %v11303_v5, 3  ;;  %v3705_v5 = vrot.slane %v11341_v57, 3 }
 0x22c   : > { %9359 = vmatpush3.bf16.msra.mxu0 %v10511_v60  ;;  %v3320_v60 = vsel %vm3213_vm5, %v3310_v8, %v3319_v38  ;;  %v3328_v11 = vor.u32 %v3327_v49, %v3324_v45  ;;  %v3691_v45 = vrot.slane %v11287_v13, 3  ;;  %v3699_v13 = vrot.slane %v11317_v17, 3 }
 0x22d   : > { %4189 = vperm.xlu1 %10415, %v274_v44   ;;  %v3358_v44 = vshrl.u32 %v11429_v61, 16  ;;  %v3707_v17 = vrot.slane %v11350_v54, 3  ;;  %v3713_v57 = vrot.slane %v11366_v63, 3  ;;  %v3715_v54 = vrot.slane %v11405_v26, 3 }
 0x22e   : > { %v3329_v3 = vsel %vm3213_vm5, %v3319_v38, %v3328_v11  ;;  %v3338_v32 = vsel %vm3213_vm5, %v3328_v11, %v3337_v50  ;;  %v3700_v11 = vsel %vm3687_vm6, %v3697_v0, %v3699_v13  ;;  %v3721_v63 = vrot.slane %v11432_v39, 3  ;;  %v10515_v39 = vld [vmem:[%s13195_s2 + $0x28] sm:$0xff]  }
 0x22f   : > { %9325 = vmatmul.mubr.msk.bf16.gmra.mrb[8].mxu0 %vm224_vm0, %v3275_v51  ;;  %v3342_v51 = vrot.slane %v3340_v47, 2  ;;  %v3360_v46 = vrot.slane %v3358_v44, 2  ;;  %v10517_v44 = vld [vmem:[%s13195_s2 + $0x38] sm:$0xff]  }
 0x230   : > { %9328 = vmatprep.mubr.msk.bf16.mxu0 %vm224_vm0, %v3284_v7  ;;  %v3351_v7 = vrot.slane %v3349_v19, 2  ;;  %v3708_v19 = vsel %vm3687_vm6, %v3705_v5, %v3707_v17 }
 0x231   : > { %4199 = vperm.xlu1 %10415, %v276_v10   ;;  %v3346_v31 = vor.u32 %v3345_v20, %v3342_v51  ;;  %v11607_v10 = vld [vmem:[%s10714_s17 + $0xa0] ss:$0 sps:$4 sm:$0x77]   ;;  %v3364_v14 = vor.u32 %v3363_v55, %v3360_v46  ;;  %v3716_v20 = vsel %vm3687_vm6, %v3713_v57, %v3715_v54  ;;  %v4055_v55 = vpop.permute.xlu0 %4054 }
 0x232   : > { %v3355_v59 = vor.u32 %v3354_v15, %v3351_v7  ;;  %v3379_v23 = vshll.u32 %v11607_v10, 16  ;;  %v3723_v26 = vrot.slane %v11607_v10, 3  ;;  %v11701_v46 = vld [vmem:[%s13195_s2] sm:$0xff]  }
 0x233   : > { %v3347_v42 = vsel %vm3213_vm5, %v3337_v50, %v3346_v31 }
 0x234   : > { %v3356_v12 = vsel %vm3213_vm5, %v3346_v31, %v3355_v59  ;;  %v3365_v29 = vsel %vm3213_vm5, %v3355_v59, %v3364_v14  ;;  %v3381_v56 = vrot.slane %v3379_v23, 3  ;;  %v10516_v31 = vld [vmem:[%s13195_s2 + $0x30] sm:$0xff]   ;;  %v11690_v59 = vld [vmem:[#allocation2] sm:$0x80] }
 0x235   : > { %4209 = vperm.xlu1 %10415, %v278_v28   ;;  %v3675_v28 = vld [vmem:[%s10714_s17 + $0x10] sm:$0x8]  ;;  %s13152_s17 = scalar_lea.sflag [#allocation4], %s215_s10 }
 0x236   : > { %v8380_v38 = vcombine.low %v3675_v28, %v11270_v53  ;;  %v3693_v53 = vrot.slane %v11291_v6, 3  ;;  %v3701_v6 = vrot.slane %v11321_v33, 3  ;;  %v3709_v33 = vrot.slane %v11354_v2, 3 }
 0x237   : > { %9329 = vmatmul.mubr.msk.bf16.gmra.mrb[12].mxu0 %vm224_vm0, %v3293_v16  ;;  %v3369_v16 = vrot.slane %v3367_v34, 2  ;;  %v3717_v2 = vrot.slane %v11409_v43, 3  ;;  %v3724_v43 = vsel %vm3687_vm6, %v3721_v63, %v3723_v26  ;;  %v4360_v34 = vrot.slane %v11690_v59, 7 }
 0x238   : > { %9332 = vmatprep.mubr.msk.bf16.mxu0 %vm224_vm0, %v3302_v21  ;;  %v3376_v21 = vshrl.u32 %v11607_v10, 16  ;;  %v3688_v35 = vrot.slane %v8380_v38, 3  ;;  %v3702_v47 = vsel %vm3687_vm6, %v3699_v13, %v3701_v6  ;;  %v3710_v1 = vsel %vm3687_vm6, %v3707_v17, %v3709_v33  ;;  %v4065_v10 = vpop.permute.xlu1 %4064 }
 0x239   : > { %4219 = vperm.xlu1 %10415, %v280_v37   ;;  %v3373_v27 = vor.u32 %v3372_v18, %v3369_v16  ;;  %v3689_v37 = vrot.slane %v11278_v4, 3  ;;  %v3695_v4 = vrot.slane %v11299_v22, 3  ;;  %v3703_v22 = vrot.slane %v11337_v41, 3 }
 0x23a   : > { %v3378_v8 = vrot.slane %v3376_v21, 2  ;;  %v3711_v41 = vrot.slane %v11362_v48, 3  ;;  %v3719_v48 = vrot.slane %v11429_v61, 3  ;;  %v10514_v61 = vld [vmem:[%s13195_s2 + $0x20] sm:$0xff]   ;;  %v4662_v13 = vshrl.u32 %v11688_v58, 16 }
 0x23b   : > { %v3374_v30 = vsel %vm3213_vm5, %v3364_v14, %v3373_v27  ;;  %v3692_v49 = vsel %vm3687_vm6, %v3689_v37, %v3691_v45  ;;  %v3696_v62 = vsel %vm3687_vm6, %v3693_v53, %v3695_v4  ;;  %v3704_v24 = vsel %vm3687_vm6, %v3701_v6, %v3703_v22  ;;  %9396 = vmatprep.subr.bf16.mxu1 %v10514_v61 }
 0x23c   : > { %v3382_v25 = vor.u32 %v3381_v56, %v3378_v8  ;;  %v3706_v50 = vsel %vm3687_vm6, %v3703_v22, %v3705_v5  ;;  %v3714_v51 = vsel %vm3687_vm6, %v3711_v41, %v3713_v57  ;;  %v3720_v7 = vsel %vm3687_vm6, %v3717_v2, %v3719_v48  ;;  %9397 = vmatpush3.bf16.msra.mxu1 %v10514_v61  ;;  %v4070_v16 = vpop.permute.xlu1 %4069 }
 0x23d   : > { %4229 = vperm.xlu1 %10415, %v282_v9   ;;  %v3698_v9 = vsel %vm3687_vm6, %v3695_v4, %v3697_v0  ;;  %v3722_v15 = vsel %vm3687_vm6, %v3719_v48, %v3721_v63  ;;  %9398 = vmatprep.subr.bf16.mxu1 %v10515_v39  ;;  %v4665_v6 = vshll.u32 %v11688_v58, 16 }
 0x23e   : > { %v3383_v40 = vsel %vm3213_vm5, %v3373_v27, %v3382_v25 }
 0x23f   : > { %9333 = vmatmul.mubr.msk.bf16.gmra.mrb[16].mxu0 %vm224_vm0, %v3311_v52  ;;  %v3690_v52 = vsel %vm3687_vm6, %v3688_v35, %v3689_v37 }
 0x240   : > { %9336 = vmatprep.mubr.msk.bf16.mxu0 %vm224_vm0, %v3320_v60  ;;  %v3694_v60 = vsel %vm3687_vm6, %v3691_v45, %v3693_v53  ;;  %9399 = vmatpush3.bf16.msra.mxu1 %v10515_v39  ;;  %v4080_v14 = vpop.permute.xlu1 %4079 }
 0x241   : > { %9400 = vmatprep.subr.bf16.mxu1 %v10516_v31 }
 0x244   : > { %9401 = vmatpush3.bf16.msra.mxu1 %v10516_v31  ;;  %v4090_v23 = vpop.permute.xlu1 %4089 }
 0x245   : > { %9402 = vmatprep.subr.bf16.mxu1 %v10517_v44 }
 0x247   : > { %9337 = vmatmul.mubr.msk.bf16.gmra.mrb[20].mxu0 %vm224_vm0, %v3329_v3  ;;  %v3712_v3 = vsel %vm3687_vm6, %v3709_v33, %v3711_v41  ;;  %v4667_v41 = vrot.slane %v4665_v6, 7 }
 0x248   : > { %9340 = vmatprep.mubr.msk.bf16.mxu0 %vm224_vm0, %v3338_v32  ;;  %v3718_v32 = vsel %vm3687_vm6, %v3715_v54, %v3717_v2  ;;  %9403 = vmatpush3.bf16.msra.mxu1 %v10517_v44  ;;  %v4304_v54 = vld [vmem:[#allocation2] sm:$0xc0] }
 0x249   : > { %9440 = vmatprep.subr.bf16.mxu1 %v11701_v46  ;;  %v4657_v44 = vshll.u32 %v4304_v54, 16 }
 0x24f   : > { %9341 = vmatmul.mubr.msk.bf16.gmra.mrb[24].mxu0 %vm224_vm0, %v3347_v42  ;;  %v4362_v42 = vsel %vm4359_vm7, %v4360_v34, %v4361_v36 }
 0x250   : > { %9344 = vmatprep.mubr.msk.bf16.mxu0 %vm224_vm0, %v3356_v12  ;;  %9404 = vmatprep.mubr.msk.bf16.mxu1 %vm224_vm0, %v4362_v42  ;;  %v4060_v12 = vpop.permute.xlu0 %4059 }
 0x254   : > { %v4075_v18 = vpop.permute.xlu0 %4074 }
 0x257   : > { %9345 = vmatmul.mubr.msk.bf16.gmra.mrb[28].mxu0 %vm224_vm0, %v3365_v29 }
 0x258   : > { %9348 = vmatprep.mubr.msk.bf16.mxu0 %vm224_vm0, %v3374_v30  ;;  %v4085_v21 = vpop.permute.xlu0 %4084  ;;  %v11706_v28 = vpop.permute.xlu1 %4099 }
 0x25c   : > { %v11704_v27 = vpop.permute.xlu0 %4094 }
 0x25d   : > { %v11710_v8 = vpop.permute.xlu1 %4109 }
 0x25f   : > { %9349 = vmatmul.mubr.msk.bf16.gmra.mrb[32].mxu0 %vm224_vm0, %v3383_v40 }
 0x260   : > { %9360 = vmatprep.mubr.msk.bf16.mxu0 %vm224_vm0, %v3690_v52  ;;  %v11708_v29 = vpop.permute.xlu0 %4104 }
 0x261   : > { %v11714_v35 = vpop.permute.xlu1 %4119 }
 0x264   : > { %v11712_v56 = vpop.permute.xlu0 %4114 }
 0x267   : > { %9361 = vmatmul.mubr.msk.bf16.vlgmr.msra.gmra.mrb[0].mxu0 %vm224_vm0, %v3692_v49 }
 0x268   : > { %9364 = vmatprep.mubr.msk.bf16.mxu0 %vm224_vm0, %v3694_v60 }
 0x26f   : > { %9365 = vmatmul.mubr.msk.bf16.gmra.mrb[4].mxu0 %vm224_vm0, %v3696_v62 }
 0x270   : > { %9368 = vmatprep.mubr.msk.bf16.mxu0 %vm224_vm0, %v3698_v9 }
 0x277   : > { %9369 = vmatmul.mubr.msk.bf16.gmra.mrb[8].mxu0 %vm224_vm0, %v3700_v11  ;;  %v11716_v4 = vpop.permute.xlu0 %4124  ;;  %v11722_v11 = vpop.permute.xlu1 %4129 }
 0x278   : > { %9372 = vmatprep.mubr.msk.bf16.mxu0 %vm224_vm0, %v3702_v47 }
 0x27f   : > { %9373 = vmatmul.mubr.msk.bf16.gmra.mrb[12].mxu0 %vm224_vm0, %v3704_v24  ;;  %v11732_v57 = vpop.permute.xlu0 %4134 }
 0x280   : > { %9376 = vmatprep.mubr.msk.bf16.mxu0 %vm224_vm0, %v3706_v50 }
 0x287   : > { %9377 = vmatmul.mubr.msk.bf16.gmra.mrb[16].mxu0 %vm224_vm0, %v3708_v19 }
 0x288   : > { %9380 = vmatprep.mubr.msk.bf16.mxu0 %vm224_vm0, %v3710_v1  ;;  %v4664_v1 = vrot.slane %v4662_v13, 6 }
 0x28a   : > { %v11739_v26 = vor.u32 %v4667_v41, %v4664_v1 }
 0x28f   : > { %9381 = vmatmul.mubr.msk.bf16.gmra.mrb[20].mxu0 %vm224_vm0, %v3712_v3 }
 0x290   : > { %9384 = vmatprep.mubr.msk.bf16.mxu0 %vm224_vm0, %v3714_v51  ;;  %v5089_v51 = vshrl.u32 %v11690_v59, 16  ;;  %v11747_v59 = vrot.slane %v4662_v13, 7 }
 0x292   : > { %v11743_v39 = vrot.slane %v5089_v51, 7  ;;  %v11795_v51 = vrot.slane %v4657_v44, 7 }
 0x297   : > { %9385 = vmatmul.mubr.msk.bf16.gmra.mrb[24].mxu0 %vm224_vm0, %v3716_v20 }
 0x298   : > { %9388 = vmatprep.mubr.msk.bf16.mxu0 %vm224_vm0, %v3718_v32  ;;  %v11735_v32 = vpop.permute.xlu1 %4139 }
 0x29f   : > { %9389 = vmatmul.mubr.msk.bf16.gmra.mrb[28].mxu0 %vm224_vm0, %v3720_v7 }
 0x2a0   : > { %9392 = vmatprep.mubr.msk.bf16.mxu0 %vm224_vm0, %v3722_v15  ;;  %v4654_v15 = vshrl.u32 %v4304_v54, 16 }
 0x2a7   : > { %9393 = vmatmul.mubr.msk.bf16.gmra.mrb[32].mxu0 %vm224_vm0, %v3724_v43 }
 0x33a   : > { %v9362_v30 = vpop.f32.mrb[0].mxu0 }
 0x33b   : > { %v4018_v38 = vmax.f32 %v9362_v30, 0.0  ;;  %v3837_v25 = vpop.f32.mrb[1].mxu0 }
 0x33c   : > { %v4016_v37 = vmax.f32 %v3837_v25, 0.0  ;;  %v9363_v40 = vpop.f32.mrb[2].mxu0 }
 0x33d   : > { %v4019_v52 = vmax.f32 %v9363_v40, 0.0  ;;  %v3840_v45 = vpop.f32.mrb[3].mxu0  ;;  %v4234_v49 = vmul.f32 %v4065_v10, %v4018_v38  ;;  %v10519_v40 = vld [vmem:[%s13195_s2 + $0x8] sm:$0xff]  }
 0x33e   : > { %v4017_v53 = vmax.f32 %v3840_v45, 0.0  ;;  %v4232_v0 = vmul.f32 %v4055_v55, %v4016_v37 }
 0x33f   : > { %v4235_v60 = vmul.f32 %v4070_v16, %v4019_v52  ;;  %v11761_v52 = vrot.slane %v4654_v15, 6 }
 0x340   : > { %v4233_v62 = vmul.f32 %v4060_v12, %v4017_v53 }
 0x341   : > { %v11718_v9 = vpack.c.bf16 %v4235_v60, %v4234_v49  ;;  %v11763_v49 = vpop.permute.xlu1 %4149 }
 0x342   : > { %v11724_v47 = vpack.c.bf16 %v4233_v62, %v4232_v0  ;;  %v9366_v22 = vpop.f32.mrb[4].mxu0 }
 0x343   : > { %13239 = vst [vmem:[#allocation6_spill] sm:$0xff] %v11718_v9  ;;  %4287 = vst.msk [vmem:[#allocation2 + $0x18] sm:$0xff] %vm224_vm0, %v11718_v9  ;;  %v4022_v5 = vmax.f32 %v9366_v22, 0.0  ;;  %v3853_v24 = vpop.f32.mrb[5].mxu0 }
 0x344   : > { %13240 = vst [vmem:[#allocation7_spill] sm:$0xff] %v11724_v47  ;;  %4286 = vst.msk [vmem:[#allocation2 + $0x10] sm:$0xff] %vm224_vm0, %v11724_v47  ;;  %v4020_v50 = vmax.f32 %v3853_v24, 0.0  ;;  %v9367_v17 = vpop.f32.mrb[6].mxu0 }
 0x345   : > { %v4023_v33 = vmax.f32 %v9367_v17, 0.0  ;;  %v3856_v19 = vpop.f32.mrb[7].mxu0  ;;  %v4238_v2 = vmul.f32 %v4085_v21, %v4022_v5  ;;  %v11811_v44 = vpop.permute.xlu1 %4159 }
 0x346   : > { %v4021_v3 = vmax.f32 %v3856_v19, 0.0  ;;  %v4236_v48 = vmul.f32 %v4075_v18, %v4020_v50  ;;  %v11754_v18 = vpop.permute.xlu0 %4144  ;;  %v10520_v19 = vld [vmem:[%s13195_s2 + $0x10] sm:$0xff]  }
 0x347   : > { %v4239_v20 = vmul.f32 %v4090_v23, %v4023_v33 }
 0x348   : > { %v4237_v63 = vmul.f32 %v4080_v14, %v4021_v3 }
 0x349   : > { %v11737_v7 = vpack.c.bf16 %v4239_v20, %v4238_v2 }
 0x34a   : > { %v11741_v43 = vpack.c.bf16 %v4237_v63, %v4236_v48  ;;  %v9370_v61 = vpop.f32.mrb[8].mxu0  ;;  %v11745_v31 = vld [vmem:[#allocation2 + $0x18] sm:$0xff] }
 0x34b   : > { %13241 = vst [vmem:[#allocation8_spill] sm:$0xff] %v11737_v7  ;;  %4289 = vst.msk [vmem:[#allocation2 + $0x28] sm:$0xff] %vm224_vm0, %v11737_v7  ;;  %v4026_v34 = vmax.f32 %v9370_v61, 0.0  ;;  %v3869_v42 = vpop.f32.mrb[9].mxu0  ;;  %v4306_v55 = vld [vmem:[#allocation2 + $0x10] sm:$0xff]  ;;  %v4365_v10 = vrot.slane %v11745_v31, 7 }
 0x34c   : > { %13242 = vst [vmem:[#allocation9_spill] sm:$0xff] %v11741_v43  ;;  %v4680_v12 = vshrl.u32 %v11745_v31, 16  ;;  %v4683_v16 = vshll.u32 %v11745_v31, 16  ;;  %4288 = vst.msk [vmem:[#allocation2 + $0x20] sm:$0xff] %vm224_vm0, %v11741_v43  ;;  %v4024_v14 = vmax.f32 %v3869_v42, 0.0  ;;  %v9371_v21 = vpop.f32.mrb[10].mxu0 }
 0x34d   : > { %v4363_v23 = vrot.slane %v4306_v55, 7  ;;  %v4671_v30 = vshrl.u32 %v4306_v55, 16  ;;  %v4674_v38 = vshll.u32 %v4306_v55, 16  ;;  %v4027_v25 = vmax.f32 %v9371_v21, 0.0  ;;  %v3872_v37 = vpop.f32.mrb[11].mxu0 }
 0x34e   : > { %v4682_v45 = vrot.slane %v4680_v12, 6  ;;  %v4685_v53 = vrot.slane %v4683_v16, 7  ;;  %v4242_v60 = vmul.f32 %v11708_v29, %v4026_v34  ;;  %v4025_v0 = vmax.f32 %v3872_v37, 0.0 }
 0x34f   : > { %v4364_v62 = vsel %vm4359_vm7, %v4361_v36, %v4363_v23  ;;  %v4673_v13 = vrot.slane %v4671_v30, 6  ;;  %v4243_v22 = vmul.f32 %v11710_v8, %v4027_v25  ;;  %v4676_v5 = vrot.slane %v4674_v38, 7 }
 0x350   : > { %9405 = vmatmul.mubr.msk.bf16.vlgmr.msra.gmra.mrb[0].mxu1 %vm224_vm0, %v4364_v62  ;;  %v5095_v24 = vrot.slane %v4671_v30, 7  ;;  %v4366_v50 = vsel %vm4359_vm7, %v4363_v23, %v4365_v10  ;;  %v4240_v17 = vmul.f32 %v11704_v27, %v4024_v14  ;;  %v4241_v29 = vmul.f32 %v11706_v28, %v4025_v0  ;;  %v11789_v27 = vpop.permute.xlu0 %4154  ;;  %v10521_v30 = vld [vmem:[%s13195_s2 + $0x18] sm:$0xff]  }
 0x351   : > { %9408 = vmatprep.mubr.msk.bf16.mxu1 %vm224_vm0, %v4366_v50  ;;  %9441 = vmatpush3.bf16.msra.mxu1 %v11701_v46  ;;  %v11778_v36 = vor.u32 %v4685_v53, %v4682_v45  ;;  %v11780_v33 = vrot.slane %v4680_v12, 7  ;;  %v11782_v8 = vpack.c.bf16 %v4243_v22, %v4242_v60  ;;  %v4677_v1 = vor.u32 %v4676_v5, %v4673_v13 }
 0x352   : > { %9442 = vmatprep.subr.bf16.mxu1 %v10519_v40  ;;  %v11787_v41 = vor.u32 %v5095_v24, %v4674_v38  ;;  %v11791_v28 = vpack.c.bf16 %v4241_v29, %v4240_v17  ;;  %v9374_v3 = vpop.f32.mrb[12].mxu0  ;;  %v11793_v46 = vld [vmem:[#allocation2 + $0x28] sm:$0xff]  ;;  %v11859_v17 = vpop.permute.xlu1 %4169 }
 0x353   : > { %13243 = vst [vmem:[#allocation10_spill] sm:$0xff] %v11782_v8  ;;  %v5099_v54 = vor.u32 %v11780_v33, %v4683_v16  ;;  %4291 = vst.msk [vmem:[#allocation2 + $0x38] sm:$0xff] %vm224_vm0, %v11782_v8  ;;  %v4030_v2 = vmax.f32 %v9374_v3, 0.0  ;;  %v3885_v20 = vpop.f32.mrb[13].mxu0  ;;  %v11800_v48 = vld [vmem:[#allocation2 + $0x20] sm:$0xff]  ;;  %v4369_v63 = vrot.slane %v11793_v46, 7  ;;  %v11805_v15 = vsel %vm4652_vm8, %v11739_v26, %v4677_v1 }
 0x354   : > { %13244 = vst [vmem:[#allocation11_spill] sm:$0xff] %v11787_v41  ;;  %13245 = vst [vmem:[#allocation12_spill] sm:$0xff] %v11791_v28  ;;  %v11809_v61 = vsel %vm4652_vm8, %v4677_v1, %v11778_v36  ;;  %v4028_v34 = vmax.f32 %v3885_v20, 0.0  ;;  %v9375_v42 = vpop.f32.mrb[14].mxu0  ;;  %v4367_v55 = vrot.slane %v11800_v48, 7  ;;  %v4689_v12 = vshrl.u32 %v11800_v48, 16  ;;  %v11835_v13 = vpop.permute.xlu0 %4164 }
 0x355   : > { %4290 = vst.msk [vmem:[#allocation2 + $0x30] sm:$0xff] %vm224_vm0, %v11791_v28  ;;  %9443 = vmatpush3.bf16.msra.mxu1 %v10519_v40  ;;  %v4692_v16 = vshll.u32 %v11800_v48, 16  ;;  %v4246_v14 = vmul.f32 %v11716_v4, %v4030_v2  ;;  %v4031_v21 = vmax.f32 %v9375_v42, 0.0  ;;  %v3888_v23 = vpop.f32.mrb[15].mxu0  ;;  %v4698_v38 = vshrl.u32 %v11793_v46, 16 }
 0x356   : > { %9444 = vmatprep.subr.bf16.mxu1 %v10520_v19  ;;  %v4701_v25 = vshll.u32 %v11793_v46, 16  ;;  %v4244_v37 = vmul.f32 %v11712_v56, %v4028_v34  ;;  %v4029_v40 = vmax.f32 %v3888_v23, 0.0  ;;  %v4368_v45 = vsel %vm4359_vm7, %v4365_v10, %v4367_v55 }
 0x357   : > { %v4370_v4 = vsel %vm4359_vm7, %v4367_v55, %v4369_v63  ;;  %v4247_v53 = vmul.f32 %v11722_v11, %v4031_v21  ;;  %v4691_v60 = vrot.slane %v4689_v12, 6  ;;  %v4694_v0 = vrot.slane %v4692_v16, 7 }
 0x358   : > { %9409 = vmatmul.mubr.msk.bf16.gmra.mrb[4].mxu1 %vm224_vm0, %v4368_v45  ;;  %v4700_v62 = vrot.slane %v4698_v38, 6  ;;  %v4245_v56 = vmul.f32 %v11714_v35, %v4029_v40  ;;  %v4703_v31 = vrot.slane %v4701_v25, 7  ;;  %v5093_v11 = vor.u32 %v11747_v59, %v4665_v6  ;;  %v11854_v35 = vld [vmem:[%s13195_s2 + $0x40] sm:$0xff]   ;;  %v11886_v45 = vpop.permute.xlu0 %4174 }
 0x359   : > { %9412 = vmatprep.mubr.msk.bf16.mxu1 %vm224_vm0, %v4370_v4  ;;  %9445 = vmatpush3.bf16.msra.mxu1 %v10520_v19  ;;  %v11847_v10 = vsel %vm5087_vm9, %v11747_v59, %v11787_v41  ;;  %v11849_v22 = vpack.c.bf16 %v4247_v53, %v4246_v14  ;;  %v4695_v5 = vor.u32 %v4694_v0, %v4691_v60  ;;  %v5101_v58 = vrot.slane %v4689_v12, 7 }
 0x35a   : > { %9446 = vmatprep.subr.bf16.mxu1 %v10521_v30  ;;  %v11857_v50 = vsel %vm5087_vm9, %v5095_v24, %v5099_v54  ;;  %v11861_v6 = vpack.c.bf16 %v4245_v56, %v4244_v37  ;;  %v9378_v29 = vpop.f32.mrb[16].mxu0  ;;  %v11863_v59 = vld [vmem:[#allocation2 + $0x38] sm:$0xff]  ;;  %v4704_v19 = vor.u32 %v4703_v31, %v4700_v62  ;;  %v11867_v1 = vsel %vm5087_vm9, %v11743_v39, %v5093_v11  ;;  %v11898_v31 = vpop.permute.xlu1 %4179 }
 0x35b   : > { %13246 = vst [vmem:[#allocation13_spill] sm:$0xff] %v11849_v22  ;;  %v11869_v3 = vrot.slane %v4698_v38, 7  ;;  %4293 = vst.msk [vmem:[#allocation2 + $0x48] sm:$0xff] %vm224_vm0, %v11849_v22  ;;  %v4034_v24 = vmax.f32 %v9378_v29, 0.0  ;;  %v3901_v54 = vpop.f32.mrb[17].mxu0  ;;  %v4373_v20 = vrot.slane %v11863_v59, 7  ;;  %v11876_v34 = vsel %vm4652_vm8, %v11778_v36, %v4695_v5 }
 0x35c   : > { %13247 = vst [vmem:[#allocation14_spill] sm:$0xff] %v11861_v6  ;;  %v4310_v2 = vld [vmem:[#allocation2 + $0x30] sm:$0xff]  ;;  %v4716_v42 = vshrl.u32 %v11863_v59, 16  ;;  %4292 = vst.msk [vmem:[#allocation2 + $0x40] sm:$0xff] %vm224_vm0, %v11861_v6  ;;  %v4032_v39 = vmax.f32 %v3901_v54, 0.0  ;;  %v9379_v55 = vpop.f32.mrb[18].mxu0  ;;  %v11882_v14 = vsel %vm4652_vm8, %v4695_v5, %v4704_v19 }
 0x35d   : > { %v4371_v12 = vrot.slane %v4310_v2, 7  ;;  %9447 = vmatpush3.bf16.msra.mxu1 %v10521_v30  ;;  %v4707_v21 = vshrl.u32 %v4310_v2, 16  ;;  %v4250_v23 = vmul.f32 %v11754_v18, %v4034_v24  ;;  %v4035_v38 = vmax.f32 %v9379_v55, 0.0  ;;  %v3904_v37 = vpop.f32.mrb[19].mxu0 }
 0x35e   : > { %9484 = vmatprep.subr.bf16.mxu1 %v11854_v35  ;;  %v4710_v36 = vshll.u32 %v4310_v2, 16  ;;  %v4718_v40 = vrot.slane %v4716_v42, 6  ;;  %v4248_v4 = vmul.f32 %v11732_v57, %v4032_v39  ;;  %v4033_v53 = vmax.f32 %v3904_v37, 0.0 }
 0x35f   : > { %v4372_v30 = vsel %vm4359_vm7, %v4369_v63, %v4371_v12  ;;  %v4374_v60 = vsel %vm4359_vm7, %v4371_v12, %v4373_v20  ;;  %v4251_v18 = vmul.f32 %v11763_v49, %v4035_v38  ;;  %v4709_v0 = vrot.slane %v4707_v21, 6  ;;  %v4185_v38 = vpop.permute.xlu0 %4184 }
 0x360   : > { %9413 = vmatmul.mubr.msk.bf16.gmra.mrb[8].mxu1 %vm224_vm0, %v4372_v30  ;;  %v4712_v62 = vrot.slane %v4710_v36, 7  ;;  %v4719_v56 = vshll.u32 %v11863_v59, 16  ;;  %v4249_v57 = vmul.f32 %v11735_v32, %v4033_v53  ;;  %v5102_v63 = vor.u32 %v5101_v58, %v4692_v16 }
 0x361   : > { %9416 = vmatprep.mubr.msk.bf16.mxu1 %vm224_vm0, %v4374_v60  ;;  %v5105_v11 = vor.u32 %v11869_v3, %v4701_v25  ;;  %v5107_v49 = vrot.slane %v4707_v21, 7  ;;  %v11907_v5 = vpack.c.bf16 %v4251_v18, %v4250_v23  ;;  %v11909_v54 = vrot.slane %v4716_v42, 7  ;;  %v4190_v18 = vpop.permute.xlu1 %4189 }
 0x362   : > { %v4713_v29 = vor.u32 %v4712_v62, %v4709_v0  ;;  %v4721_v24 = vrot.slane %v4719_v56, 7  ;;  %v11911_v2 = vpack.c.bf16 %v4249_v57, %v4248_v4  ;;  %v9382_v39 = vpop.f32.mrb[20].mxu0  ;;  %v11913_v32 = vld [vmem:[#allocation2 + $0x48] sm:$0xff]  ;;  %v11917_v48 = vsel %vm5087_vm9, %v11780_v33, %v5102_v63 }
 0x363   : > { %13248 = vst [vmem:[#allocation15_spill] sm:$0xff] %v11907_v5  ;;  %v11920_v46 = vsel %vm5087_vm9, %v5101_v58, %v5105_v11  ;;  %v5108_v16 = vor.u32 %v5107_v49, %v4710_v36  ;;  %4295 = vst.msk [vmem:[#allocation2 + $0x58] sm:$0xff] %vm224_vm0, %v11907_v5  ;;  %v4038_v25 = vmax.f32 %v9382_v39, 0.0  ;;  %v3917_v55 = vpop.f32.mrb[21].mxu0  ;;  %v11924_v42 = vld [vmem:[#allocation2 + $0x40] sm:$0xff]  ;;  %v4377_v12 = vrot.slane %v11913_v32, 7 }
 0x364   : > { %13249 = vst [vmem:[#allocation16_spill] sm:$0xff] %v11911_v2  ;;  %v11928_v21 = vsel %vm4652_vm8, %v4704_v19, %v4713_v29  ;;  %v4722_v23 = vor.u32 %v4721_v24, %v4718_v40  ;;  %4294 = vst.msk [vmem:[#allocation2 + $0x50] sm:$0xff] %vm224_vm0, %v11911_v2  ;;  %v4036_v33 = vmax.f32 %v3917_v55, 0.0  ;;  %v9383_v58 = vpop.f32.mrb[22].mxu0  ;;  %v4375_v37 = vrot.slane %v11924_v42, 7 }
 0x365   : > { %v4725_v36 = vshrl.u32 %v11924_v42, 16  ;;  %v13199_v4 = vshll.u32 %v11924_v42, 16  ;;  %v4254_v53 = vmul.f32 %v11835_v13, %v4038_v25  ;;  %v4039_v30 = vmax.f32 %v9383_v58, 0.0  ;;  %v3920_v60 = vpop.f32.mrb[23].mxu0  ;;  %v11963_v58 = vpop.permute.xlu0 %4194 }
 0x366   : > { %v11937_v19 = vsel %vm4652_vm8, %v4713_v29, %v4722_v23  ;;  %v4734_v40 = vshrl.u32 %v11913_v32, 16  ;;  %v4252_v0 = vmul.f32 %v11789_v27, %v4036_v33  ;;  %v4037_v62 = vmax.f32 %v3920_v60, 0.0 }
 0x367   : > { %v4376_v57 = vsel %vm4359_vm7, %v4373_v20, %v4375_v37  ;;  %v4378_v63 = vsel %vm4359_vm7, %v4375_v37, %v4377_v12  ;;  %v4255_v13 = vmul.f32 %v11859_v17, %v4039_v30  ;;  %v4727_v11 = vrot.slane %v4725_v36, 6 }
 0x368   : > { %9417 = vmatmul.mubr.msk.bf16.gmra.mrb[12].mxu1 %vm224_vm0, %v4376_v57  ;;  %v4730_v29 = vrot.slane %v13199_v4, 7  ;;  %v4736_v24 = vrot.slane %v4734_v40, 6  ;;  %v4253_v27 = vmul.f32 %v11811_v44, %v4037_v62  ;;  %v4737_v59 = vshll.u32 %v11913_v32, 16 }
 0x369   : > { %9420 = vmatprep.mubr.msk.bf16.mxu1 %vm224_vm0, %v4378_v63  ;;  %v11956_v20 = vsel %vm5087_vm9, %v11869_v3, %v5108_v16  ;;  %v5111_v39 = vor.u32 %v11909_v54, %v4719_v56  ;;  %v11959_v17 = vpack.c.bf16 %v4255_v13, %v4254_v53  ;;  %v5113_v33 = vrot.slane %v4725_v36, 7  ;;  %v11983_v63 = vpop.permute.xlu1 %4199 }
 0x36a   : > { %v4731_v55 = vor.u32 %v4730_v29, %v4727_v11  ;;  %v11965_v44 = vpack.c.bf16 %v4253_v27, %v4252_v0  ;;  %v9386_v37 = vpop.f32.mrb[24].mxu0  ;;  %v11967_v30 = vld [vmem:[#allocation2 + $0x58] sm:$0xff]  ;;  %v4739_v60 = vrot.slane %v4737_v59, 7  ;;  %v11972_v16 = vrot.slane %v4734_v40, 7 }
 0x36b   : > { %13250 = vst [vmem:[#allocation17_spill] sm:$0xff] %v11959_v17  ;;  %v11970_v3 = vsel %vm5087_vm9, %v5107_v49, %v5111_v39  ;;  %4297 = vst.msk [vmem:[#allocation2 + $0x68] sm:$0xff] %vm224_vm0, %v11959_v17  ;;  %v4042_v56 = vmax.f32 %v9386_v37, 0.0  ;;  %v3933_v53 = vpop.f32.mrb[25].mxu0  ;;  %v11976_v62 = vld [vmem:[#allocation2 + $0x50] sm:$0xff]  ;;  %v4752_v57 = vshrl.u32 %v11967_v30, 16 }
 0x36c   : > { %13251 = vst [vmem:[#allocation18_spill] sm:$0xff] %v11965_v44  ;;  %v11980_v0 = vsel %vm4652_vm8, %v4722_v23, %v4731_v55  ;;  %4296 = vst.msk [vmem:[#allocation2 + $0x60] sm:$0xff] %vm224_vm0, %v11965_v44  ;;  %v4040_v49 = vmax.f32 %v3933_v53, 0.0  ;;  %v9387_v40 = vpop.f32.mrb[26].mxu0  ;;  %v4379_v13 = vrot.slane %v11976_v62, 7  ;;  %v4740_v11 = vor.u32 %v4739_v60, %v4736_v24 }
 0x36d   : > { %v4743_v29 = vshrl.u32 %v11976_v62, 16  ;;  %v4258_v27 = vmul.f32 %v4185_v38, %v4042_v56  ;;  %v4043_v39 = vmax.f32 %v9387_v40, 0.0  ;;  %v3936_v37 = vpop.f32.mrb[27].mxu0  ;;  %v4746_v23 = vshll.u32 %v11976_v62, 16  ;;  %v4205_v62 = vpop.permute.xlu0 %4204 }
 0x36e   : > { %v4754_v25 = vrot.slane %v4752_v57, 6  ;;  %v4256_v4 = vmul.f32 %v11886_v45, %v4040_v49  ;;  %v4041_v36 = vmax.f32 %v3936_v37, 0.0  ;;  %v4380_v17 = vsel %vm4359_vm7, %v4377_v12, %v4379_v13 }
 0x36f   : > { %v13252_v53 = vrot.slane %v11967_v30, 7  ;;  %v4259_v24 = vmul.f32 %v4190_v18, %v4043_v39  ;;  %v11999_v38 = vsel %vm4652_vm8, %v4731_v55, %v4740_v11  ;;  %v4745_v60 = vrot.slane %v4743_v29, 6  ;;  %v4210_v39 = vpop.permute.xlu1 %4209 }
 0x370   : > { %9421 = vmatmul.mubr.msk.bf16.gmra.mrb[16].mxu1 %vm224_vm0, %v4380_v17  ;;  %v4748_v56 = vrot.slane %v4746_v23, 7  ;;  %v4257_v45 = vmul.f32 %v11898_v31, %v4041_v36  ;;  %v4755_v32 = vshll.u32 %v11967_v30, 16  ;;  %v13253_v12 = vshll.u32 %v11924_v42, 16 }
 0x371   : > { %v4382_v44 = vsel %vm4359_vm7, %v4379_v13, %v13252_v53  ;;  %v5117_v40 = vor.u32 %v11972_v16, %v4737_v59  ;;  %v12007_v18 = vpack.c.bf16 %v4259_v24, %v4258_v27  ;;  %v5119_v13 = vrot.slane %v4743_v29, 7 }
 0x372   : > { %9424 = vmatprep.mubr.msk.bf16.mxu1 %vm224_vm0, %v4382_v44  ;;  %v5114_v49 = vor.u32 %v5113_v33, %v13253_v12  ;;  %v4749_v17 = vor.u32 %v4748_v56, %v4745_v60  ;;  %v12009_v55 = vrot.slane %v4752_v57, 7  ;;  %v12011_v37 = vpack.c.bf16 %v4257_v45, %v4256_v4  ;;  %v9390_v53 = vpop.f32.mrb[28].mxu0  ;;  %v12013_v31 = vld [vmem:[#allocation2 + $0x68] sm:$0xff] }
 0x373   : > { %13254 = vst [vmem:[#allocation19_spill] sm:$0xff] %v12007_v18  ;;  %v4757_v44 = vrot.slane %v4755_v32, 7  ;;  %v12020_v42 = vsel %vm5087_vm9, %v5113_v33, %v5117_v40  ;;  %4299 = vst.msk [vmem:[#allocation2 + $0x78] sm:$0xff] %vm224_vm0, %v12007_v18  ;;  %v4046_v59 = vmax.f32 %v9390_v53, 0.0  ;;  %v3949_v57 = vpop.f32.mrb[29].mxu0  ;;  %v12024_v29 = vld [vmem:[#allocation2 + $0x60] sm:$0xff] }
 0x374   : > { %13255 = vst [vmem:[#allocation20_spill] sm:$0xff] %v12011_v37  ;;  %v12017_v36 = vsel %vm5087_vm9, %v11909_v54, %v5114_v49  ;;  %v12028_v27 = vsel %vm4652_vm8, %v4740_v11, %v4749_v17  ;;  %v4770_v24 = vshrl.u32 %v12013_v31, 16  ;;  %4298 = vst.msk [vmem:[#allocation2 + $0x70] sm:$0xff] %vm224_vm0, %v12011_v37  ;;  %v4044_v54 = vmax.f32 %v3949_v57, 0.0  ;;  %v9391_v33 = vpop.f32.mrb[30].mxu0  ;;  %v4215_v11 = vpop.permute.xlu0 %4214 }
 0x375   : > { %v4383_v60 = vrot.slane %v12024_v29, 7  ;;  %v4758_v56 = vor.u32 %v4757_v44, %v4754_v25  ;;  %v4761_v45 = vshrl.u32 %v12024_v29, 16  ;;  %v4262_v12 = vmul.f32 %v4205_v62, %v4046_v59  ;;  %v3952_v40 = vpop.f32.mrb[31].mxu0 }
 0x376   : > { %v4047_v49 = vmax.f32 %v9391_v33, 0.0  ;;  %v4764_v53 = vshll.u32 %v12024_v29, 16  ;;  %v4772_v4 = vrot.slane %v4770_v24, 6  ;;  %v4260_v18 = vmul.f32 %v11963_v58, %v4044_v54  ;;  %v4220_v33 = vpop.permute.xlu1 %4219 }
 0x377   : > { %v4045_v5 = vmax.f32 %v3952_v40, 0.0  ;;  %v13256_v2 = vrot.slane %v11967_v30, 7  ;;  %v13257_v37 = vrot.slane %v12013_v31, 7  ;;  %v12045_v62 = vsel %vm4652_vm8, %v4749_v17, %v4758_v56 }
 0x378   : > { %v4263_v44 = vmul.f32 %v4210_v39, %v4047_v49  ;;  %v4763_v59 = vrot.slane %v4761_v45, 6  ;;  %v4766_v29 = vrot.slane %v4764_v53, 7  ;;  %v4773_v30 = vshll.u32 %v12013_v31, 16 }
 0x379   : > { %v4384_v57 = vsel %vm4359_vm7, %v13256_v2, %v4383_v60  ;;  %v4386_v25 = vsel %vm4359_vm7, %v4383_v60, %v13257_v37  ;;  %v4261_v58 = vmul.f32 %v11983_v63, %v4045_v5  ;;  %v5120_v2 = vor.u32 %v5119_v13, %v4746_v23 }
 0x37a   : > { %9425 = vmatmul.mubr.msk.bf16.gmra.mrb[20].mxu1 %vm224_vm0, %v4384_v57  ;;  %v5123_v54 = vor.u32 %v12009_v55, %v4755_v32  ;;  %v12051_v40 = vpack.c.bf16 %v4263_v44, %v4262_v12  ;;  %v4767_v39 = vor.u32 %v4766_v29, %v4763_v59  ;;  %v5125_v37 = vrot.slane %v4761_v45, 7  ;;  %v9394_v49 = vpop.f32.mrb[32].mxu0  ;;  %v12057_v57 = vld [vmem:[#allocation2 + $0x78] sm:$0xff]  ;;  %v4230_v6 = vpop.permute.xlu1 %4229 }
 0x37b   : > { %9428 = vmatprep.mubr.msk.bf16.mxu1 %vm224_vm0, %v4386_v25  ;;  %v12053_v60 = vrot.slane %v4770_v24, 7  ;;  %v12055_v17 = vpack.c.bf16 %v4261_v58, %v4260_v18  ;;  %v4775_v22 = vrot.slane %v4773_v30, 7  ;;  %v12061_v5 = vsel %vm5087_vm9, %v11972_v16, %v5120_v2  ;;  %v3965_v32 = vpop.f32.mrb[33].mxu0  ;;  %v4318_v24 = vld [vmem:[#allocation2 + $0x70] sm:$0xff]  ;;  %v4225_v25 = vpop.permute.xlu0 %4224 }
 0x37c   : > { %13258 = vst [vmem:[#allocation21_spill] sm:$0xff] %v12051_v40  ;;  %v12064_v63 = vsel %vm5087_vm9, %v5119_v13, %v5123_v54  ;;  %4301 = vst.msk [vmem:[#allocation2 + $0x88] sm:$0xff] %vm224_vm0, %v12051_v40  ;;  %v4050_v23 = vmax.f32 %v9394_v49, 0.0  ;;  %v4389_v18 = vrot.slane %v12057_v57, 7  ;;  %v12070_v45 = vsel %vm4652_vm8, %v4758_v56, %v4767_v39  ;;  %v9395_v13 = vpop.f32.mrb[34].mxu0 }
 0x37d   : > { %13259 = vst [vmem:[#allocation22_spill] sm:$0xff] %v12055_v17  ;;  %v4788_v12 = vshrl.u32 %v12057_v57, 16  ;;  %4300 = vst.msk [vmem:[#allocation2 + $0x80] sm:$0xff] %vm224_vm0, %v12055_v17  ;;  %v4048_v16 = vmax.f32 %v3965_v32, 0.0  ;;  %v4387_v44 = vrot.slane %v4318_v24, 7  ;;  %v4776_v59 = vor.u32 %v4775_v22, %v4772_v4  ;;  %v3968_v54 = vpop.f32.mrb[35].mxu0 }
 0x37e   : > { %v4779_v29 = vshrl.u32 %v4318_v24, 16  ;;  %v4266_v58 = vmul.f32 %v4225_v25, %v4050_v23  ;;  %v4051_v2 = vmax.f32 %v9395_v13, 0.0  ;;  %v4782_v49 = vshll.u32 %v4318_v24, 16 }
 0x37f   : > { %v4790_v40 = vrot.slane %v4788_v12, 6  ;;  %v4264_v8 = vmul.f32 %v4215_v11, %v4048_v16  ;;  %v4049_v56 = vmax.f32 %v3968_v54, 0.0  ;;  %v13260_v28 = vrot.slane %v12013_v31, 7 }
 0x380   : > { %v4390_v43 = vsel %vm4359_vm7, %v4387_v44, %v4389_v18  ;;  %v4267_v17 = vmul.f32 %v4230_v6, %v4051_v2  ;;  %v12081_v22 = vsel %vm4652_vm8, %v4767_v39, %v4776_v59  ;;  %v4781_v4 = vrot.slane %v4779_v29, 6 }
 0x381   : > { %v4388_v7 = vsel %vm4359_vm7, %v13260_v28, %v4387_v44  ;;  %v4784_v23 = vrot.slane %v4782_v49, 7  ;;  %v4265_v32 = vmul.f32 %v4220_v33, %v4049_v56  ;;  %v4791_v11 = vshll.u32 %v12057_v57, 16 }
 0x382   : > { %9429 = vmatmul.mubr.msk.bf16.gmra.mrb[24].mxu1 %vm224_vm0, %v4388_v7  ;;  %v5126_v24 = vor.u32 %v5125_v37, %v4764_v53  ;;  %v5129_v31 = vor.u32 %v12053_v60, %v4773_v30  ;;  %v12086_v25 = vpack.c.bf16 %v4267_v17, %v4266_v58  ;;  %v5131_v16 = vrot.slane %v4779_v29, 7 }
 0x383   : > { %9432 = vmatprep.mubr.msk.bf16.mxu1 %vm224_vm0, %v4390_v43  ;;  %v4785_v28 = vor.u32 %v4784_v23, %v4781_v4  ;;  %v5134_v6 = vrot.slane %v4788_v12, 7  ;;  %v12088_v13 = vpack.c.bf16 %v4265_v32, %v4264_v8  ;;  %v4321_v7 = vld [vmem:[#allocation2 + $0x88] sm:$0xff]  ;;  %v4793_v39 = vrot.slane %v4791_v11, 7 }
 0x384   : > { %13261 = vst [vmem:[#allocation23_spill] sm:$0xff] %v12086_v25  ;;  %v12092_v44 = vsel %vm5087_vm9, %v12009_v55, %v5126_v24  ;;  %v12095_v43 = vsel %vm5087_vm9, %v5125_v37, %v5129_v31  ;;  %4303 = vst.msk [vmem:[#allocation2 + $0x98] sm:$0xff] %vm224_vm0, %v12086_v25  ;;  %v4320_v53 = vld [vmem:[#allocation2 + $0x80] sm:$0xff]  ;;  %v4393_v33 = vrot.slane %v4321_v7, 7  ;;  %v4806_v17 = vshrl.u32 %v4321_v7, 16  ;;  %v12230_v25 = vld [vmem:[#allocation2 + $0x70] sm:$0xff] }
 0x385   : > { %13262 = vst [vmem:[#allocation24_spill] sm:$0xff] %v12088_v13  ;;  %v12100_v30 = vsel %vm4652_vm8, %v4776_v59, %v4785_v28  ;;  %v4809_v8 = vshll.u32 %v4321_v7, 16  ;;  %4302 = vst.msk [vmem:[#allocation2 + $0x90] sm:$0xff] %vm224_vm0, %v12088_v13  ;;  %v4391_v57 = vrot.slane %v4320_v53, 7  ;;  %v4794_v12 = vor.u32 %v4793_v39, %v4790_v40 }
 0x386   : > { %v4797_v55 = vshrl.u32 %v4320_v53, 16  ;;  %v4800_v29 = vshll.u32 %v4320_v53, 16  ;;  %v4808_v58 = vrot.slane %v4806_v17, 6  ;;  %v5132_v2 = vor.u32 %v5131_v16, %v4782_v49 }
 0x387   : > { %v4811_v37 = vrot.slane %v4809_v8, 7  ;;  %v5135_v54 = vor.u32 %v5134_v6, %v4791_v11  ;;  %v4392_v56 = vsel %vm4359_vm7, %v4389_v18, %v4391_v57  ;;  %v4394_v4 = vsel %vm4359_vm7, %v4391_v57, %v4393_v33 }
 0x388   : > { %v12107_v59 = vsel %vm4652_vm8, %v4785_v28, %v4794_v12  ;;  %v4799_v23 = vrot.slane %v4797_v55, 6  ;;  %v4802_v32 = vrot.slane %v4800_v29, 7  ;;  %v12112_v40 = vsel %vm5087_vm9, %v12053_v60, %v5132_v2 }
 0x389   : > { %v4812_v24 = vor.u32 %v4811_v37, %v4808_v58  ;;  %v12115_v31 = vsel %vm5087_vm9, %v5131_v16, %v5135_v54  ;;  %v5137_v18 = vrot.slane %v4797_v55, 7  ;;  %v12118_v49 = vrot.slane %v4806_v17, 7 }
 0x38a   : > { %9433 = vmatmul.mubr.msk.bf16.gmra.mrb[28].mxu1 %vm224_vm0, %v4392_v56  ;;  %v4803_v11 = vor.u32 %v4802_v32, %v4799_v23  ;;  %v13264_v17 = vor.u32 %v11795_v51, %v11761_v52  ;;  %v10523_v52 = vld [vmem:[%s13195_s2 + $0x48] sm:$0xff]   ;;  %v6208_v51 = vld [vmem:[#allocation2 + $0x18] sm:$0xff]  ;;  %v12158_v56 = vld [vmem:[#allocation2 + $0x20] sm:$0xff] }
 0x38b   : > { %9436 = vmatprep.mubr.msk.bf16.mxu1 %vm224_vm0, %v4394_v4  ;;  %13263 = vst [vmem:[#allocation25_spill] sm:$0xff] %v12118_v49  ;;  %v5138_v28 = vor.u32 %v5137_v18, %v4800_v29  ;;  %v5141_v7 = vor.u32 %v12118_v49, %v4809_v8  ;;  %13266 = vst [vmem:[#allocation27_spill] sm:$0xff] %v12158_v56  ;;  %v13214_v4 = vshll.u32 %v12158_v56, 16  ;;  %v12172_v23 = vld [vmem:[%s13195_s2 + $0x60] sm:$0xff]   ;;  %v12174_v32 = vld [vmem:[#allocation2 + $0x28] sm:$0xff] }
 0x38c   : > { %v4322_v39 = vld [vmem:[#allocation2 + $0x90] sm:$0x7f]  ;;  %v12122_v53 = vsel %vm4652_vm8, %v4794_v12, %v4803_v11  ;;  %v12125_v57 = vsel %vm4652_vm8, %v4803_v11, %v4812_v24  ;;  %v4669_v55 = vsel %vm4652_vm8, %v13264_v17, %v11739_v26  ;;  %v12187_v11 = vld [vmem:[#allocation2 + $0x38] sm:$0xff]  ;;  %v12199_v17 = vld [vmem:[#allocation2 + $0x88] sm:$0xff] }
 0x38d   : > { %v4395_v60 = vrot.slane %v4322_v39, 7  ;;  %v4815_v58 = vshrl.u32 %v4322_v39, 16  ;;  %v4818_v16 = vshll.u32 %v4322_v39, 16  ;;  %v12128_v37 = vsel %vm5087_vm9, %v5134_v6, %v5138_v28  ;;  %v10524_v26 = vld [vmem:[%s13195_s2 + $0x50] sm:$0xff]   ;;  %13267 = vst [vmem:[#allocation28_spill] sm:$0xff] %v12187_v11  ;;  %v12189_v28 = vld [vmem:[#allocation2 + $0x40] sm:$0xff] }
 0x38e   : > { %v12136_v8 = vsel %vm5087_vm9, %v5137_v18, %v5141_v7  ;;  %v13225_v13 = vshrl.u32 %v12199_v17, 16 }
 0x38f   : > { %13265 = vst [vmem:[#allocation26_spill] sm:$0xff] %v12136_v8  ;;  %v4396_v12 = vsel %vm4359_vm7, %v4393_v33, %v4395_v60  ;;  %v4817_v29 = vrot.slane %v4815_v58, 6  ;;  %v4820_v2 = vrot.slane %v4818_v16, 7  ;;  %v10525_v33 = vld [vmem:[%s13195_s2 + $0x58] sm:$0xff]   ;;  %v6246_v60 = vshrl.u32 %v6208_v51, 16  ;;  %v12197_v16 = vld [vmem:[#allocation2 + $0x48] sm:$0xff] }
 0x391   : > { %v4821_v54 = vor.u32 %v4820_v2, %v4817_v29  ;;  %v13219_v29 = vshll.u32 %v12199_v17, 16  ;;  %v7170_v2 = vrot.slane %v12174_v32, 1 }
 0x392   : > { %9437 = vmatmul.mubr.msk.bf16.gmra.mrb[32].mxu1 %vm224_vm0, %v4396_v12 }
 0x393   : > { %9448 = vmatprep.mubr.msk.bf16.mxu1 %vm224_vm0, %v4669_v55  ;;  %v12142_v6 = vsel %vm4652_vm8, %v4812_v24, %v4821_v54  ;;  %v12203_v55 = vrot.slane %v13214_v4, 1  ;;  %v12208_v54 = vld [vmem:[#allocation2 + $0x50] sm:$0xff]  ;;  %v12217_v4 = vld [vmem:[#allocation2 + $0x60] sm:$0xff] }
 0x39a   : > { %9449 = vmatmul.mubr.msk.bf16.vlgmr.msra.gmra.mrb[0].mxu1 %vm224_vm0, %v11805_v15  ;;  %v12162_v15 = vld [vmem:[#allocation2 + $0x90] sm:$0xff] }
 0x39b   : > { %9452 = vmatprep.mubr.msk.bf16.mxu1 %vm224_vm0, %v11809_v61  ;;  %9485 = vmatpush3.bf16.msra.mxu1 %v11854_v35  ;;  %v12164_v61 = vld [vmem:[#allocation2 + $0x98] sm:$0xff]  ;;  %v6242_v35 = vshll.u32 %v6208_v51, 16  ;;  %v12179_v24 = vshrl.u32 %v12162_v15, 16  ;;  %v12182_v18 = vshll.u32 %v12162_v15, 16 }
 0x39c   : > { %9486 = vmatprep.subr.bf16.mxu1 %v10523_v52  ;;  %v12192_v7 = vshll.u32 %v12164_v61, 16  ;;  %v12243_v51 = vld [vmem:[#allocation2 + $0x78] sm:$0xff] }
 0x39d   : > { %v12194_v39 = vrot.slane %v6242_v35, 1  ;;  %v12228_v35 = vld [vmem:[#allocation2 + $0x68] sm:$0xff]  ;;  %v6364_v12 = vrot.slane %v12182_v18, 1 }
 0x39f   : > { %9487 = vmatpush3.bf16.msra.mxu1 %v10523_v52  ;;  %13268 = vst [vmem:[#allocation29_spill] sm:$0xff] %v12194_v39  ;;  %v12210_v52 = vld [vmem:[#allocation2 + $0x58] sm:$0xff]  ;;  %v6368_v9 = vor.u32 %v6364_v12, %v12179_v24 }
 0x3a0   : > { %9488 = vmatprep.subr.bf16.mxu1 %v10524_v26 }
 0x3a2   : > { %9453 = vmatmul.mubr.msk.bf16.gmra.mrb[4].mxu1 %vm224_vm0, %v11876_v34  ;;  %v12176_v34 = vld [vmem:[#allocation2 + $0x30] sm:$0xff] }
 0x3a3   : > { %9456 = vmatprep.mubr.msk.bf16.mxu1 %vm224_vm0, %v11882_v14  ;;  %9489 = vmatpush3.bf16.msra.mxu1 %v10524_v26  ;;  %v12185_v14 = vshrl.u32 %v12164_v61, 16  ;;  %v6372_v26 = vrot.slane %v12192_v7, 1  ;;  %v7172_v47 = vrot.slane %v12176_v34, 1 }
 0x3a4   : > { %9490 = vmatprep.subr.bf16.mxu1 %v10525_v33 }
 0x3a5   : > { %v12254_v41 = vor.u32 %v6372_v26, %v12185_v14  ;;  %v12260_v49 = vsel %vm472_vm1, %v6368_v9, %v6372_v26  ;;  %v13274_v9 = vshrl.u32 %v12174_v32, 16  ;;  %v12296_v58 = vsel %vm1125_vm2, %v7170_v2, %v7172_v47 }
 0x3a6   : > { %13271 = vst [vmem:[#allocation32_spill] sm:$0xff] %v12260_v49  ;;  %13276 = vst [vmem:[#allocation36_spill] sm:$0xff] %v12296_v58  ;;  %v7194_v58 = vrot.slane %v12199_v17, 1 }
 0x3a7   : > { %9491 = vmatpush3.bf16.msra.mxu1 %v10525_v33  ;;  %13270 = vst [vmem:[#allocation31_spill] sm:$0xff] %v12254_v41  ;;  %v7516_v26 = vrot.slane %v13274_v9, 1  ;;  %v7176_v41 = vrot.slane %v12189_v28, 1 }
 0x3a8   : > { %9528 = vmatprep.subr.bf16.mxu1 %v12172_v23 }
 0x3aa   : > { %9457 = vmatmul.mubr.msk.bf16.gmra.mrb[8].mxu1 %vm224_vm0, %v11928_v21  ;;  %v12239_v21 = vrot.slane %v13219_v29, 1  ;;  %v12251_v29 = vld [vmem:[#allocation2 + $0x80] sm:$0xff] }
 0x3ab   : > { %9460 = vmatprep.mubr.msk.bf16.mxu1 %vm224_vm0, %v11937_v19  ;;  %v6706_v19 = vor.u32 %v6246_v60, %v12194_v39  ;;  %v7174_v39 = vrot.slane %v12187_v11, 1 }
 0x3ac   : > { %13269 = vst [vmem:[#allocation30_spill] sm:$0xff] %v12239_v21  ;;  %v6360_v33 = vor.u32 %v13225_v13, %v12239_v21  ;;  %v12274_v13 = vld [vmem:[#allocation2 + $0xa0] sm:$0xff]  ;;  %v12311_v21 = vld [vmem:[#allocation2 + $0x18] sm:$0xfe] }
 0x3ad   : > { %v12264_v60 = vsel %vm472_vm1, %v6706_v19, %v12203_v55  ;;  %v13228_v19 = vrot.slane %v12158_v56, 1  ;;  %v12299_v49 = vsel %vm1125_vm2, %v7172_v47, %v7174_v39  ;;  %13280 = vst [vmem:[#allocation40_spill] sm:$0xff] %v12311_v21  ;;  %v7188_v47 = vrot.slane %v12230_v25, 1 }
 0x3ae   : > { %13272 = vst [vmem:[#allocation33_spill] sm:$0xff] %v12264_v60  ;;  %v12272_v8 = vsel %vm472_vm1, %v6360_v33, %v6364_v12  ;;  %13277 = vst [vmem:[#allocation37_spill] sm:$0xff] %v12299_v49  ;;  %v7182_v33 = vrot.slane %v12210_v52, 1 }
 0x3af   : > { %13273 = vst [vmem:[#allocation34_spill] sm:$0xff] %v12272_v8  ;;  %v12292_v9 = vsel %vm1125_vm2, %v13228_v19, %v7170_v2  ;;  %v12302_v8 = vsel %vm1125_vm2, %v7174_v39, %v7176_v41  ;;  %v7184_v19 = vrot.slane %v12217_v4, 1  ;;  %v7190_v39 = vrot.slane %v12243_v51, 1 }
 0x3b0   : > { %13275 = vst [vmem:[#allocation35_spill] sm:$0xff] %v12292_v9  ;;  %13278 = vst [vmem:[#allocation38_spill] sm:$0xff] %v12302_v8  ;;  %v7186_v9 = vrot.slane %v12228_v35, 1  ;;  %v7192_v8 = vrot.slane %v12251_v29, 1 }
 0x3b2   : > { %9461 = vmatmul.mubr.msk.bf16.gmra.mrb[12].mxu1 %vm224_vm0, %v11980_v0  ;;  %v7178_v0 = vrot.slane %v12197_v16, 1  ;;  %v12326_v49 = vsel %vm1125_vm2, %v7184_v19, %v7186_v9  ;;  %v12336_v60 = vsel %vm1125_vm2, %v7190_v39, %v7192_v8 }
 0x3b3   : > { %9464 = vmatprep.mubr.msk.bf16.mxu1 %vm224_vm0, %v11999_v38  ;;  %v7180_v38 = vrot.slane %v12208_v54, 1  ;;  %13284 = vst [vmem:[#allocation44_spill] sm:$0xff] %v12326_v49  ;;  %13287 = vst [vmem:[#allocation47_spill] sm:$0xff] %v12336_v60  ;;  %v7505_v49 = vshrl.u32 %v12311_v21, 16 }
 0x3b4   : > { %v12306_v12 = vsel %vm1125_vm2, %v7176_v41, %v7178_v0 }
 0x3b5   : > { %13279 = vst [vmem:[#allocation39_spill] sm:$0xff] %v12306_v12  ;;  %v12314_v2 = vsel %vm1125_vm2, %v7178_v0, %v7180_v38  ;;  %v12320_v41 = vsel %vm1125_vm2, %v7180_v38, %v7182_v33  ;;  %v12323_v12 = vsel %vm1125_vm2, %v7182_v33, %v7184_v19  ;;  %v12330_v0 = vsel %vm1125_vm2, %v7186_v9, %v7188_v47 }
 0x3b6   : > { %13281 = vst [vmem:[#allocation41_spill] sm:$0xff] %v12314_v2  ;;  %13282 = vst [vmem:[#allocation42_spill] sm:$0xff] %v12320_v41  ;;  %v12333_v2 = vsel %vm1125_vm2, %v7188_v47, %v7190_v39  ;;  %v7196_v38 = vrot.slane %v12162_v15, 1  ;;  %v12340_v41 = vsel %vm1125_vm2, %v7192_v8, %v7194_v58  ;;  %v7198_v33 = vrot.slane %v12164_v61, 1 }
 0x3b7   : > { %13283 = vst [vmem:[#allocation43_spill] sm:$0xff] %v12323_v12  ;;  %13285 = vst [vmem:[#allocation45_spill] sm:$0xff] %v12330_v0  ;;  %v13234_v19 = vrot.slane %v12274_v13, 1  ;;  %v7508_v47 = vshll.u32 %v12311_v21, 16  ;;  %v13290_v39 = vshrl.u32 %v12158_v56, 16  ;;  %v13291_v8 = vshll.u32 %v12158_v56, 16 }
 0x3b8   : > { %13286 = vst [vmem:[#allocation46_spill] sm:$0xff] %v12333_v2  ;;  %13288 = vst [vmem:[#allocation48_spill] sm:$0xff] %v12340_v41  ;;  %v12348_v9 = vsel %vm1125_vm2, %v7194_v58, %v7196_v38  ;;  %v12358_v61 = vsel %vm1125_vm2, %v7196_v38, %v7198_v33  ;;  %v7507_v58 = vrot.slane %v7505_v49, 1  ;;  %v13295_v0 = vshrl.u32 %v12176_v34, 16 }
 0x3b9   : > { %13289 = vst [vmem:[#allocation49_spill] sm:$0xff] %v12348_v9  ;;  %v7512_v15 = vrot.slane %v13290_v39, 1  ;;  %v7513_v41 = vrot.slane %v13291_v8, 2  ;;  %13292 = vst [vmem:[#allocation50_spill] sm:$0xff] %v12358_v61  ;;  %v13294_v9 = vshll.u32 %v12174_v32, 16  ;;  %v7510_v2 = vrot.slane %v7508_v47, 2 }
 0x3ba   : > { %9465 = vmatmul.mubr.msk.bf16.gmra.mrb[16].mxu1 %vm224_vm0, %v12028_v27  ;;  %v12363_v27 = vsel %vm1125_vm2, %v7198_v33, %v13234_v19  ;;  %v7520_v8 = vrot.slane %v13295_v0, 1  ;;  %v13296_v12 = vshll.u32 %v12176_v34, 16  ;;  %v13297_v38 = vshrl.u32 %v12187_v11, 16 }
 0x3bb   : > { %9468 = vmatprep.mubr.msk.bf16.mxu1 %vm224_vm0, %v12045_v62  ;;  %13293 = vst [vmem:[#allocation51_spill] sm:$0xff] %v12363_v27  ;;  %v7517_v60 = vrot.slane %v13294_v9, 2  ;;  %v7514_v39 = vor.u32 %v7513_v41, %v7512_v15  ;;  %v13298_v56 = vshll.u32 %v12187_v11, 16  ;;  %v13299_v49 = vshrl.u32 %v12189_v28, 16 }
 0x3bc   : > { %v7521_v62 = vrot.slane %v13296_v12, 2  ;;  %v7524_v61 = vrot.slane %v13297_v38, 1  ;;  %v7511_v27 = vor.u32 %v7510_v2, %v7507_v58  ;;  %v13300_v41 = vshll.u32 %v12189_v28, 16 }
 0x3bd   : > { %v7518_v21 = vor.u32 %v7517_v60, %v7516_v26  ;;  %v7525_v33 = vrot.slane %v13298_v56, 2  ;;  %v7528_v19 = vrot.slane %v13299_v49, 1  ;;  %v13301_v0 = vshrl.u32 %v12197_v16, 16 }
 0x3be   : > { %v7522_v9 = vor.u32 %v7521_v62, %v7520_v8  ;;  %v7529_v47 = vrot.slane %v13300_v41, 2  ;;  %v13302_v26 = vshll.u32 %v12197_v16, 16  ;;  %v13303_v56 = vshrl.u32 %v12208_v54, 16 }
 0x3bf   : > { %v7532_v15 = vrot.slane %v13301_v0, 1  ;;  %v12382_v12 = vsel %vm1932_vm3, %v7514_v39, %v7518_v21  ;;  %v7526_v60 = vor.u32 %v7525_v33, %v7524_v61  ;;  %v12389_v49 = vsel %vm1932_vm3, %v7511_v27, %v7514_v39 }
 0x3c0   : > { %v7533_v38 = vrot.slane %v13302_v26, 2  ;;  %v7536_v11 = vrot.slane %v13303_v56, 1  ;;  %v12392_v2 = vsel %vm1932_vm3, %v7518_v21, %v7522_v9  ;;  %v7530_v58 = vor.u32 %v7529_v47, %v7528_v19 }
 0x3c1   : > { %v13304_v8 = vshll.u32 %v12208_v54, 16  ;;  %v12397_v41 = vsel %vm1932_vm3, %v7522_v9, %v7526_v60  ;;  %v13305_v33 = vshrl.u32 %v12210_v52, 16  ;;  %v13306_v26 = vshll.u32 %v12210_v52, 16 }
 0x3c2   : > { %v7534_v61 = vor.u32 %v7533_v38, %v7532_v15  ;;  %9469 = vmatmul.mubr.msk.bf16.gmra.mrb[20].mxu1 %vm224_vm0, %v12070_v45  ;;  %v12406_v21 = vsel %vm1932_vm3, %v7526_v60, %v7530_v58  ;;  %v13307_v27 = vshrl.u32 %v12217_v4, 16  ;;  %v13308_v9 = vshll.u32 %v12217_v4, 16 }
 0x3c3   : > { %v7537_v62 = vrot.slane %v13304_v8, 2  ;;  %v7540_v0 = vrot.slane %v13305_v33, 1  ;;  %v7541_v56 = vrot.slane %v13306_v26, 2  ;;  %9472 = vmatprep.mubr.msk.bf16.mxu1 %vm224_vm0, %v12081_v22  ;;  %v13310_v8 = vshrl.u32 %v12228_v35, 16 }
 0x3c4   : > { %v7544_v39 = vrot.slane %v13307_v27, 1  ;;  %v7545_v47 = vrot.slane %v13308_v9, 2  ;;  %v12415_v15 = vsel %vm1932_vm3, %v7530_v58, %v7534_v61  ;;  %v13311_v60 = vshll.u32 %v12228_v35, 16 }
 0x3c5   : > { %v7538_v19 = vor.u32 %v7537_v62, %v7536_v11  ;;  %13309 = vst [vmem:[#allocation52_spill] sm:$0xff] %v12415_v15  ;;  %v7542_v38 = vor.u32 %v7541_v56, %v7540_v0  ;;  %v7548_v45 = vrot.slane %v13310_v8, 1  ;;  %v13313_v26 = vshrl.u32 %v12230_v25, 16 }
 0x3c6   : > { %v7549_v33 = vrot.slane %v13311_v60, 2  ;;  %v7546_v62 = vor.u32 %v7545_v47, %v7544_v39  ;;  %v13314_v9 = vshll.u32 %v12230_v25, 16  ;;  %v13316_v56 = vshrl.u32 %v12243_v51, 16 }
 0x3c7   : > { %v12422_v11 = vsel %vm1932_vm3, %v7534_v61, %v7538_v19  ;;  %v7552_v27 = vrot.slane %v13313_v26, 1  ;;  %v12429_v58 = vsel %vm1932_vm3, %v7538_v19, %v7542_v38  ;;  %v13317_v15 = vshll.u32 %v12243_v51, 16 }
 0x3c8   : > { %13312 = vst [vmem:[#allocation53_spill] sm:$0xff] %v12422_v11  ;;  %v7553_v22 = vrot.slane %v13314_v9, 2  ;;  %13315 = vst [vmem:[#allocation54_spill] sm:$0xff] %v12429_v58  ;;  %v7550_v0 = vor.u32 %v7549_v33, %v7548_v45  ;;  %v7556_v8 = vrot.slane %v13316_v56, 1  ;;  %v12436_v61 = vsel %vm1932_vm3, %v7542_v38, %v7546_v62 }
 0x3c9   : > { %v7557_v60 = vrot.slane %v13317_v15, 2  ;;  %v13318_v47 = vshrl.u32 %v12251_v29, 16  ;;  %v13319_v11 = vshll.u32 %v12251_v29, 16  ;;  %v13320_v33 = vshrl.u32 %v12199_v17, 16 }
 0x3ca   : > { %v7554_v39 = vor.u32 %v7553_v22, %v7552_v27  ;;  %v12443_v19 = vsel %vm1932_vm3, %v7546_v62, %v7550_v0  ;;  %v13321_v58 = vshll.u32 %v12199_v17, 16  ;;  %v7568_v22 = vrot.slane %v12179_v24, 1  ;;  %9473 = vmatmul.mubr.msk.bf16.gmra.mrb[24].mxu1 %vm224_vm0, %v12100_v30 }
 0x3cb   : > { %v7560_v26 = vrot.slane %v13318_v47, 1  ;;  %v7561_v9 = vrot.slane %v13319_v11, 2  ;;  %v7558_v45 = vor.u32 %v7557_v60, %v7556_v8  ;;  %v7564_v56 = vrot.slane %v13320_v33, 1  ;;  %9476 = vmatprep.mubr.msk.bf16.mxu1 %vm224_vm0, %v12107_v59  ;;  %v10527_v59 = vld [vmem:[%s13195_s2 + $0x68] sm:$0xff]  }
 0x3cc   : > { %v7565_v15 = vrot.slane %v13321_v58, 2  ;;  %v12450_v38 = vsel %vm1932_vm3, %v7550_v0, %v7554_v39  ;;  %v7569_v47 = vrot.slane %v12182_v18, 2  ;;  %v7572_v8 = vrot.slane %v12185_v14, 1 }
 0x3cd   : > { %v7562_v27 = vor.u32 %v7561_v9, %v7560_v26  ;;  %v12455_v11 = vsel %vm1932_vm3, %v7554_v39, %v7558_v45  ;;  %v7573_v60 = vrot.slane %v12192_v7, 2  ;;  %v13322_v0 = vshrl.u32 %v12274_v13, 16 }
 0x3ce   : > { %v7566_v62 = vor.u32 %v7565_v15, %v7564_v56  ;;  %v7570_v58 = vor.u32 %v7569_v47, %v7568_v22  ;;  %v13323_v9 = vshll.u32 %v12274_v13, 16 }
 0x3cf   : > { %v12462_v17 = vsel %vm1932_vm3, %v7558_v45, %v7562_v27  ;;  %v7576_v26 = vrot.slane %v13322_v0, 1  ;;  %v7574_v56 = vor.u32 %v7573_v60, %v7572_v8  ;;  %v13325_v8 = vld [vmem:[#allocation25_spill] sm:$0xff] }
 0x3d0   : > { %v7577_v33 = vrot.slane %v13323_v9, 2  ;;  %v12471_v39 = vsel %vm1932_vm3, %v7562_v27, %v7566_v62  ;;  %v12474_v15 = vsel %vm1932_vm3, %v7566_v62, %v7570_v58  ;;  %v13324_v27 = vld [vmem:[#allocation26_spill] sm:$0xff]  ;;  %v13335_v9 = vld [vmem:[#allocation16_spill] sm:$0xff] }
 0x3d1   : > { %v12479_v45 = vsel %vm1932_vm3, %v7570_v58, %v7574_v56  ;;  %v13326_v58 = vld [vmem:[#allocation11_spill] sm:$0xff] }
 0x3d2   : > { %v12476_v30 = vor.u32 %v7577_v33, %v7576_v26  ;;  %9477 = vmatmul.mubr.msk.bf16.gmra.mrb[28].mxu1 %vm224_vm0, %v12122_v53  ;;  %v10528_v53 = vld [vmem:[%s13195_s2 + $0x70] sm:$0xff]   ;;  %v10533_v26 = vld [vmem:[%s13195_s2 + $0x98] sm:$0xff]  }
 0x3d3   : > { %9480 = vmatprep.mubr.msk.bf16.mxu1 %vm224_vm0, %v12125_v57  ;;  %v5442_v57 = vld [vmem:[#allocation2 + $0x8] sm:$0x80]  ;;  %v13336_v33 = vld [vmem:[#allocation15_spill] sm:$0xff] }
 0x3d4   : > { %v12483_v22 = vsel %vm1932_vm3, %v7574_v56, %v12476_v30  ;;  %v13337_v56 = vld [vmem:[#allocation18_spill] sm:$0xff] }
 0x3da   : > { %9481 = vmatmul.mubr.msk.bf16.gmra.mrb[32].mxu1 %vm224_vm0, %v12142_v6  ;;  %v5146_v6 = vrot.slane %v12179_v24, 7  ;;  %v10531_v24 = vld [vmem:[%s13195_s2 + $0x88] sm:$0xff]  }
 0x3db   : > { %9492 = vmatprep.mubr.msk.bf16.mxu1 %vm224_vm0, %v11867_v1  ;;  %v10529_v1 = vld [vmem:[%s13195_s2 + $0x78] sm:$0xff]  }
 0x3dc   : > { %v5149_v47 = vor.u32 %v12182_v18, %v5146_v6  ;;  %v10532_v18 = vld [vmem:[%s13195_s2 + $0x90] sm:$0xff]  }
 0x3de   : > { %v5150_v60 = vsel %vm5087_vm9, %v13325_v8, %v5149_v47  ;;  %v13343_v47 = vld [vmem:[#allocation24_spill] sm:$0xff] }
 0x3e2   : > { %9493 = vmatmul.mubr.msk.bf16.vlgmr.msra.gmra.mrb[0].mxu1 %vm224_vm0, %v11847_v10  ;;  %v10530_v10 = vld [vmem:[%s13195_s2 + $0x80] sm:$0xff]  }
 0x3e3   : > { %9496 = vmatprep.mubr.msk.bf16.mxu1 %vm224_vm0, %v11857_v50  ;;  %9529 = vmatpush3.bf16.msra.mxu1 %v12172_v23  ;;  %v5470_v23 = vshrl.u32 %v5442_v57, 16  ;;  %v6207_v57 = vld [vmem:[#allocation2 + $0x10] sm:$0xff] }
 0x3e4   : > { %9530 = vmatprep.subr.bf16.mxu1 %v10527_v59 }
 0x3e5   : > { %v5472_v62 = vrot.slane %v5470_v23, 7  ;;  %v13342_v23 = vld [vmem:[#allocation21_spill] sm:$0xff] }
 0x3e7   : > { %9531 = vmatpush3.bf16.msra.mxu1 %v10527_v59  ;;  %v5480_v0 = vsel %vm5087_vm9, %v5472_v62, %v13326_v58  ;;  %v13338_v59 = vld [vmem:[#allocation17_spill] sm:$0xff]  ;;  %v6235_v62 = vshrl.u32 %v6207_v57, 16 }
 0x3e8   : > { %9532 = vmatprep.subr.bf16.mxu1 %v10528_v53  ;;  %v13345_v58 = vld [vmem:[#allocation29_spill] sm:$0xff] }
 0x3ea   : > { %9497 = vmatmul.mubr.msk.bf16.gmra.mrb[4].mxu1 %vm224_vm0, %v11917_v48 }
 0x3eb   : > { %9500 = vmatprep.mubr.msk.bf16.mxu1 %vm224_vm0, %v11920_v46  ;;  %9533 = vmatpush3.bf16.msra.mxu1 %v10528_v53  ;;  %v13339_v53 = vld [vmem:[#allocation20_spill] sm:$0xff] }
 0x3ec   : > { %9534 = vmatprep.subr.bf16.mxu1 %v10529_v1 }
 0x3ef   : > { %9535 = vmatpush3.bf16.msra.mxu1 %v10529_v1  ;;  %v13340_v1 = vld [vmem:[#allocation19_spill] sm:$0xff] }
 0x3f0   : > { %9572 = vmatprep.subr.bf16.mxu1 %v10530_v10 }
 0x3f2   : > { %9501 = vmatmul.mubr.msk.bf16.gmra.mrb[8].mxu1 %vm224_vm0, %v11956_v20 }
 0x3f3   : > { %9504 = vmatprep.mubr.msk.bf16.mxu1 %vm224_vm0, %v11970_v3 }
 0x3fa   : > { %9505 = vmatmul.mubr.msk.bf16.gmra.mrb[12].mxu1 %vm224_vm0, %v12017_v36 }
 0x3fb   : > { %9508 = vmatprep.mubr.msk.bf16.mxu1 %vm224_vm0, %v12020_v42 }
 0x402   : > { %9509 = vmatmul.mubr.msk.bf16.gmra.mrb[16].mxu1 %vm224_vm0, %v12061_v5 }
 0x403   : > { %9512 = vmatprep.mubr.msk.bf16.mxu1 %vm224_vm0, %v12064_v63 }
 0x40a   : > { %9513 = vmatmul.mubr.msk.bf16.gmra.mrb[20].mxu1 %vm224_vm0, %v12092_v44 }
 0x40b   : > { %9516 = vmatprep.mubr.msk.bf16.mxu1 %vm224_vm0, %v12095_v43 }
 0x412   : > { %9517 = vmatmul.mubr.msk.bf16.gmra.mrb[24].mxu1 %vm224_vm0, %v12112_v40 }
 0x413   : > { %9520 = vmatprep.mubr.msk.bf16.mxu1 %vm224_vm0, %v12115_v31 }
 0x41a   : > { %9521 = vmatmul.mubr.msk.bf16.gmra.mrb[28].mxu1 %vm224_vm0, %v12128_v37 }
 0x41b   : > { %9524 = vmatprep.mubr.msk.bf16.mxu1 %vm224_vm0, %v13324_v27 }
 0x422   : > { %9525 = vmatmul.mubr.msk.bf16.gmra.mrb[32].mxu1 %vm224_vm0, %v5150_v60 }
 0x423   : > { %9536 = vmatprep.mubr.msk.bf16.mxu1 %vm224_vm0, %v5480_v0 }
 0x42a   : > { %9537 = vmatmul.mubr.msk.bf16.vlgmr.msra.gmra.mrb[0].mxu1 %vm224_vm0, %v11857_v50  ;;  %v10534_v50 = vld [vmem:[%s13195_s2 + $0xa0] sm:$0xff]  }
 0x42b   : > { %9540 = vmatprep.mubr.msk.bf16.mxu1 %vm224_vm0, %v11917_v48  ;;  %9573 = vmatpush3.bf16.msra.mxu1 %v10530_v10  ;;  %v5612_v48 = vrot.slane %v12185_v14, 7  ;;  %v13333_v14 = vld [vmem:[#allocation14_spill] sm:$0xff] }
 0x42c   : > { %9574 = vmatprep.subr.bf16.mxu1 %v10531_v24  ;;  %v13341_v10 = vld [vmem:[#allocation22_spill] sm:$0xff] }
 0x42f   : > { %9575 = vmatpush3.bf16.msra.mxu1 %v10531_v24  ;;  %v13346_v24 = vld [vmem:[#allocation27_spill] sm:$0xff] }
 0x430   : > { %9576 = vmatprep.subr.bf16.mxu1 %v10532_v18 }
 0x432   : > { %9541 = vmatmul.mubr.msk.bf16.gmra.mrb[4].mxu1 %vm224_vm0, %v11920_v46  ;;  %v5615_v46 = vor.u32 %v12192_v7, %v5612_v48  ;;  %v13334_v7 = vld [vmem:[#allocation13_spill] sm:$0xff] }
 0x433   : > { %9544 = vmatprep.mubr.msk.bf16.mxu1 %vm224_vm0, %v11956_v20  ;;  %9577 = vmatpush3.bf16.msra.mxu1 %v10532_v18  ;;  %v13347_v18 = vshrl.u32 %v13346_v24, 16 }
 0x434   : > { %9578 = vmatprep.subr.bf16.mxu1 %v10533_v26  ;;  %v5616_v20 = vsel %vm5087_vm9, %v5146_v6, %v5615_v46  ;;  %v6237_v6 = vshll.u32 %v6207_v57, 16  ;;  %v10539_v46 = vld [vmem:[%s13195_s2 + $0xc8] sm:$0xff]  }
 0x437   : > { %9579 = vmatpush3.bf16.msra.mxu1 %v10533_v26  ;;  %v6256_v26 = vor.u32 %v13347_v18, %v12203_v55  ;;  %v10540_v55 = vld [vmem:[%s13195_s2 + $0xd0] sm:$0xff]  }
 0x438   : > { %9616 = vmatprep.subr.bf16.mxu1 %v10534_v50 }
 0x43a   : > { %9545 = vmatmul.mubr.msk.bf16.gmra.mrb[8].mxu1 %vm224_vm0, %v11970_v3  ;;  %v13327_v3 = vld [vmem:[#allocation7_spill] sm:$0xff] }
 0x43b   : > { %9548 = vmatprep.mubr.msk.bf16.mxu1 %vm224_vm0, %v12017_v36  ;;  %v10535_v36 = vld [vmem:[%s13195_s2 + $0xa8] sm:$0xff]  }
 0x442   : > { %9549 = vmatmul.mubr.msk.bf16.gmra.mrb[12].mxu1 %vm224_vm0, %v12020_v42  ;;  %v13328_v42 = vld [vmem:[#allocation6_spill] sm:$0xff] }
 0x443   : > { %9552 = vmatprep.mubr.msk.bf16.mxu1 %vm224_vm0, %v12061_v5  ;;  %v13329_v5 = vld [vmem:[#allocation9_spill] sm:$0xff] }
 0x44a   : > { %9553 = vmatmul.mubr.msk.bf16.gmra.mrb[16].mxu1 %vm224_vm0, %v12064_v63  ;;  %v10536_v63 = vld [vmem:[%s13195_s2 + $0xb0] sm:$0xff]  }
 0x44b   : > { %9556 = vmatprep.mubr.msk.bf16.mxu1 %vm224_vm0, %v12092_v44  ;;  %v10537_v44 = vld [vmem:[%s13195_s2 + $0xb8] sm:$0xff]  }
 0x452   : > { %9557 = vmatmul.mubr.msk.bf16.gmra.mrb[20].mxu1 %vm224_vm0, %v12095_v43  ;;  %v13330_v43 = vld [vmem:[#allocation8_spill] sm:$0xff] }
 0x453   : > { %9560 = vmatprep.mubr.msk.bf16.mxu1 %vm224_vm0, %v12112_v40  ;;  %v13331_v40 = vld [vmem:[#allocation12_spill] sm:$0xff] }
 0x45a   : > { %9561 = vmatmul.mubr.msk.bf16.gmra.mrb[24].mxu1 %vm224_vm0, %v12115_v31  ;;  %v10538_v31 = vld [vmem:[%s13195_s2 + $0xc0] sm:$0xff]  }
 0x45b   : > { %9564 = vmatprep.mubr.msk.bf16.mxu1 %vm224_vm0, %v12128_v37  ;;  %v13332_v37 = vld [vmem:[#allocation10_spill] sm:$0xff] }
 0x462   : > { %9565 = vmatmul.mubr.msk.bf16.gmra.mrb[28].mxu1 %vm224_vm0, %v13324_v27  ;;  %v6239_v27 = vrot.slane %v6237_v6, 1 }
 0x463   : > { %9568 = vmatprep.mubr.msk.bf16.mxu1 %vm224_vm0, %v5150_v60  ;;  %v13344_v60 = vld [vmem:[#allocation23_spill] sm:$0xff] }
 0x464   : > { %v6240_v8 = vor.u32 %v6239_v27, %v6235_v62  ;;  %v13359_v27 = vshll.u32 %v12208_v54, 16 }
 0x466   : > { %v6245_v0 = vsel %vm472_vm1, %v6240_v8, %v13345_v58  ;;  %v13361_v8 = vshrl.u32 %v12197_v16, 16  ;;  %v13362_v58 = vshll.u32 %v12210_v52, 16 }
 0x46a   : > { %9569 = vmatmul.mubr.msk.bf16.gmra.mrb[32].mxu1 %vm224_vm0, %v5616_v20  ;;  %v13349_v20 = vld [vmem:[#allocation33_spill] sm:$0xff] }
 0x46b   : > { %9580 = vmatprep.mubr.msk.bf16.mxu1 %vm224_vm0, %v13327_v3 }
 0x472   : > { %9581 = vmatmul.mubr.msk.bf16.vlgmr.msra.gmra.mrb[0].mxu1 %vm224_vm0, %v13328_v42 }
 0x473   : > { %9584 = vmatprep.mubr.msk.bf16.mxu1 %vm224_vm0, %v13329_v5  ;;  %9617 = vmatpush3.bf16.msra.mxu1 %v10534_v50  ;;  %v13348_v50 = vshll.u32 %v12174_v32, 16  ;;  %v13351_v5 = vshrl.u32 %v12176_v34, 16 }
 0x474   : > { %9618 = vmatprep.subr.bf16.mxu1 %v10535_v36 }
 0x475   : > { %v6260_v48 = vrot.slane %v13348_v50, 1  ;;  %v13363_v50 = vshll.u32 %v12217_v4, 16 }
 0x477   : > { %9619 = vmatpush3.bf16.msra.mxu1 %v10535_v36  ;;  %v12655_v3 = vsel %vm472_vm1, %v6256_v26, %v6260_v48  ;;  %v13350_v36 = vshll.u32 %v12176_v34, 16  ;;  %v13355_v34 = vshll.u32 %v12189_v28, 16 }
 0x478   : > { %9620 = vmatprep.subr.bf16.mxu1 %v10536_v63 }
 0x479   : > { %v6268_v42 = vrot.slane %v13350_v36, 1 }
 0x47a   : > { %9585 = vmatmul.mubr.msk.bf16.gmra.mrb[4].mxu1 %vm224_vm0, %v13330_v43 }
 0x47b   : > { %9588 = vmatprep.mubr.msk.bf16.mxu1 %vm224_vm0, %v13331_v40  ;;  %9621 = vmatpush3.bf16.msra.mxu1 %v10536_v63  ;;  %v6272_v63 = vor.u32 %v13351_v5, %v6268_v42  ;;  %v13353_v40 = vld [vmem:[#allocation28_spill] sm:$0xff] }
 0x47c   : > { %9622 = vmatprep.subr.bf16.mxu1 %v10537_v44 }
 0x47f   : > { %9623 = vmatpush3.bf16.msra.mxu1 %v10537_v44  ;;  %v13352_v44 = vshrl.u32 %v12174_v32, 16  ;;  %v6284_v32 = vrot.slane %v13355_v34, 1 }
 0x480   : > { %9660 = vmatprep.subr.bf16.mxu1 %v10538_v31 }
 0x481   : > { %v6264_v43 = vor.u32 %v13352_v44, %v6260_v48  ;;  %v6316_v48 = vrot.slane %v13363_v50, 1  ;;  %v13367_v44 = vshll.u32 %v12230_v25, 16 }
 0x482   : > { %9589 = vmatmul.mubr.msk.bf16.gmra.mrb[8].mxu1 %vm224_vm0, %v13332_v37  ;;  %v13354_v37 = vshll.u32 %v13353_v40, 16 }
 0x483   : > { %9592 = vmatprep.mubr.msk.bf16.mxu1 %vm224_vm0, %v13333_v14 }
 0x484   : > { %v6276_v14 = vrot.slane %v13354_v37, 1 }
 0x48a   : > { %9593 = vmatmul.mubr.msk.bf16.gmra.mrb[12].mxu1 %vm224_vm0, %v13334_v7  ;;  %v6269_v7 = vsel %vm472_vm1, %v6264_v43, %v6268_v42  ;;  %v13366_v42 = vshll.u32 %v12228_v35, 16  ;;  %v6332_v43 = vrot.slane %v13367_v44, 1  ;;  %v13384_v44 = vld [vmem:[#allocation37_spill] sm:$0xff] }
 0x48b   : > { %9596 = vmatprep.mubr.msk.bf16.mxu1 %vm224_vm0, %v13335_v9  ;;  %v12676_v9 = vsel %vm472_vm1, %v6272_v63, %v6276_v14 }
 0x492   : > { %9597 = vmatmul.mubr.msk.bf16.gmra.mrb[16].mxu1 %vm224_vm0, %v13336_v33  ;;  %v10542_v33 = vld [vmem:[%s13195_s2 + $0xe0] sm:$0xff]  }
 0x493   : > { %9600 = vmatprep.mubr.msk.bf16.mxu1 %vm224_vm0, %v13337_v56  ;;  %v13356_v56 = vshrl.u32 %v12189_v28, 16  ;;  %v13360_v28 = vshrl.u32 %v12208_v54, 16  ;;  %v13364_v54 = vshrl.u32 %v12217_v4, 16  ;;  %v13368_v4 = vshrl.u32 %v12230_v25, 16 }
 0x494   : > { %v13372_v25 = vshrl.u32 %v12251_v29, 16 }
 0x49a   : > { %9601 = vmatmul.mubr.msk.bf16.gmra.mrb[20].mxu1 %vm224_vm0, %v13338_v59  ;;  %v6288_v59 = vor.u32 %v13356_v56, %v6284_v32  ;;  %v13371_v56 = vshll.u32 %v12251_v29, 16 }
 0x49b   : > { %9604 = vmatprep.mubr.msk.bf16.mxu1 %vm224_vm0, %v13339_v53  ;;  %v13357_v53 = vshrl.u32 %v13353_v40, 16  ;;  %v6336_v40 = vor.u32 %v13368_v4, %v6332_v43  ;;  %v13386_v4 = vld [vmem:[#allocation39_spill] sm:$0xff] }
 0x4a2   : > { %9605 = vmatmul.mubr.msk.bf16.gmra.mrb[24].mxu1 %vm224_vm0, %v13340_v1  ;;  %v6280_v1 = vor.u32 %v13357_v53, %v6276_v14  ;;  %v13370_v14 = vshll.u32 %v12243_v51, 16 }
 0x4a3   : > { %9608 = vmatprep.mubr.msk.bf16.mxu1 %vm224_vm0, %v13341_v10  ;;  %v13358_v10 = vshll.u32 %v12197_v16, 16  ;;  %v13365_v16 = vshrl.u32 %v12210_v52, 16  ;;  %v13369_v52 = vshrl.u32 %v12228_v35, 16  ;;  %v13373_v35 = vshrl.u32 %v12243_v51, 16  ;;  %v13377_v51 = vld [vmem:[#allocation31_spill] sm:$0xff] }
 0x4a4   : > { %v6285_v6 = vsel %vm472_vm1, %v6280_v1, %v6284_v32 }
 0x4a5   : > { %v6292_v57 = vrot.slane %v13358_v10, 1 }
 0x4aa   : > { %9609 = vmatmul.mubr.msk.bf16.gmra.mrb[28].mxu1 %vm224_vm0, %v13342_v23  ;;  %v6293_v23 = vsel %vm472_vm1, %v6288_v59, %v6292_v57  ;;  %v6348_v59 = vrot.slane %v13371_v56, 1  ;;  %v13394_v56 = vld [vmem:[#allocation48_spill] sm:$0xff] }
 0x4ab   : > { %9612 = vmatprep.mubr.msk.bf16.mxu1 %vm224_vm0, %v13343_v47  ;;  %v6300_v47 = vrot.slane %v13359_v27, 1 }
 0x4ac   : > { %v6352_v53 = vor.u32 %v13372_v25, %v6348_v59  ;;  %v13396_v25 = vld [vmem:[#allocation50_spill] sm:$0xff] }
 0x4ad   : > { %v6304_v62 = vor.u32 %v13360_v28, %v6300_v47 }
 0x4b2   : > { %9613 = vmatmul.mubr.msk.bf16.gmra.mrb[32].mxu1 %vm224_vm0, %v13344_v60  ;;  %v6296_v60 = vor.u32 %v13361_v8, %v6292_v57  ;;  %v13374_v57 = vld [vmem:[#allocation30_spill] sm:$0xff]  ;;  %v13376_v8 = vld [vmem:[#allocation32_spill] sm:$0xff] }
 0x4b3   : > { %9624 = vmatprep.mubr.msk.bf16.mxu1 %vm224_vm0, %v6245_v0  ;;  %v6308_v0 = vrot.slane %v13362_v58, 1  ;;  %v6357_v27 = vsel %vm472_vm1, %v6352_v53, %v13374_v57  ;;  %v10543_v58 = vld [vmem:[%s13195_s2 + $0xe8] sm:$0xff]   ;;  %v13397_v53 = vld [vmem:[#allocation51_spill] sm:$0xff] }
 0x4b4   : > { %v6301_v18 = vsel %vm472_vm1, %v6296_v60, %v6300_v47  ;;  %v6225_v47 = vld [vmem:[#allocation2 + $0xa0] sm:$0x1]  ;;  %v13400_v57 = vld [vmem:[#allocation53_spill] sm:$0xff] }
 0x4b5   : > { %v6309_v26 = vsel %vm472_vm1, %v6304_v62, %v6308_v0  ;;  %v6312_v36 = vor.u32 %v13365_v16, %v6308_v0  ;;  %v6378_v28 = vshll.u32 %v6225_v47, 16  ;;  %v13375_v62 = vld [vmem:[#allocation34_spill] sm:$0xff]  ;;  %v13381_v16 = vrot.slane %v13346_v24, 1 }
 0x4b6   : > { %v10544_v0 = vld [vmem:[%s13195_s2 + $0xf0] sm:$0xff]  }
 0x4b7   : > { %v6317_v5 = vsel %vm472_vm1, %v6312_v36, %v6316_v48  ;;  %v6380_v29 = vrot.slane %v6378_v28, 1  ;;  %v10548_v24 = vld [vmem:[%s13195_s2 + $0x110] sm:$0xff]  }
 0x4b9   : > { %v6381_v60 = vsel %vm472_vm1, %v13377_v51, %v6380_v29 }
 0x4ba   : > { %9625 = vmatmul.mubr.msk.bf16.vlgmr.msra.gmra.mrb[0].mxu1 %vm224_vm0, %v13349_v20 }
 0x4bb   : > { %9628 = vmatprep.mubr.msk.bf16.mxu1 %vm224_vm0, %v12655_v3  ;;  %9661 = vmatpush3.bf16.msra.mxu1 %v10538_v31  ;;  %v10541_v31 = vld [vmem:[%s13195_s2 + $0xd8] sm:$0xff]  }
 0x4bc   : > { %9662 = vmatprep.subr.bf16.mxu1 %v10539_v46 }
 0x4bf   : > { %9663 = vmatpush3.bf16.msra.mxu1 %v10539_v46  ;;  %v6320_v46 = vor.u32 %v13364_v54, %v6316_v48  ;;  %v13380_v54 = vld [vmem:[#allocation40_spill] sm:$0xff] }
 0x4c0   : > { %9664 = vmatprep.subr.bf16.mxu1 %v10540_v55 }
 0x4c2   : > { %9629 = vmatmul.mubr.msk.bf16.gmra.mrb[4].mxu1 %vm224_vm0, %v6269_v7 }
 0x4c3   : > { %9632 = vmatprep.mubr.msk.bf16.mxu1 %vm224_vm0, %v12676_v9  ;;  %9665 = vmatpush3.bf16.msra.mxu1 %v10540_v55  ;;  %v6324_v55 = vrot.slane %v13366_v42, 1  ;;  %v10547_v42 = vld [vmem:[%s13195_s2 + $0x108] sm:$0xff]  }
 0x4c4   : > { %9666 = vmatprep.subr.bf16.mxu1 %v10541_v31 }
 0x4c5   : > { %v6325_v63 = vsel %vm472_vm1, %v6320_v46, %v6324_v55  ;;  %v6328_v37 = vor.u32 %v13369_v52, %v6324_v55  ;;  %v7167_v46 = vrot.slane %v13380_v54, 1  ;;  %v13382_v55 = vld [vmem:[#allocation35_spill] sm:$0xff]  ;;  %v13388_v52 = vld [vmem:[#allocation42_spill] sm:$0xff] }
 0x4c7   : > { %9667 = vmatpush3.bf16.msra.mxu1 %v10541_v31  ;;  %v6340_v31 = vrot.slane %v13370_v14, 1  ;;  %v6333_v34 = vsel %vm472_vm1, %v6328_v37, %v6332_v43  ;;  %v7169_v36 = vsel %vm1125_vm2, %v7167_v46, %v13381_v16  ;;  %v13385_v43 = vld [vmem:[#allocation38_spill] sm:$0xff]  ;;  %v13389_v37 = vld [vmem:[#allocation43_spill] sm:$0xff]  ;;  %v13390_v14 = vld [vmem:[#allocation44_spill] sm:$0xff] }
 0x4c8   : > { %9704 = vmatprep.subr.bf16.mxu1 %v10542_v33 }
 0x4c9   : > { %v6341_v32 = vsel %vm472_vm1, %v6336_v40, %v6340_v31  ;;  %v6344_v1 = vor.u32 %v13373_v35, %v6340_v31  ;;  %v13387_v40 = vld [vmem:[#allocation41_spill] sm:$0xff] }
 0x4ca   : > { %9633 = vmatmul.mubr.msk.bf16.gmra.mrb[8].mxu1 %vm224_vm0, %v6285_v6  ;;  %v13391_v31 = vld [vmem:[#allocation45_spill] sm:$0xff] }
 0x4cb   : > { %9636 = vmatprep.mubr.msk.bf16.mxu1 %vm224_vm0, %v6293_v23  ;;  %v6349_v10 = vsel %vm472_vm1, %v6344_v1, %v6348_v59  ;;  %v13395_v59 = vld [vmem:[#allocation49_spill] sm:$0xff]  ;;  %v13398_v1 = vrot.slane %v12274_v13, 1 }
 0x4d2   : > { %9637 = vmatmul.mubr.msk.bf16.gmra.mrb[12].mxu1 %vm224_vm0, %v6301_v18 }
 0x4d3   : > { %9640 = vmatprep.mubr.msk.bf16.mxu1 %vm224_vm0, %v6309_v26 }
 0x4da   : > { %9641 = vmatmul.mubr.msk.bf16.gmra.mrb[16].mxu1 %vm224_vm0, %v6317_v5 }
 0x4db   : > { %9644 = vmatprep.mubr.msk.bf16.mxu1 %vm224_vm0, %v6325_v63 }
 0x4e2   : > { %9645 = vmatmul.mubr.msk.bf16.gmra.mrb[20].mxu1 %vm224_vm0, %v6333_v34 }
 0x4e3   : > { %9648 = vmatprep.mubr.msk.bf16.mxu1 %vm224_vm0, %v6341_v32 }
 0x4ea   : > { %9649 = vmatmul.mubr.msk.bf16.gmra.mrb[24].mxu1 %vm224_vm0, %v6349_v10 }
 0x4eb   : > { %9652 = vmatprep.mubr.msk.bf16.mxu1 %vm224_vm0, %v6357_v27 }
 0x4f2   : > { %9653 = vmatmul.mubr.msk.bf16.gmra.mrb[28].mxu1 %vm224_vm0, %v13375_v62 }
 0x4f3   : > { %9656 = vmatprep.mubr.msk.bf16.mxu1 %vm224_vm0, %v13376_v8 }
 0x4fa   : > { %9657 = vmatmul.mubr.msk.bf16.gmra.mrb[32].mxu1 %vm224_vm0, %v6381_v60 }
 0x4fb   : > { %9668 = vmatprep.mubr.msk.bf16.mxu1 %vm224_vm0, %v13349_v20  ;;  %v10545_v20 = vld [vmem:[%s13195_s2 + $0xf8] sm:$0xff]  }
 0x502   : > { %9669 = vmatmul.mubr.msk.bf16.vlgmr.msra.gmra.mrb[0].mxu1 %vm224_vm0, %v12655_v3  ;;  %v10546_v3 = vld [vmem:[%s13195_s2 + $0x100] sm:$0xff]  }
 0x503   : > { %9672 = vmatprep.mubr.msk.bf16.mxu1 %vm224_vm0, %v6269_v7  ;;  %9705 = vmatpush3.bf16.msra.mxu1 %v10542_v33  ;;  %v6691_v7 = vld [vmem:[#allocation2 + $0xa8] sm:$0x1] }
 0x504   : > { %9706 = vmatprep.subr.bf16.mxu1 %v10543_v58  ;;  %v7202_v35 = vrot.slane %v6691_v7, 1 }
 0x507   : > { %9707 = vmatpush3.bf16.msra.mxu1 %v10543_v58 }
 0x508   : > { %9708 = vmatprep.subr.bf16.mxu1 %v10544_v0 }
 0x50a   : > { %9673 = vmatmul.mubr.msk.bf16.gmra.mrb[4].mxu1 %vm224_vm0, %v12676_v9  ;;  %v13378_v9 = vshll.u32 %v12274_v13, 16 }
 0x50b   : > { %9676 = vmatprep.mubr.msk.bf16.mxu1 %vm224_vm0, %v6285_v6  ;;  %9709 = vmatpush3.bf16.msra.mxu1 %v10544_v0  ;;  %v6844_v6 = vshll.u32 %v6691_v7, 16  ;;  %v286_v0 = vld [vmem:[%s13196_s3 + $0x18] sm:$0xff] }
 0x50c   : > { %9710 = vmatprep.subr.bf16.mxu1 %v10545_v20  ;;  %v6838_v33 = vrot.slane %v13378_v9, 1  ;;  %v284_v9 = vld [vmem:[%s13196_s3 + $0x8] sm:$0xff] }
 0x50d   : > { %v6846_v50 = vrot.slane %v6844_v6, 1 }
 0x50f   : > { %9711 = vmatpush3.bf16.msra.mxu1 %v10545_v20 }
 0x510   : > { %9748 = vmatprep.subr.bf16.mxu1 %v10546_v3 }
 0x512   : > { %9677 = vmatmul.mubr.msk.bf16.gmra.mrb[8].mxu1 %vm224_vm0, %v6293_v23  ;;  %v6839_v23 = vsel %vm472_vm1, %v13377_v51, %v6838_v33 }
 0x513   : > { %9680 = vmatprep.mubr.msk.bf16.mxu1 %vm224_vm0, %v6301_v18  ;;  %v13379_v18 = vshrl.u32 %v12274_v13, 16  ;;  %v13399_v13 = vld [vmem:[#allocation52_spill] sm:$0xff] }
 0x51a   : > { %9681 = vmatmul.mubr.msk.bf16.gmra.mrb[12].mxu1 %vm224_vm0, %v6309_v26  ;;  %v6842_v26 = vor.u32 %v13379_v18, %v6838_v33 }
 0x51b   : > { %9684 = vmatprep.mubr.msk.bf16.mxu1 %vm224_vm0, %v6317_v5  ;;  %v13383_v5 = vld [vmem:[#allocation36_spill] sm:$0xff] }
 0x51c   : > { %v6847_v48 = vsel %vm472_vm1, %v6842_v26, %v6846_v50 }
 0x522   : > { %9685 = vmatmul.mubr.msk.bf16.gmra.mrb[16].mxu1 %vm224_vm0, %v6325_v63  ;;  %v10549_v63 = vld [vmem:[%s13195_s2 + $0x118] sm:$0xff]  }
 0x523   : > { %9688 = vmatprep.mubr.msk.bf16.mxu1 %vm224_vm0, %v6333_v34  ;;  %v13392_v34 = vld [vmem:[#allocation46_spill] sm:$0xff] }
 0x52a   : > { %9689 = vmatmul.mubr.msk.bf16.gmra.mrb[20].mxu1 %vm224_vm0, %v6341_v32  ;;  %v13393_v32 = vld [vmem:[#allocation47_spill] sm:$0xff] }
 0x52b   : > { %9692 = vmatprep.mubr.msk.bf16.mxu1 %vm224_vm0, %v6349_v10  ;;  %v7203_v10 = vsel %vm1125_vm2, %v13398_v1, %v7202_v35 }
 0x532   : > { %9693 = vmatmul.mubr.msk.bf16.gmra.mrb[24].mxu1 %vm224_vm0, %v6357_v27  ;;  %v13401_v27 = vld [vmem:[#allocation54_spill] sm:$0xff] }
 0x533   : > { %9696 = vmatprep.mubr.msk.bf16.mxu1 %vm224_vm0, %v13375_v62 }
 0x53a   : > { %9697 = vmatmul.mubr.msk.bf16.gmra.mrb[28].mxu1 %vm224_vm0, %v13376_v8  ;;  %v283_v8 = vld [vmem:[%s13196_s3] sm:$0xff] }
 0x53b   : > { %9700 = vmatprep.mubr.msk.bf16.mxu1 %vm224_vm0, %v6839_v23 }
 0x542   : > { %9701 = vmatmul.mubr.msk.bf16.gmra.mrb[32].mxu1 %vm224_vm0, %v6847_v48 }
 0x543   : > { %9712 = vmatprep.mubr.msk.bf16.mxu1 %vm224_vm0, %v7169_v36 }
 0x54a   : > { %9713 = vmatmul.mubr.msk.bf16.vlgmr.msra.gmra.mrb[0].mxu1 %vm224_vm0, %v13382_v55 }
 0x54b   : > { %9716 = vmatprep.mubr.msk.bf16.mxu1 %vm224_vm0, %v13383_v5  ;;  %9749 = vmatpush3.bf16.msra.mxu1 %v10546_v3 }
 0x54c   : > { %9750 = vmatprep.subr.bf16.mxu1 %v10547_v42 }
 0x54f   : > { %9751 = vmatpush3.bf16.msra.mxu1 %v10547_v42  ;;  %v289_v42 = vld [vmem:[%s13196_s3 + $0x30] sm:$0xff] }
 0x550   : > { %9752 = vmatprep.subr.bf16.mxu1 %v10548_v24 }
 0x552   : > { %9717 = vmatmul.mubr.msk.bf16.gmra.mrb[4].mxu1 %vm224_vm0, %v13384_v44 }
 0x553   : > { %9720 = vmatprep.mubr.msk.bf16.mxu1 %vm224_vm0, %v13385_v43  ;;  %9753 = vmatpush3.bf16.msra.mxu1 %v10548_v24 }
 0x554   : > { %9754 = vmatprep.subr.bf16.mxu1 %v10549_v63 }
 0x557   : > { %9755 = vmatpush3.bf16.msra.mxu1 %v10549_v63  ;;  %v287_v63 = vld [vmem:[%s13196_s3 + $0x20] sm:$0xff] }
 0x55a   : > { %9721 = vmatmul.mubr.msk.bf16.gmra.mrb[8].mxu1 %vm224_vm0, %v13386_v4 }
 0x55b   : > { %9724 = vmatprep.mubr.msk.bf16.mxu1 %vm224_vm0, %v13387_v40  ;;  %v290_v40 = vld [vmem:[%s13196_s3 + $0x38] sm:$0xff] }
 0x562   : > { %9725 = vmatmul.mubr.msk.bf16.gmra.mrb[12].mxu1 %vm224_vm0, %v13388_v52 }
 0x563   : > { %9728 = vmatprep.mubr.msk.bf16.mxu1 %vm224_vm0, %v13389_v37 }
 0x56a   : > { %9729 = vmatmul.mubr.msk.bf16.gmra.mrb[16].mxu1 %vm224_vm0, %v13390_v14 }
 0x56b   : > { %9732 = vmatprep.mubr.msk.bf16.mxu1 %vm224_vm0, %v13391_v31  ;;  %v288_v31 = vld [vmem:[%s13196_s3 + $0x28] sm:$0xff] }
 0x572   : > { %9733 = vmatmul.mubr.msk.bf16.gmra.mrb[20].mxu1 %vm224_vm0, %v13392_v34 }
 0x573   : > { %9736 = vmatprep.mubr.msk.bf16.mxu1 %vm224_vm0, %v13393_v32 }
 0x57a   : > { %9737 = vmatmul.mubr.msk.bf16.gmra.mrb[24].mxu1 %vm224_vm0, %v13394_v56 }
 0x57b   : > { %9740 = vmatprep.mubr.msk.bf16.mxu1 %vm224_vm0, %v13395_v59 }
 0x582   : > { %9741 = vmatmul.mubr.msk.bf16.gmra.mrb[28].mxu1 %vm224_vm0, %v13396_v25 }
 0x583   : > { %9744 = vmatprep.mubr.msk.bf16.mxu1 %vm224_vm0, %v13397_v53 }
 0x58a   : > { %9745 = vmatmul.mubr.msk.bf16.gmra.mrb[32].mxu1 %vm224_vm0, %v7203_v10 }
 0x58b   : > { %9756 = vmatprep.mubr.msk.bf16.mxu1 %vm224_vm0, %v12389_v49 }
 0x592   : > { %9757 = vmatmul.mubr.msk.bf16.vlgmr.msra.gmra.mrb[0].mxu1 %vm224_vm0, %v12382_v12  ;;  %v7495_v12 = vld [vmem:[#allocation2 + $0xa8] sm:$0x3] }
 0x593   : > { %9760 = vmatprep.mubr.msk.bf16.mxu1 %vm224_vm0, %v12392_v2  ;;  %v7581_v49 = vshrl.u32 %v7495_v12, 16  ;;  %v7584_v2 = vshll.u32 %v7495_v12, 16 }
 0x59a   : > { %9761 = vmatmul.mubr.msk.bf16.gmra.mrb[4].mxu1 %vm224_vm0, %v12397_v41  ;;  %v7583_v41 = vrot.slane %v7581_v49, 1 }
 0x59b   : > { %9764 = vmatprep.mubr.msk.bf16.mxu1 %vm224_vm0, %v12406_v21  ;;  %v7586_v21 = vrot.slane %v7584_v2, 2 }
 0x5a2   : > { %9765 = vmatmul.mubr.msk.bf16.gmra.mrb[8].mxu1 %vm224_vm0, %v13399_v13 }
 0x5a3   : > { %9768 = vmatprep.mubr.msk.bf16.mxu1 %vm224_vm0, %v13400_v57 }
 0x5aa   : > { %9769 = vmatmul.mubr.msk.bf16.gmra.mrb[12].mxu1 %vm224_vm0, %v13401_v27  ;;  %v293_v27 = vld [vmem:[%s13196_s3 + $0x50] sm:$0xff] }
 0x5ab   : > { %9772 = vmatprep.mubr.msk.bf16.mxu1 %vm224_vm0, %v12436_v61  ;;  %v7587_v61 = vor.u32 %v7586_v21, %v7583_v41  ;;  %v291_v41 = vld [vmem:[%s13196_s3 + $0x40] sm:$0xff] }
 0x5b2   : > { %9773 = vmatmul.mubr.msk.bf16.gmra.mrb[16].mxu1 %vm224_vm0, %v12443_v19  ;;  %v7588_v19 = vsel %vm1932_vm3, %v12476_v30, %v7587_v61  ;;  %v285_v30 = vld [vmem:[%s13196_s3 + $0x10] sm:$0xff] }
 0x5b3   : > { %9776 = vmatprep.mubr.msk.bf16.mxu1 %vm224_vm0, %v12450_v38  ;;  %v319_v38 = vlaneseq }
 0x5ba   : > { %9777 = vmatmul.mubr.msk.bf16.gmra.mrb[20].mxu1 %vm224_vm0, %v12455_v11  ;;  %v320_v11 = vand.u32 127, %v319_v38  ;;  %v294_v38 = vld [vmem:[%s13196_s3 + $0x58] sm:$0xff] }
 0x5bb   : > { %9780 = vmatprep.mubr.msk.bf16.mxu1 %vm224_vm0, %v12462_v17  ;;  %v10615_v17 = vmov 1.0  }
 0x5bc   : > { %vm324_vm10 = vcmp.lt.s32.totalorder %v320_v11, 3  ;;  %vm321_vm11 = vcmp.ge.s32.totalorder %v320_v11, 1  ;;  %vm322_vm12 = vcmp.lt.s32.totalorder %v320_v11, 5 }
 0x5bd   : > { %vm12890_vm13 = vmand %vm321_vm11, %vm322_vm12 }
 0x5c2   : > { %9781 = vmatmul.mubr.msk.bf16.gmra.mrb[24].mxu1 %vm224_vm0, %v12471_v39  ;;  %v12879_v39 = vsel %vm324_vm10, -1.0, %v10615_v17 }
 0x5c3   : > { %9784 = vmatprep.mubr.msk.bf16.mxu1 %vm224_vm0, %v12474_v15 }
 0x5ca   : > { %9785 = vmatmul.mubr.msk.bf16.gmra.mrb[28].mxu1 %vm224_vm0, %v12479_v45 }
 0x5cb   : > { %9788 = vmatprep.mubr.msk.bf16.mxu1 %vm224_vm0, %v12483_v22 }
 0x5d2   : > { %9789 = vmatmul.mubr.msk.bf16.gmra.mrb[32].mxu1 %vm224_vm0, %v7588_v19 }
 0x665   : > { %v9758_v15 = vpop.f32.mrb[0].mxu1 }
 0x666   : > { %v7882_v45 = vmax.f32 %v9758_v15, 0.0  ;;  %v7701_v22 = vpop.f32.mrb[1].mxu1 }
 0x667   : > { %v7880_v47 = vmax.f32 %v7701_v22, 0.0  ;;  %v9759_v28 = vpop.f32.mrb[2].mxu1 }
 0x668   : > { %v7918_v62 = vmul.f32 %v7882_v45, %v12879_v39  ;;  %v7883_v29 = vmax.f32 %v9759_v28, 0.0  ;;  %v7704_v51 = vpop.f32.mrb[3].mxu1  ;;  %v292_v45 = vld [vmem:[%s13196_s3 + $0x48] sm:$0xff] }
 0x669   : > { %v7916_v58 = vmul.f32 %v7880_v47, %v12879_v39  ;;  %v7881_v20 = vmax.f32 %v7704_v51, 0.0 }
 0x66a   : > { %v7954_v3 = vadd.f32 %v7918_v62, %v285_v30  ;;  %v7919_v7 = vmul.f32 %v7883_v29, %v12879_v39 }
 0x66b   : > { %v7952_v33 = vadd.f32 %v7916_v58, %v283_v8  ;;  %v7917_v6 = vmul.f32 %v7881_v20, %v12879_v39 }
 0x66c   : > { %v7992_v23 = vsel %vm12890_vm13, %v7954_v3, %v9758_v15  ;;  %v7955_v18 = vadd.f32 %v7919_v7, %v286_v0  ;;  %v297_v3 = vld [vmem:[%s13196_s3 + $0x70] sm:$0xff] }
 0x66d   : > { %8028 = vst [vmem:[%s12905_s26 + $0x10] sm:$0xff] %v7992_v23  ;;  %v7990_v26 = vsel %vm12890_vm13, %v7952_v33, %v7701_v22  ;;  %v7953_v50 = vadd.f32 %v7917_v6, %v284_v9  ;;  %v9762_v48 = vpop.f32.mrb[4].mxu1  ;;  %v295_v6 = vld [vmem:[%s13196_s3 + $0x60] sm:$0xff] }
 0x66e   : > { %8026 = vst [vmem:[%s12905_s26] sm:$0xff] %v7990_v26  ;;  %v7993_v54 = vsel %vm12890_vm13, %v7955_v18, %v9759_v28  ;;  %v7886_v46 = vmax.f32 %v9762_v48, 0.0  ;;  %v7717_v16 = vpop.f32.mrb[5].mxu1 }
 0x66f   : > { %8029 = vst [vmem:[%s12905_s26 + $0x18] sm:$0xff] %v7993_v54  ;;  %v7991_v36 = vsel %vm12890_vm13, %v7953_v50, %v7704_v51  ;;  %v7884_v55 = vmax.f32 %v7717_v16, 0.0  ;;  %v9763_v5 = vpop.f32.mrb[6].mxu1  ;;  %v298_v50 = vld [vmem:[%s13196_s3 + $0x78] sm:$0xff] }
 0x670   : > { %8027 = vst [vmem:[%s12905_s26 + $0x8] sm:$0xff] %v7991_v36  ;;  %v7922_v24 = vmul.f32 %v7886_v46, %v12879_v39  ;;  %v7887_v44 = vmax.f32 %v9763_v5, 0.0  ;;  %v7720_v43 = vpop.f32.mrb[7].mxu1 }
 0x671   : > { %v7920_v4 = vmul.f32 %v7884_v55, %v12879_v39  ;;  %v7885_v52 = vmax.f32 %v7720_v43, 0.0 }
 0x672   : > { %v7958_v37 = vadd.f32 %v7922_v24, %v289_v42  ;;  %v7923_v14 = vmul.f32 %v7887_v44, %v12879_v39 }
 0x673   : > { %v7956_v34 = vadd.f32 %v7920_v4, %v287_v63  ;;  %v7921_v32 = vmul.f32 %v7885_v52, %v12879_v39 }
 0x674   : > { %v7996_v56 = vsel %vm12890_vm13, %v7958_v37, %v9762_v48  ;;  %v7959_v59 = vadd.f32 %v7923_v14, %v290_v40  ;;  %v301_v37 = vld [vmem:[%s13196_s3 + $0x90] sm:$0xff] }
 0x675   : > { %8032 = vst [vmem:[%s12905_s26 + $0x30] sm:$0xff] %v7996_v56  ;;  %v7994_v25 = vsel %vm12890_vm13, %v7956_v34, %v7717_v16  ;;  %v7957_v53 = vadd.f32 %v7921_v32, %v288_v31  ;;  %v9766_v35 = vpop.f32.mrb[8].mxu1  ;;  %v296_v16 = vld [vmem:[%s13196_s3 + $0x68] sm:$0xff]  ;;  %v299_v32 = vld [vmem:[%s13196_s3 + $0x80] sm:$0xff] }
 0x676   : > { %8030 = vst [vmem:[%s12905_s26 + $0x20] sm:$0xff] %v7994_v25  ;;  %v7997_v1 = vsel %vm12890_vm13, %v7959_v59, %v9763_v5  ;;  %v7890_v10 = vmax.f32 %v9766_v35, 0.0  ;;  %v7733_v13 = vpop.f32.mrb[9].mxu1 }
 0x677   : > { %8033 = vst [vmem:[%s12905_s26 + $0x38] sm:$0xff] %v7997_v1  ;;  %v7995_v57 = vsel %vm12890_vm13, %v7957_v53, %v7720_v43  ;;  %v7888_v12 = vmax.f32 %v7733_v13, 0.0  ;;  %v9767_v49 = vpop.f32.mrb[10].mxu1  ;;  %v302_v53 = vld [vmem:[%s13196_s3 + $0x98] sm:$0xff] }
 0x678   : > { %8031 = vst [vmem:[%s12905_s26 + $0x28] sm:$0xff] %v7995_v57  ;;  %v7926_v2 = vmul.f32 %v7890_v10, %v12879_v39  ;;  %v7891_v21 = vmax.f32 %v9767_v49, 0.0  ;;  %v7736_v61 = vpop.f32.mrb[11].mxu1 }
 0x679   : > { %v7924_v19 = vmul.f32 %v7888_v12, %v12879_v39  ;;  %v7889_v11 = vmax.f32 %v7736_v61, 0.0 }
 0x67a   : > { %v7962_v17 = vadd.f32 %v7926_v2, %v293_v27  ;;  %v7927_v15 = vmul.f32 %v7891_v21, %v12879_v39 }
 0x67b   : > { %v7960_v22 = vadd.f32 %v7924_v19, %v291_v41  ;;  %v7925_v30 = vmul.f32 %v7889_v11, %v12879_v39 }
 0x67c   : > { %v8000_v47 = vsel %vm12890_vm13, %v7962_v17, %v9766_v35  ;;  %v7963_v28 = vadd.f32 %v7927_v15, %v294_v38  ;;  %v305_v17 = vld [vmem:[%s13196_s3 + $0xb0] sm:$0xff] }
 0x67d   : > { %8036 = vst [vmem:[%s12905_s26 + $0x50] sm:$0xff] %v8000_v47  ;;  %v7998_v62 = vsel %vm12890_vm13, %v7960_v22, %v7733_v13  ;;  %v7961_v8 = vadd.f32 %v7925_v30, %v292_v45  ;;  %v9770_v29 = vpop.f32.mrb[12].mxu1  ;;  %v300_v13 = vld [vmem:[%s13196_s3 + $0x88] sm:$0xff]  ;;  %v303_v30 = vld [vmem:[%s13196_s3 + $0xa0] sm:$0xff] }
 0x67e   : > { %8034 = vst [vmem:[%s12905_s26 + $0x40] sm:$0xff] %v7998_v62  ;;  %v8001_v51 = vsel %vm12890_vm13, %v7963_v28, %v9767_v49  ;;  %v7894_v58 = vmax.f32 %v9770_v29, 0.0  ;;  %v7749_v0 = vpop.f32.mrb[13].mxu1 }
 0x67f   : > { %8037 = vst [vmem:[%s12905_s26 + $0x58] sm:$0xff] %v8001_v51  ;;  %v7999_v20 = vsel %vm12890_vm13, %v7961_v8, %v7736_v61  ;;  %v7892_v7 = vmax.f32 %v7749_v0, 0.0  ;;  %v9771_v9 = vpop.f32.mrb[14].mxu1  ;;  %v306_v8 = vld [vmem:[%s13196_s3 + $0xb8] sm:$0xff] }
 0x680   : > { %8035 = vst [vmem:[%s12905_s26 + $0x48] sm:$0xff] %v7999_v20  ;;  %v7930_v33 = vmul.f32 %v7894_v58, %v12879_v39  ;;  %v7895_v23 = vmax.f32 %v9771_v9, 0.0  ;;  %v7752_v18 = vpop.f32.mrb[15].mxu1 }
 0x681   : > { %v7928_v26 = vmul.f32 %v7892_v7, %v12879_v39  ;;  %v7893_v48 = vmax.f32 %v7752_v18, 0.0 }
 0x682   : > { %v7966_v54 = vadd.f32 %v7930_v33, %v297_v3  ;;  %v7931_v46 = vmul.f32 %v7895_v23, %v12879_v39 }
 0x683   : > { %v7964_v36 = vadd.f32 %v7928_v26, %v295_v6  ;;  %v7929_v42 = vmul.f32 %v7893_v48, %v12879_v39 }
 0x684   : > { %v8004_v55 = vsel %vm12890_vm13, %v7966_v54, %v9770_v29  ;;  %v7967_v5 = vadd.f32 %v7931_v46, %v298_v50  ;;  %v309_v54 = vld [vmem:[%s13196_s3 + $0xd0] sm:$0xff] }
 0x685   : > { %8040 = vst [vmem:[%s12905_s26 + $0x70] sm:$0xff] %v8004_v55  ;;  %v8002_v24 = vsel %vm12890_vm13, %v7964_v36, %v7749_v0  ;;  %v7965_v63 = vadd.f32 %v7929_v42, %v296_v16  ;;  %v9774_v44 = vpop.f32.mrb[16].mxu1  ;;  %v304_v0 = vld [vmem:[%s13196_s3 + $0xa8] sm:$0xff]  ;;  %v307_v42 = vld [vmem:[%s13196_s3 + $0xc0] sm:$0xff] }
 0x686   : > { %8038 = vst [vmem:[%s12905_s26 + $0x60] sm:$0xff] %v8002_v24  ;;  %v8005_v43 = vsel %vm12890_vm13, %v7967_v5, %v9771_v9  ;;  %v7898_v4 = vmax.f32 %v9774_v44, 0.0  ;;  %v7765_v40 = vpop.f32.mrb[17].mxu1 }
 0x687   : > { %8041 = vst [vmem:[%s12905_s26 + $0x78] sm:$0xff] %v8005_v43  ;;  %v8003_v52 = vsel %vm12890_vm13, %v7965_v63, %v7752_v18  ;;  %v7896_v14 = vmax.f32 %v7765_v40, 0.0  ;;  %v9775_v31 = vpop.f32.mrb[18].mxu1  ;;  %v310_v63 = vld [vmem:[%s13196_s3 + $0xd8] sm:$0xff] }
 0x688   : > { %8039 = vst [vmem:[%s12905_s26 + $0x68] sm:$0xff] %v8003_v52  ;;  %v7934_v34 = vmul.f32 %v7898_v4, %v12879_v39  ;;  %v7899_v56 = vmax.f32 %v9775_v31, 0.0  ;;  %v7768_v59 = vpop.f32.mrb[19].mxu1 }
 0x689   : > { %v7932_v25 = vmul.f32 %v7896_v14, %v12879_v39  ;;  %v7897_v35 = vmax.f32 %v7768_v59, 0.0 }
 0x68a   : > { %v7970_v1 = vadd.f32 %v7934_v34, %v301_v37  ;;  %v7935_v10 = vmul.f32 %v7899_v56, %v12879_v39 }
 0x68b   : > { %v7968_v57 = vadd.f32 %v7932_v25, %v299_v32  ;;  %v7933_v27 = vmul.f32 %v7897_v35, %v12879_v39 }
 0x68c   : > { %v8008_v12 = vsel %vm12890_vm13, %v7970_v1, %v9774_v44  ;;  %v7971_v49 = vadd.f32 %v7935_v10, %v302_v53  ;;  %v313_v1 = vld [vmem:[%s13196_s3 + $0xf0] sm:$0xff] }
 0x68d   : > { %8044 = vst [vmem:[%s12905_s26 + $0x90] sm:$0xff] %v8008_v12  ;;  %v8006_v2 = vsel %vm12890_vm13, %v7968_v57, %v7765_v40  ;;  %v7969_v41 = vadd.f32 %v7933_v27, %v300_v13  ;;  %v9778_v21 = vpop.f32.mrb[20].mxu1  ;;  %v308_v40 = vld [vmem:[%s13196_s3 + $0xc8] sm:$0xff]  ;;  %v311_v27 = vld [vmem:[%s13196_s3 + $0xe0] sm:$0xff] }
 0x68e   : > { %8042 = vst [vmem:[%s12905_s26 + $0x80] sm:$0xff] %v8006_v2  ;;  %v8009_v61 = vsel %vm12890_vm13, %v7971_v49, %v9775_v31  ;;  %v7902_v19 = vmax.f32 %v9778_v21, 0.0  ;;  %v7781_v38 = vpop.f32.mrb[21].mxu1 }
 0x68f   : > { %8045 = vst [vmem:[%s12905_s26 + $0x98] sm:$0xff] %v8009_v61  ;;  %v8007_v11 = vsel %vm12890_vm13, %v7969_v41, %v7768_v59  ;;  %v7900_v15 = vmax.f32 %v7781_v38, 0.0  ;;  %v9779_v45 = vpop.f32.mrb[22].mxu1  ;;  %v314_v41 = vld [vmem:[%s13196_s3 + $0xf8] sm:$0xff] }
 0x690   : > { %8043 = vst [vmem:[%s12905_s26 + $0x88] sm:$0xff] %v8007_v11  ;;  %v7938_v22 = vmul.f32 %v7902_v19, %v12879_v39  ;;  %v7903_v47 = vmax.f32 %v9779_v45, 0.0  ;;  %v7784_v28 = vpop.f32.mrb[23].mxu1 }
 0x691   : > { %v7936_v62 = vmul.f32 %v7900_v15, %v12879_v39  ;;  %v7901_v29 = vmax.f32 %v7784_v28, 0.0 }
 0x692   : > { %v7974_v51 = vadd.f32 %v7938_v22, %v305_v17  ;;  %v7939_v58 = vmul.f32 %v7903_v47, %v12879_v39 }
 0x693   : > { %v7972_v20 = vadd.f32 %v7936_v62, %v303_v30  ;;  %v7937_v3 = vmul.f32 %v7901_v29, %v12879_v39 }
 0x694   : > { %v8012_v7 = vsel %vm12890_vm13, %v7974_v51, %v9778_v21  ;;  %v7975_v9 = vadd.f32 %v7939_v58, %v306_v8  ;;  %v317_v51 = vld [vmem:[%s13196_s3 + $0x110] sm:$0xff] }
 0x695   : > { %8048 = vst [vmem:[%s12905_s26 + $0xb0] sm:$0xff] %v8012_v7  ;;  %v8010_v33 = vsel %vm12890_vm13, %v7972_v20, %v7781_v38  ;;  %v7973_v6 = vadd.f32 %v7937_v3, %v304_v0  ;;  %v9782_v23 = vpop.f32.mrb[24].mxu1  ;;  %v312_v38 = vld [vmem:[%s13196_s3 + $0xe8] sm:$0xff]  ;;  %v315_v3 = vld [vmem:[%s13196_s3 + $0x100] sm:$0xff] }
 0x696   : > { %8046 = vst [vmem:[%s12905_s26 + $0xa0] sm:$0xff] %v8010_v33  ;;  %v8013_v18 = vsel %vm12890_vm13, %v7975_v9, %v9779_v45  ;;  %v7906_v26 = vmax.f32 %v9782_v23, 0.0  ;;  %v7797_v50 = vpop.f32.mrb[25].mxu1 }
 0x697   : > { %8049 = vst [vmem:[%s12905_s26 + $0xb8] sm:$0xff] %v8013_v18  ;;  %v8011_v48 = vsel %vm12890_vm13, %v7973_v6, %v7784_v28  ;;  %v7904_v46 = vmax.f32 %v7797_v50, 0.0  ;;  %v9783_v16 = vpop.f32.mrb[26].mxu1  ;;  %v318_v6 = vld [vmem:[%s13196_s3 + $0x118] sm:$0xff] }
 0x698   : > { %8047 = vst [vmem:[%s12905_s26 + $0xa8] sm:$0xff] %v8011_v48  ;;  %v7942_v36 = vmul.f32 %v7906_v26, %v12879_v39  ;;  %v7907_v55 = vmax.f32 %v9783_v16, 0.0  ;;  %v7800_v5 = vpop.f32.mrb[27].mxu1 }
 0x699   : > { %v7940_v24 = vmul.f32 %v7904_v46, %v12879_v39  ;;  %v7905_v44 = vmax.f32 %v7800_v5, 0.0 }
 0x69a   : > { %v7978_v43 = vadd.f32 %v7942_v36, %v309_v54  ;;  %v7943_v4 = vmul.f32 %v7907_v55, %v12879_v39 }
 0x69b   : > { %v7976_v52 = vadd.f32 %v7940_v24, %v307_v42  ;;  %v7941_v37 = vmul.f32 %v7905_v44, %v12879_v39 }
 0x69c   : > { %v8016_v14 = vsel %vm12890_vm13, %v7978_v43, %v9782_v23  ;;  %v7979_v31 = vadd.f32 %v7943_v4, %v310_v63 }
 0x69d   : > { %8052 = vst [vmem:[%s12905_s26 + $0xd0] sm:$0xff] %v8016_v14  ;;  %v8014_v34 = vsel %vm12890_vm13, %v7976_v52, %v7797_v50  ;;  %v7977_v32 = vadd.f32 %v7941_v37, %v308_v40  ;;  %v9786_v56 = vpop.f32.mrb[28].mxu1  ;;  %v316_v50 = vld [vmem:[%s13196_s3 + $0x108] sm:$0xff] }
 0x69e   : > { %8050 = vst [vmem:[%s12905_s26 + $0xc0] sm:$0xff] %v8014_v34  ;;  %v8017_v59 = vsel %vm12890_vm13, %v7979_v31, %v9783_v16  ;;  %v7910_v25 = vmax.f32 %v9786_v56, 0.0  ;;  %v7813_v53 = vpop.f32.mrb[29].mxu1 }
 0x69f   : > { %8053 = vst [vmem:[%s12905_s26 + $0xd8] sm:$0xff] %v8017_v59  ;;  %v8015_v35 = vsel %vm12890_vm13, %v7977_v32, %v7800_v5  ;;  %v7908_v10 = vmax.f32 %v7813_v53, 0.0  ;;  %v9787_v13 = vpop.f32.mrb[30].mxu1 }
 0x6a0   : > { %8051 = vst [vmem:[%s12905_s26 + $0xc8] sm:$0xff] %v8015_v35  ;;  %v7946_v57 = vmul.f32 %v7910_v25, %v12879_v39  ;;  %v7911_v12 = vmax.f32 %v9787_v13, 0.0  ;;  %v7816_v49 = vpop.f32.mrb[31].mxu1 }
 0x6a1   : > { %v7944_v2 = vmul.f32 %v7908_v10, %v12879_v39  ;;  %v7909_v21 = vmax.f32 %v7816_v49, 0.0 }
 0x6a2   : > { %v7982_v61 = vadd.f32 %v7946_v57, %v313_v1  ;;  %v7947_v19 = vmul.f32 %v7911_v12, %v12879_v39 }
 0x6a3   : > { %v7980_v11 = vadd.f32 %v7944_v2, %v311_v27  ;;  %v7945_v17 = vmul.f32 %v7909_v21, %v12879_v39 }
 0x6a4   : > { %v8020_v15 = vsel %vm12890_vm13, %v7982_v61, %v9786_v56  ;;  %v7983_v45 = vadd.f32 %v7947_v19, %v314_v41 }
 0x6a5   : > { %8056 = vst [vmem:[%s12905_s26 + $0xf0] sm:$0xff] %v8020_v15  ;;  %v8018_v22 = vsel %vm12890_vm13, %v7980_v11, %v7813_v53  ;;  %v7981_v30 = vadd.f32 %v7945_v17, %v312_v38  ;;  %v9790_v47 = vpop.f32.mrb[32].mxu1 }
 0x6a6   : > { %8054 = vst [vmem:[%s12905_s26 + $0xe0] sm:$0xff] %v8018_v22  ;;  %v8021_v28 = vsel %vm12890_vm13, %v7983_v45, %v9787_v13  ;;  %v7914_v62 = vmax.f32 %v9790_v47, 0.0  ;;  %v7829_v8 = vpop.f32.mrb[33].mxu1 }
 0x6a7   : > { %8057 = vst [vmem:[%s12905_s26 + $0xf8] sm:$0xff] %v8021_v28  ;;  %v8019_v29 = vsel %vm12890_vm13, %v7981_v30, %v7816_v49  ;;  %v7912_v58 = vmax.f32 %v7829_v8, 0.0  ;;  %v9791_v0 = vpop.f32.mrb[34].mxu1 }
 0x6a8   : > { %8055 = vst [vmem:[%s12905_s26 + $0xe8] sm:$0xff] %v8019_v29  ;;  %v7950_v20 = vmul.f32 %v7914_v62, %v12879_v39  ;;  %v7915_v7 = vmax.f32 %v9791_v0, 0.0  ;;  %v7832_v9 = vpop.f32.mrb[35].mxu1 }
 0x6a9   : > { %v7948_v33 = vmul.f32 %v7912_v58, %v12879_v39  ;;  %v7913_v23 = vmax.f32 %v7832_v9, 0.0 }
 0x6aa   : > { %v7986_v18 = vadd.f32 %v7950_v20, %v317_v51  ;;  %v7951_v26 = vmul.f32 %v7915_v7, %v12879_v39 }
 0x6ab   : > { %v7984_v48 = vadd.f32 %v7948_v33, %v315_v3  ;;  %v7949_v54 = vmul.f32 %v7913_v23, %v12879_v39 }
 0x6ac   : > { %v8024_v46 = vsel %vm12890_vm13, %v7986_v18, %v9790_v47  ;;  %v7987_v16 = vadd.f32 %v7951_v26, %v318_v6 }
 0x6ad   : > { %8060 = vst [vmem:[%s12905_s26 + $0x110] sm:$0xff] %v8024_v46  ;;  %v8022_v36 = vsel %vm12890_vm13, %v7984_v48, %v7829_v8  ;;  %v7985_v42 = vadd.f32 %v7949_v54, %v316_v50 }
 0x6ae   : > { %8058 = vst [vmem:[%s12905_s26 + $0x100] sm:$0xff] %v8022_v36  ;;  %v8025_v39 = vsel %vm12890_vm13, %v7987_v16, %v9791_v0 }
 0x6af   : > { %8061 = vst [vmem:[%s12905_s26 + $0x118] sm:$0xff] %v8025_v39  ;;  %v8023_v55 = vsel %vm12890_vm13, %v7985_v42, %v7832_v9 }
 0x6b0   : > { %8059 = vst [vmem:[%s12905_s26 + $0x108] sm:$0xff] %v8023_v55 }
 0x6b1   : > { %10563 = shalt.err (!%p10560_p3)
}
 0x6b2   : > { %s10564_s10 = scalar_lea.hbm %s13139_s23, 4608  ;;  %s10568_s9 = scalar_lea.hbm %s13198_s5, 9216 }
 0x6b3   : > { %p10565_p4 = scmp.ne.s32.totalorder %s13139_s23, %s10564_s10  ;;  %p10569_p9 = scmp.lt.u32.totalorder %s13139_s23, %s13198_s5 }
 0x6b4   : > { %p10570_p10 = scmp.lt.u32.totalorder %s10568_s9, %s10564_s10  ;;  %p10572_p12 = scmp.lt.u32.totalorder %s10564_s10, %s13139_s23 }
 0x6b5   : > { %p10566_p7 = pnand %p10565_p4, %p10687_p5 }
 0x6b6   : > { %p10571_p11 = por %p10570_p10, %p10569_p9 }
 0x6b7   : > { %p10567_p8 = pneg %p10566_p7 }
 0x6b8   : > { %p10573_p13 = por %p10572_p12, %p10571_p11 }
 0x6ba   : > { %p10574_p0 = pnand %p10573_p13, %p10567_p8 }
 0x6bc   : > { %10577 = shalt.err (!%p10574_p0)
}
 0x6bd   : > { %s10617_s13 = smov 128   ;;  %s10618_s14 = smov 8  }
 0x6be   : > { %10371 = dma.vmem_to_hbm [thread:$0]  (%p10687_p5), %s13144_s15, 4608, %s13139_s23, %s13152_s17, %s10617_s13, %s10617_s13, %s10618_s14  }
 0x6bf PF: > { %p10377_p1 = scmp.ge.s32.totalorder %s10612_s21, 2  ;;  %s8091_s22 = sand.u32 1, %s10600_s18  }
 0x6c0   : > { %s8092_s16 = scalar_lea.sflag [#allocation4], %s8091_s22 }
 0x6c1   : > { %p10374_p2 = pnand %p10377_p1, %p10691_p6 }
 0x6c3   : > { %10595 = dma.done.wait (!%p10374_p2), %s8092_s16, 4608  }
 0x6c4   : > { %10597 = vsyncadd (!%p10374_p2), %s8092_s16, 4294962688  ;;  %p15_p3 = scmp.ge.s32.totalorder %s10674_s24, 4   ;;  %s13404_s18 = smov %s10604_s19 }
 0x6c5   : > { %s13405_s19 = smov %s10608_s20  ;;  %s13406_s20 = smov %s10685_s27 }
 0x6c6   : > { %s13407_s21 = smov %s10674_s24  ;;  %17 = sbr.rel (!%p15_p3) target bundleno = 3 (0x3), region = 75 }
 0x6cd   :  { %8097 = vsyncpa [#allocation4], 1 }
 0x6ce   :  { %8099 = vsyncpa [#allocation4 + $0x1], 1 }

</bundles_post_ra>
